<compile_context>
chip_gen: v6e
topology: v6e:2x2x1
jax: 0.10.0
libtpu: 0.0.40
codegen_flags: <defaults>
</compile_context>

<pallas_src>
import jax
import jax.numpy as jnp
import numpy as np
from jax.experimental import pallas as pl
from jax.experimental.pallas import tpu as pltpu

# efficient-KAN defaults (grid_size=5, spline_order=3, grid_range=[-1, 1])
GRID_SIZE = 5
SPLINE_ORDER = 3
NUM_BASES = GRID_SIZE + SPLINE_ORDER              # 8 spline basis functions
NUM_GRID_PTS = GRID_SIZE + 2 * SPLINE_ORDER + 1   # 12 extended knots
GRID_H = 2.0 / GRID_SIZE                          # uniform knot spacing
GRID_T0 = -1.0 - SPLINE_ORDER * GRID_H            # first extended knot
GRID_INV_H = 1.0 / GRID_H


def _round_up(n, m):
    return ((n + m - 1) // m) * m


# --------------------------------------------------------------------------
# In-kernel math
# --------------------------------------------------------------------------
def _spline_bases(x):
    """Cubic B-spline bases on the uniform extended grid, constant-folded.

    x: (TB, in) f32  ->  (TB, NUM_BASES*in) f32, lane order = basis-major
    (flat index k*in + i), matching the (NUM_BASES*in, out) weight layout.
    """
    u = (x - GRID_T0) * GRID_INV_H                       # knot index coordinate

    # single comparison chain: ind[j] = (u >= j), j = 0..NUM_GRID_PTS-1
    ind = [u >= float(j) for j in range(NUM_GRID_PTS)]
    # order-0 indicators on [j, j+1)  (half-open, matches efficient-KAN /
    # PyTorch:  (x >= t_j) & (x < t_{j+1})  ==  ind[j] & ~ind[j+1] for non-NaN)
    bases = [(ind[j] & (~ind[j + 1])).astype(jnp.float32)
             for j in range(NUM_GRID_PTS - 1)]           # len = 11

    # Cox–de Boor with uniform knots: denominators are k*h -> constant 1/k.
    for k in range(1, SPLINE_ORDER + 1):
        inv_k = 1.0 / float(k)
        bases = [(u - float(j)) * inv_k * bases[j]
                 + (float(j + k + 1) - u) * inv_k * bases[j + 1]
                 for j in range(len(bases) - 1)]
    # len(bases) == NUM_BASES; concat along lanes -> single K-dim for one dot
    return jnp.concatenate(bases, axis=-1)


def _kan_layer(x, wb, ws):
    """One KANLinear layer on an f32 activation tile.

    x:  (TB, in) f32
    wb: (in, out)            == base_weight.T          (possibly bf16)
    ws: (NUM_BASES*in, out)  == scaled_spline_weight, flattened k-major
    returns (TB, out) f32
    """
    mxu_dtype = wb.dtype
    acc = jnp.dot(jax.nn.silu(x).astype(mxu_dtype), wb,
                  preferred_element_type=jnp.float32)
    acc = acc + jnp.dot(_spline_bases(x).astype(mxu_dtype), ws,
                        preferred_element_type=jnp.float32)
    return acc


def _fused_kan_kernel(x_ref, w1b_ref, w1s_ref, w2b_ref, w2s_ref, out_ref):
    # x_ref:   (TB, in1)
    # w1b_ref: (in1, hidden)           w1s_ref: (NUM_BASES*in1, hidden)
    # w2b_ref: (hidden, out_pad)       w2s_ref: (NUM_BASES*hidden, out_pad)
    # out_ref: (TB, out_pad)           out_pad is a multiple of 128 (lane-dense)
    x = x_ref[...].astype(jnp.float32)
    h = _kan_layer(x, w1b_ref[...], w1s_ref[...])        # layer 1 (VMEM/vregs)
    y = _kan_layer(h, w2b_ref[...], w2s_ref[...])        # layer 2
    out_ref[...] = y.astype(out_ref.dtype)


# --------------------------------------------------------------------------
# pallas_call wrapper
# --------------------------------------------------------------------------
def _pick_batch_tile(n, target):
    tb = min(target, _round_up(n, 8))
    # prefer >= 2 grid steps when the batch allows, so both v7x TCs get work
    if n > 8 and pl.cdiv(n, tb) < 2:
        tb = _round_up(pl.cdiv(n, 2), 8)
    return tb


def fused_kan_forward(x2, kernel_params, *, batch_tile=512):
    """Fused two-layer KAN.  x2: (N, in1) -> (N, out_pad)."""
    w1b, w1s, w2b, w2s = kernel_params
    n, in1 = x2.shape
    out_pad = w2b.shape[1]

    tb = _pick_batch_tile(n, batch_tile)
    n_pad = pl.cdiv(n, tb) * tb
    if n_pad != n:
        x2 = jnp.pad(x2, ((0, n_pad - n), (0, 0)))

    y = pl.pallas_call(
        _fused_kan_kernel,
        out_shape=jax.ShapeDtypeStruct((n_pad, out_pad), x2.dtype),
        grid_spec=pltpu.PrefetchScalarGridSpec(
            num_scalar_prefetch=0,
            grid=(n_pad // tb,),
            in_specs=[
                pl.BlockSpec((tb, in1), lambda i: (i, 0)),
                pl.BlockSpec(w1b.shape, lambda i: (0, 0)),   # weights resident
                pl.BlockSpec(w1s.shape, lambda i: (0, 0)),
                pl.BlockSpec(w2b.shape, lambda i: (0, 0)),
                pl.BlockSpec(w2s.shape, lambda i: (0, 0)),
            ],
            out_specs=pl.BlockSpec((tb, out_pad), lambda i: (i, 0)),
        ),
        compiler_params=pltpu.CompilerParams(
            dimension_semantics=("parallel",)),
    )(x2, w1b, w1s, w2b, w2s)
    return y[:n]


def parametrization_network_ekan_forward(x, kernel_params, latent, *,
                                          batch_tile=512):
    """Matches KAN([koopman_dim, hidden_dim, latent]) forward on (..., koopman_dim)."""
    orig_shape = x.shape
    x2 = x.reshape(-1, orig_shape[-1])
    y = fused_kan_forward(x2, kernel_params, batch_tile=batch_tile)
    return y[:, :latent].reshape(*orig_shape[:-1], latent)


# --------------------------------------------------------------------------
# Parameter setup (deterministic, in-script)
# --------------------------------------------------------------------------
def _init_raw_kan_layer(key, in_f, out_f):
    """Raw efficient-KAN-style parameters + grid (for the reference)."""
    k1, k2, k3 = jax.random.split(key, 3)
    base_w = 0.1 * jax.random.normal(k1, (out_f, in_f), jnp.float32)
    spline_w = 0.1 * jax.random.normal(k2, (out_f, in_f, NUM_BASES), jnp.float32)
    spline_scaler = 1.0 + 0.1 * jax.random.normal(k3, (out_f, in_f), jnp.float32)
    scaled_spline_w = spline_w * spline_scaler[..., None]        # (out, in, K)

    grid_1d = (jnp.arange(-SPLINE_ORDER, GRID_SIZE + SPLINE_ORDER + 1,
                          dtype=jnp.float32) * GRID_H - 1.0)     # (G,)
    grid = jnp.broadcast_to(grid_1d[None, :], (in_f, NUM_GRID_PTS))
    return base_w, scaled_spline_w, grid


def _flatten_spline(scaled_spline_w):
    # (out, in, K) -> (K*in, out), row index = k*in + i  (matches the in-kernel
    # lane-concatenation order of the bases)
    out_f = scaled_spline_w.shape[0]
    return jnp.transpose(scaled_spline_w, (2, 1, 0)).reshape(-1, out_f)


def pack_kernel_params(raw_l1, raw_l2, latent, mxu_dtype):
    b1, s1, _ = raw_l1
    b2, s2, _ = raw_l2
    out_pad = _round_up(latent, 128)        # lane-dense output slab
    w1b = b1.T                                                  # (in1, hidden)
    w1s = _flatten_spline(s1)                                   # (K*in1, hidden)
    w2b = jnp.pad(b2.T, ((0, 0), (0, out_pad - latent)))        # (hidden, out_pad)
    w2s = jnp.pad(_flatten_spline(s2), ((0, 0), (0, out_pad - latent)))
    return (w1b.astype(mxu_dtype), w1s.astype(mxu_dtype),
            w2b.astype(mxu_dtype), w2s.astype(mxu_dtype))


# --------------------------------------------------------------------------
# Pure-JAX reference (mirrors the PyTorch efficient-KAN math) for validation
# --------------------------------------------------------------------------
def kan_linear_ref(x, base_w, scaled_spline_w, grid):
    # base_w: (out, in), scaled_spline_w: (out, in, K), grid: (in, G)
    xe = x[:, :, None]
    g = grid[None, :, :]
    bases = ((xe >= g[:, :, :-1]) & (xe < g[:, :, 1:])).astype(x.dtype)
    for k in range(1, SPLINE_ORDER + 1):
        bases = ((xe - g[:, :, :-(k + 1)])
                 / (g[:, :, k:-1] - g[:, :, :-(k + 1)]) * bases[:, :, :-1]
                 + (g[:, :, k + 1:] - xe)
                 / (g[:, :, k + 1:] - g[:, :, 1:-k]) * bases[:, :, 1:])
    base_out = jax.nn.silu(x) @ base_w.T
    spline_out = jnp.einsum('nik,oik->no', bases, scaled_spline_w)
    return base_out + spline_out


# --------------------------------------------------------------------------
if __name__ == "__main__":
    koopman_dim, hidden_dim, latent = 16, 32, 8
    x_shape = (4, 16, koopman_dim)           # small: 64 rows after flattening

    key = jax.random.PRNGKey(0)
    kx, k1, k2 = jax.random.split(key, 3)
    x = jax.random.normal(kx, x_shape, jnp.float32)

    raw_l1 = _init_raw_kan_layer(k1, koopman_dim, hidden_dim)
    raw_l2 = _init_raw_kan_layer(k2, hidden_dim, latent)

    # pure-JAX reference (full f32)
    x2 = x.reshape(-1, koopman_dim)
    y_ref = kan_linear_ref(kan_linear_ref(x2, *raw_l1), *raw_l2)
    y_ref = y_ref.reshape(*x_shape[:-1], latent)

    # 1) exact-precision path (f32 MXU inputs) — tight correctness check
    params_f32 = pack_kernel_params(raw_l1, raw_l2, latent, jnp.float32)
    y_f32 = parametrization_network_ekan_forward(x, params_f32, latent)
    y_f32 = jax.block_until_ready(y_f32)
    np.testing.assert_allclose(np.asarray(y_f32), np.asarray(y_ref),
                               rtol=1e-4, atol=1e-4)

    # 2) fast path (bf16 MXU inputs, f32 accumulation) — recommended on v6e/v7x
    params_bf16 = pack_kernel_params(raw_l1, raw_l2, latent, jnp.bfloat16)
    y_bf16 = parametrization_network_ekan_forward(x, params_bf16, latent)
    y_bf16 = jax.block_until_ready(y_bf16)
    np.testing.assert_allclose(np.asarray(y_bf16), np.asarray(y_ref),
                               rtol=5e-2, atol=5e-2)

    print("KERNEL_OK")
</pallas_src>

<mosaic_0001>
module attributes {stable_mosaic.version = 11 : i64} {
  func.func @_fused_kan_kernel(%arg0: i32, %arg1: memref<32x16xf32, #tpu.memory_space<vmem>>, %arg2: memref<16x32xf32, #tpu.memory_space<vmem>>, %arg3: memref<128x32xf32, #tpu.memory_space<vmem>>, %arg4: memref<32x128xf32, #tpu.memory_space<vmem>>, %arg5: memref<256x128xf32, #tpu.memory_space<vmem>>, %arg6: memref<32x128xf32, #tpu.memory_space<vmem>>) attributes {dimension_semantics = [#tpu.dimension_semantics<parallel>], iteration_bounds = array<i64: 2>, scalar_prefetch = 0 : i64, scratch_operands = 0 : i64, tpu.core_type = #tpu.core_type<tc>, window_params = [{transform_indices = @transform_0, window_bounds = array<i64: 32, 16>}, {pipeline_mode = #tpu.pipeline_mode<synchronous>, transform_indices = @transform_1, window_bounds = array<i64: 16, 32>}, {pipeline_mode = #tpu.pipeline_mode<synchronous>, transform_indices = @transform_2, window_bounds = array<i64: 128, 32>}, {pipeline_mode = #tpu.pipeline_mode<synchronous>, transform_indices = @transform_3, window_bounds = array<i64: 32, 128>}, {pipeline_mode = #tpu.pipeline_mode<synchronous>, transform_indices = @transform_4, window_bounds = array<i64: 256, 128>}, {transform_indices = @transform_5, window_bounds = array<i64: 32, 128>}]} {
    %c0 = arith.constant 0 : index
    %c0_0 = arith.constant 0 : index
    %0 = vector.load %arg1[%c0, %c0_0] : memref<32x16xf32, #tpu.memory_space<vmem>>, vector<32x16xf32>
    %c0_1 = arith.constant 0 : index
    %c0_2 = arith.constant 0 : index
    %1 = vector.load %arg2[%c0_1, %c0_2] : memref<16x32xf32, #tpu.memory_space<vmem>>, vector<16x32xf32>
    %c0_3 = arith.constant 0 : index
    %c0_4 = arith.constant 0 : index
    %2 = vector.load %arg3[%c0_3, %c0_4] : memref<128x32xf32, #tpu.memory_space<vmem>>, vector<128x32xf32>
    %3 = arith.negf %0 : vector<32x16xf32>
    %4 = math.exp %3 : vector<32x16xf32>
    %cst = arith.constant 1.000000e+00 : f32
    %5 = vector.broadcast %cst : f32 to vector<32x16xf32>
    %6 = arith.addf %5, %4 : vector<32x16xf32>
    %7 = arith.divf %5, %6 : vector<32x16xf32>
    %8 = arith.mulf %0, %7 : vector<32x16xf32>
    %cst_5 = arith.constant dense<0.000000e+00> : vector<32x32xf32>
    %9 = tpu.matmul %8, %1, %cst_5 {dimension_numbers = #tpu.dot_dimension_numbers<[1], [0], [0], [1], [0, 0, 1, 1], [], []>} : vector<32x16xf32>, vector<16x32xf32>, vector<32x32xf32> -> vector<32x32xf32>
    %cst_6 = arith.constant -2.200000e+00 : f32
    %10 = vector.broadcast %cst_6 : f32 to vector<32x16xf32>
    %11 = arith.subf %0, %10 : vector<32x16xf32>
    %cst_7 = arith.constant 2.500000e+00 : f32
    %12 = vector.broadcast %cst_7 : f32 to vector<32x16xf32>
    %13 = arith.mulf %11, %12 : vector<32x16xf32>
    %cst_8 = arith.constant 0.000000e+00 : f32
    %14 = vector.broadcast %cst_8 : f32 to vector<32x16xf32>
    %15 = arith.cmpf oge, %13, %14 : vector<32x16xf32>
    %cst_9 = arith.constant 1.000000e+00 : f32
    %16 = vector.broadcast %cst_9 : f32 to vector<32x16xf32>
    %17 = arith.cmpf oge, %13, %16 : vector<32x16xf32>
    %cst_10 = arith.constant 2.000000e+00 : f32
    %18 = vector.broadcast %cst_10 : f32 to vector<32x16xf32>
    %19 = arith.cmpf oge, %13, %18 : vector<32x16xf32>
    %cst_11 = arith.constant 3.000000e+00 : f32
    %20 = vector.broadcast %cst_11 : f32 to vector<32x16xf32>
    %21 = arith.cmpf oge, %13, %20 : vector<32x16xf32>
    %cst_12 = arith.constant 4.000000e+00 : f32
    %22 = vector.broadcast %cst_12 : f32 to vector<32x16xf32>
    %23 = arith.cmpf oge, %13, %22 : vector<32x16xf32>
    %cst_13 = arith.constant 5.000000e+00 : f32
    %24 = vector.broadcast %cst_13 : f32 to vector<32x16xf32>
    %25 = arith.cmpf oge, %13, %24 : vector<32x16xf32>
    %cst_14 = arith.constant 6.000000e+00 : f32
    %26 = vector.broadcast %cst_14 : f32 to vector<32x16xf32>
    %27 = arith.cmpf oge, %13, %26 : vector<32x16xf32>
    %cst_15 = arith.constant 7.000000e+00 : f32
    %28 = vector.broadcast %cst_15 : f32 to vector<32x16xf32>
    %29 = arith.cmpf oge, %13, %28 : vector<32x16xf32>
    %cst_16 = arith.constant 8.000000e+00 : f32
    %30 = vector.broadcast %cst_16 : f32 to vector<32x16xf32>
    %31 = arith.cmpf oge, %13, %30 : vector<32x16xf32>
    %cst_17 = arith.constant 9.000000e+00 : f32
    %32 = vector.broadcast %cst_17 : f32 to vector<32x16xf32>
    %33 = arith.cmpf oge, %13, %32 : vector<32x16xf32>
    %cst_18 = arith.constant 1.000000e+01 : f32
    %34 = vector.broadcast %cst_18 : f32 to vector<32x16xf32>
    %35 = arith.cmpf oge, %13, %34 : vector<32x16xf32>
    %cst_19 = arith.constant 1.100000e+01 : f32
    %36 = vector.broadcast %cst_19 : f32 to vector<32x16xf32>
    %37 = arith.cmpf oge, %13, %36 : vector<32x16xf32>
    %cst_20 = arith.constant dense<true> : vector<32x16xi1>
    %38 = arith.xori %17, %cst_20 : vector<32x16xi1>
    %39 = arith.andi %15, %38 : vector<32x16xi1>
    %40 = arith.extui %39 : vector<32x16xi1> to vector<32x16xi32>
    %41 = arith.sitofp %40 : vector<32x16xi32> to vector<32x16xf32>
    %cst_21 = arith.constant dense<true> : vector<32x16xi1>
    %42 = arith.xori %19, %cst_21 : vector<32x16xi1>
    %43 = arith.andi %17, %42 : vector<32x16xi1>
    %44 = arith.extui %43 : vector<32x16xi1> to vector<32x16xi32>
    %45 = arith.sitofp %44 : vector<32x16xi32> to vector<32x16xf32>
    %cst_22 = arith.constant dense<true> : vector<32x16xi1>
    %46 = arith.xori %21, %cst_22 : vector<32x16xi1>
    %47 = arith.andi %19, %46 : vector<32x16xi1>
    %48 = arith.extui %47 : vector<32x16xi1> to vector<32x16xi32>
    %49 = arith.sitofp %48 : vector<32x16xi32> to vector<32x16xf32>
    %cst_23 = arith.constant dense<true> : vector<32x16xi1>
    %50 = arith.xori %23, %cst_23 : vector<32x16xi1>
    %51 = arith.andi %21, %50 : vector<32x16xi1>
    %52 = arith.extui %51 : vector<32x16xi1> to vector<32x16xi32>
    %53 = arith.sitofp %52 : vector<32x16xi32> to vector<32x16xf32>
    %cst_24 = arith.constant dense<true> : vector<32x16xi1>
    %54 = arith.xori %25, %cst_24 : vector<32x16xi1>
    %55 = arith.andi %23, %54 : vector<32x16xi1>
    %56 = arith.extui %55 : vector<32x16xi1> to vector<32x16xi32>
    %57 = arith.sitofp %56 : vector<32x16xi32> to vector<32x16xf32>
    %cst_25 = arith.constant dense<true> : vector<32x16xi1>
    %58 = arith.xori %27, %cst_25 : vector<32x16xi1>
    %59 = arith.andi %25, %58 : vector<32x16xi1>
    %60 = arith.extui %59 : vector<32x16xi1> to vector<32x16xi32>
    %61 = arith.sitofp %60 : vector<32x16xi32> to vector<32x16xf32>
    %cst_26 = arith.constant dense<true> : vector<32x16xi1>
    %62 = arith.xori %29, %cst_26 : vector<32x16xi1>
    %63 = arith.andi %27, %62 : vector<32x16xi1>
    %64 = arith.extui %63 : vector<32x16xi1> to vector<32x16xi32>
    %65 = arith.sitofp %64 : vector<32x16xi32> to vector<32x16xf32>
    %cst_27 = arith.constant dense<true> : vector<32x16xi1>
    %66 = arith.xori %31, %cst_27 : vector<32x16xi1>
    %67 = arith.andi %29, %66 : vector<32x16xi1>
    %68 = arith.extui %67 : vector<32x16xi1> to vector<32x16xi32>
    %69 = arith.sitofp %68 : vector<32x16xi32> to vector<32x16xf32>
    %cst_28 = arith.constant dense<true> : vector<32x16xi1>
    %70 = arith.xori %33, %cst_28 : vector<32x16xi1>
    %71 = arith.andi %31, %70 : vector<32x16xi1>
    %72 = arith.extui %71 : vector<32x16xi1> to vector<32x16xi32>
    %73 = arith.sitofp %72 : vector<32x16xi32> to vector<32x16xf32>
    %cst_29 = arith.constant dense<true> : vector<32x16xi1>
    %74 = arith.xori %35, %cst_29 : vector<32x16xi1>
    %75 = arith.andi %33, %74 : vector<32x16xi1>
    %76 = arith.extui %75 : vector<32x16xi1> to vector<32x16xi32>
    %77 = arith.sitofp %76 : vector<32x16xi32> to vector<32x16xf32>
    %cst_30 = arith.constant dense<true> : vector<32x16xi1>
    %78 = arith.xori %37, %cst_30 : vector<32x16xi1>
    %79 = arith.andi %35, %78 : vector<32x16xi1>
    %80 = arith.extui %79 : vector<32x16xi1> to vector<32x16xi32>
    %81 = arith.sitofp %80 : vector<32x16xi32> to vector<32x16xf32>
    %cst_31 = arith.constant 0.000000e+00 : f32
    %82 = vector.broadcast %cst_31 : f32 to vector<32x16xf32>
    %83 = arith.subf %13, %82 : vector<32x16xf32>
    %cst_32 = arith.constant 1.000000e+00 : f32
    %84 = vector.broadcast %cst_32 : f32 to vector<32x16xf32>
    %85 = arith.mulf %83, %84 : vector<32x16xf32>
    %86 = arith.mulf %85, %41 : vector<32x16xf32>
    %cst_33 = arith.constant 2.000000e+00 : f32
    %87 = vector.broadcast %cst_33 : f32 to vector<32x16xf32>
    %88 = arith.subf %87, %13 : vector<32x16xf32>
    %cst_34 = arith.constant 1.000000e+00 : f32
    %89 = vector.broadcast %cst_34 : f32 to vector<32x16xf32>
    %90 = arith.mulf %88, %89 : vector<32x16xf32>
    %91 = arith.mulf %90, %45 : vector<32x16xf32>
    %92 = arith.addf %86, %91 : vector<32x16xf32>
    %cst_35 = arith.constant 1.000000e+00 : f32
    %93 = vector.broadcast %cst_35 : f32 to vector<32x16xf32>
    %94 = arith.subf %13, %93 : vector<32x16xf32>
    %cst_36 = arith.constant 1.000000e+00 : f32
    %95 = vector.broadcast %cst_36 : f32 to vector<32x16xf32>
    %96 = arith.mulf %94, %95 : vector<32x16xf32>
    %97 = arith.mulf %96, %45 : vector<32x16xf32>
    %cst_37 = arith.constant 3.000000e+00 : f32
    %98 = vector.broadcast %cst_37 : f32 to vector<32x16xf32>
    %99 = arith.subf %98, %13 : vector<32x16xf32>
    %cst_38 = arith.constant 1.000000e+00 : f32
    %100 = vector.broadcast %cst_38 : f32 to vector<32x16xf32>
    %101 = arith.mulf %99, %100 : vector<32x16xf32>
    %102 = arith.mulf %101, %49 : vector<32x16xf32>
    %103 = arith.addf %97, %102 : vector<32x16xf32>
    %cst_39 = arith.constant 2.000000e+00 : f32
    %104 = vector.broadcast %cst_39 : f32 to vector<32x16xf32>
    %105 = arith.subf %13, %104 : vector<32x16xf32>
    %cst_40 = arith.constant 1.000000e+00 : f32
    %106 = vector.broadcast %cst_40 : f32 to vector<32x16xf32>
    %107 = arith.mulf %105, %106 : vector<32x16xf32>
    %108 = arith.mulf %107, %49 : vector<32x16xf32>
    %cst_41 = arith.constant 4.000000e+00 : f32
    %109 = vector.broadcast %cst_41 : f32 to vector<32x16xf32>
    %110 = arith.subf %109, %13 : vector<32x16xf32>
    %cst_42 = arith.constant 1.000000e+00 : f32
    %111 = vector.broadcast %cst_42 : f32 to vector<32x16xf32>
    %112 = arith.mulf %110, %111 : vector<32x16xf32>
    %113 = arith.mulf %112, %53 : vector<32x16xf32>
    %114 = arith.addf %108, %113 : vector<32x16xf32>
    %cst_43 = arith.constant 3.000000e+00 : f32
    %115 = vector.broadcast %cst_43 : f32 to vector<32x16xf32>
    %116 = arith.subf %13, %115 : vector<32x16xf32>
    %cst_44 = arith.constant 1.000000e+00 : f32
    %117 = vector.broadcast %cst_44 : f32 to vector<32x16xf32>
    %118 = arith.mulf %116, %117 : vector<32x16xf32>
    %119 = arith.mulf %118, %53 : vector<32x16xf32>
    %cst_45 = arith.constant 5.000000e+00 : f32
    %120 = vector.broadcast %cst_45 : f32 to vector<32x16xf32>
    %121 = arith.subf %120, %13 : vector<32x16xf32>
    %cst_46 = arith.constant 1.000000e+00 : f32
    %122 = vector.broadcast %cst_46 : f32 to vector<32x16xf32>
    %123 = arith.mulf %121, %122 : vector<32x16xf32>
    %124 = arith.mulf %123, %57 : vector<32x16xf32>
    %125 = arith.addf %119, %124 : vector<32x16xf32>
    %cst_47 = arith.constant 4.000000e+00 : f32
    %126 = vector.broadcast %cst_47 : f32 to vector<32x16xf32>
    %127 = arith.subf %13, %126 : vector<32x16xf32>
    %cst_48 = arith.constant 1.000000e+00 : f32
    %128 = vector.broadcast %cst_48 : f32 to vector<32x16xf32>
    %129 = arith.mulf %127, %128 : vector<32x16xf32>
    %130 = arith.mulf %129, %57 : vector<32x16xf32>
    %cst_49 = arith.constant 6.000000e+00 : f32
    %131 = vector.broadcast %cst_49 : f32 to vector<32x16xf32>
    %132 = arith.subf %131, %13 : vector<32x16xf32>
    %cst_50 = arith.constant 1.000000e+00 : f32
    %133 = vector.broadcast %cst_50 : f32 to vector<32x16xf32>
    %134 = arith.mulf %132, %133 : vector<32x16xf32>
    %135 = arith.mulf %134, %61 : vector<32x16xf32>
    %136 = arith.addf %130, %135 : vector<32x16xf32>
    %cst_51 = arith.constant 5.000000e+00 : f32
    %137 = vector.broadcast %cst_51 : f32 to vector<32x16xf32>
    %138 = arith.subf %13, %137 : vector<32x16xf32>
    %cst_52 = arith.constant 1.000000e+00 : f32
    %139 = vector.broadcast %cst_52 : f32 to vector<32x16xf32>
    %140 = arith.mulf %138, %139 : vector<32x16xf32>
    %141 = arith.mulf %140, %61 : vector<32x16xf32>
    %cst_53 = arith.constant 7.000000e+00 : f32
    %142 = vector.broadcast %cst_53 : f32 to vector<32x16xf32>
    %143 = arith.subf %142, %13 : vector<32x16xf32>
    %cst_54 = arith.constant 1.000000e+00 : f32
    %144 = vector.broadcast %cst_54 : f32 to vector<32x16xf32>
    %145 = arith.mulf %143, %144 : vector<32x16xf32>
    %146 = arith.mulf %145, %65 : vector<32x16xf32>
    %147 = arith.addf %141, %146 : vector<32x16xf32>
    %cst_55 = arith.constant 6.000000e+00 : f32
    %148 = vector.broadcast %cst_55 : f32 to vector<32x16xf32>
    %149 = arith.subf %13, %148 : vector<32x16xf32>
    %cst_56 = arith.constant 1.000000e+00 : f32
    %150 = vector.broadcast %cst_56 : f32 to vector<32x16xf32>
    %151 = arith.mulf %149, %150 : vector<32x16xf32>
    %152 = arith.mulf %151, %65 : vector<32x16xf32>
    %cst_57 = arith.constant 8.000000e+00 : f32
    %153 = vector.broadcast %cst_57 : f32 to vector<32x16xf32>
    %154 = arith.subf %153, %13 : vector<32x16xf32>
    %cst_58 = arith.constant 1.000000e+00 : f32
    %155 = vector.broadcast %cst_58 : f32 to vector<32x16xf32>
    %156 = arith.mulf %154, %155 : vector<32x16xf32>
    %157 = arith.mulf %156, %69 : vector<32x16xf32>
    %158 = arith.addf %152, %157 : vector<32x16xf32>
    %cst_59 = arith.constant 7.000000e+00 : f32
    %159 = vector.broadcast %cst_59 : f32 to vector<32x16xf32>
    %160 = arith.subf %13, %159 : vector<32x16xf32>
    %cst_60 = arith.constant 1.000000e+00 : f32
    %161 = vector.broadcast %cst_60 : f32 to vector<32x16xf32>
    %162 = arith.mulf %160, %161 : vector<32x16xf32>
    %163 = arith.mulf %162, %69 : vector<32x16xf32>
    %cst_61 = arith.constant 9.000000e+00 : f32
    %164 = vector.broadcast %cst_61 : f32 to vector<32x16xf32>
    %165 = arith.subf %164, %13 : vector<32x16xf32>
    %cst_62 = arith.constant 1.000000e+00 : f32
    %166 = vector.broadcast %cst_62 : f32 to vector<32x16xf32>
    %167 = arith.mulf %165, %166 : vector<32x16xf32>
    %168 = arith.mulf %167, %73 : vector<32x16xf32>
    %169 = arith.addf %163, %168 : vector<32x16xf32>
    %cst_63 = arith.constant 8.000000e+00 : f32
    %170 = vector.broadcast %cst_63 : f32 to vector<32x16xf32>
    %171 = arith.subf %13, %170 : vector<32x16xf32>
    %cst_64 = arith.constant 1.000000e+00 : f32
    %172 = vector.broadcast %cst_64 : f32 to vector<32x16xf32>
    %173 = arith.mulf %171, %172 : vector<32x16xf32>
    %174 = arith.mulf %173, %73 : vector<32x16xf32>
    %cst_65 = arith.constant 1.000000e+01 : f32
    %175 = vector.broadcast %cst_65 : f32 to vector<32x16xf32>
    %176 = arith.subf %175, %13 : vector<32x16xf32>
    %cst_66 = arith.constant 1.000000e+00 : f32
    %177 = vector.broadcast %cst_66 : f32 to vector<32x16xf32>
    %178 = arith.mulf %176, %177 : vector<32x16xf32>
    %179 = arith.mulf %178, %77 : vector<32x16xf32>
    %180 = arith.addf %174, %179 : vector<32x16xf32>
    %cst_67 = arith.constant 9.000000e+00 : f32
    %181 = vector.broadcast %cst_67 : f32 to vector<32x16xf32>
    %182 = arith.subf %13, %181 : vector<32x16xf32>
    %cst_68 = arith.constant 1.000000e+00 : f32
    %183 = vector.broadcast %cst_68 : f32 to vector<32x16xf32>
    %184 = arith.mulf %182, %183 : vector<32x16xf32>
    %185 = arith.mulf %184, %77 : vector<32x16xf32>
    %cst_69 = arith.constant 1.100000e+01 : f32
    %186 = vector.broadcast %cst_69 : f32 to vector<32x16xf32>
    %187 = arith.subf %186, %13 : vector<32x16xf32>
    %cst_70 = arith.constant 1.000000e+00 : f32
    %188 = vector.broadcast %cst_70 : f32 to vector<32x16xf32>
    %189 = arith.mulf %187, %188 : vector<32x16xf32>
    %190 = arith.mulf %189, %81 : vector<32x16xf32>
    %191 = arith.addf %185, %190 : vector<32x16xf32>
    %cst_71 = arith.constant 0.000000e+00 : f32
    %192 = vector.broadcast %cst_71 : f32 to vector<32x16xf32>
    %193 = arith.subf %13, %192 : vector<32x16xf32>
    %cst_72 = arith.constant 5.000000e-01 : f32
    %194 = vector.broadcast %cst_72 : f32 to vector<32x16xf32>
    %195 = arith.mulf %193, %194 : vector<32x16xf32>
    %196 = arith.mulf %195, %92 : vector<32x16xf32>
    %cst_73 = arith.constant 3.000000e+00 : f32
    %197 = vector.broadcast %cst_73 : f32 to vector<32x16xf32>
    %198 = arith.subf %197, %13 : vector<32x16xf32>
    %cst_74 = arith.constant 5.000000e-01 : f32
    %199 = vector.broadcast %cst_74 : f32 to vector<32x16xf32>
    %200 = arith.mulf %198, %199 : vector<32x16xf32>
    %201 = arith.mulf %200, %103 : vector<32x16xf32>
    %202 = arith.addf %196, %201 : vector<32x16xf32>
    %cst_75 = arith.constant 1.000000e+00 : f32
    %203 = vector.broadcast %cst_75 : f32 to vector<32x16xf32>
    %204 = arith.subf %13, %203 : vector<32x16xf32>
    %cst_76 = arith.constant 5.000000e-01 : f32
    %205 = vector.broadcast %cst_76 : f32 to vector<32x16xf32>
    %206 = arith.mulf %204, %205 : vector<32x16xf32>
    %207 = arith.mulf %206, %103 : vector<32x16xf32>
    %cst_77 = arith.constant 4.000000e+00 : f32
    %208 = vector.broadcast %cst_77 : f32 to vector<32x16xf32>
    %209 = arith.subf %208, %13 : vector<32x16xf32>
    %cst_78 = arith.constant 5.000000e-01 : f32
    %210 = vector.broadcast %cst_78 : f32 to vector<32x16xf32>
    %211 = arith.mulf %209, %210 : vector<32x16xf32>
    %212 = arith.mulf %211, %114 : vector<32x16xf32>
    %213 = arith.addf %207, %212 : vector<32x16xf32>
    %cst_79 = arith.constant 2.000000e+00 : f32
    %214 = vector.broadcast %cst_79 : f32 to vector<32x16xf32>
    %215 = arith.subf %13, %214 : vector<32x16xf32>
    %cst_80 = arith.constant 5.000000e-01 : f32
    %216 = vector.broadcast %cst_80 : f32 to vector<32x16xf32>
    %217 = arith.mulf %215, %216 : vector<32x16xf32>
    %218 = arith.mulf %217, %114 : vector<32x16xf32>
    %cst_81 = arith.constant 5.000000e+00 : f32
    %219 = vector.broadcast %cst_81 : f32 to vector<32x16xf32>
    %220 = arith.subf %219, %13 : vector<32x16xf32>
    %cst_82 = arith.constant 5.000000e-01 : f32
    %221 = vector.broadcast %cst_82 : f32 to vector<32x16xf32>
    %222 = arith.mulf %220, %221 : vector<32x16xf32>
    %223 = arith.mulf %222, %125 : vector<32x16xf32>
    %224 = arith.addf %218, %223 : vector<32x16xf32>
    %cst_83 = arith.constant 3.000000e+00 : f32
    %225 = vector.broadcast %cst_83 : f32 to vector<32x16xf32>
    %226 = arith.subf %13, %225 : vector<32x16xf32>
    %cst_84 = arith.constant 5.000000e-01 : f32
    %227 = vector.broadcast %cst_84 : f32 to vector<32x16xf32>
    %228 = arith.mulf %226, %227 : vector<32x16xf32>
    %229 = arith.mulf %228, %125 : vector<32x16xf32>
    %cst_85 = arith.constant 6.000000e+00 : f32
    %230 = vector.broadcast %cst_85 : f32 to vector<32x16xf32>
    %231 = arith.subf %230, %13 : vector<32x16xf32>
    %cst_86 = arith.constant 5.000000e-01 : f32
    %232 = vector.broadcast %cst_86 : f32 to vector<32x16xf32>
    %233 = arith.mulf %231, %232 : vector<32x16xf32>
    %234 = arith.mulf %233, %136 : vector<32x16xf32>
    %235 = arith.addf %229, %234 : vector<32x16xf32>
    %cst_87 = arith.constant 4.000000e+00 : f32
    %236 = vector.broadcast %cst_87 : f32 to vector<32x16xf32>
    %237 = arith.subf %13, %236 : vector<32x16xf32>
    %cst_88 = arith.constant 5.000000e-01 : f32
    %238 = vector.broadcast %cst_88 : f32 to vector<32x16xf32>
    %239 = arith.mulf %237, %238 : vector<32x16xf32>
    %240 = arith.mulf %239, %136 : vector<32x16xf32>
    %cst_89 = arith.constant 7.000000e+00 : f32
    %241 = vector.broadcast %cst_89 : f32 to vector<32x16xf32>
    %242 = arith.subf %241, %13 : vector<32x16xf32>
    %cst_90 = arith.constant 5.000000e-01 : f32
    %243 = vector.broadcast %cst_90 : f32 to vector<32x16xf32>
    %244 = arith.mulf %242, %243 : vector<32x16xf32>
    %245 = arith.mulf %244, %147 : vector<32x16xf32>
    %246 = arith.addf %240, %245 : vector<32x16xf32>
    %cst_91 = arith.constant 5.000000e+00 : f32
    %247 = vector.broadcast %cst_91 : f32 to vector<32x16xf32>
    %248 = arith.subf %13, %247 : vector<32x16xf32>
    %cst_92 = arith.constant 5.000000e-01 : f32
    %249 = vector.broadcast %cst_92 : f32 to vector<32x16xf32>
    %250 = arith.mulf %248, %249 : vector<32x16xf32>
    %251 = arith.mulf %250, %147 : vector<32x16xf32>
    %cst_93 = arith.constant 8.000000e+00 : f32
    %252 = vector.broadcast %cst_93 : f32 to vector<32x16xf32>
    %253 = arith.subf %252, %13 : vector<32x16xf32>
    %cst_94 = arith.constant 5.000000e-01 : f32
    %254 = vector.broadcast %cst_94 : f32 to vector<32x16xf32>
    %255 = arith.mulf %253, %254 : vector<32x16xf32>
    %256 = arith.mulf %255, %158 : vector<32x16xf32>
    %257 = arith.addf %251, %256 : vector<32x16xf32>
    %cst_95 = arith.constant 6.000000e+00 : f32
    %258 = vector.broadcast %cst_95 : f32 to vector<32x16xf32>
    %259 = arith.subf %13, %258 : vector<32x16xf32>
    %cst_96 = arith.constant 5.000000e-01 : f32
    %260 = vector.broadcast %cst_96 : f32 to vector<32x16xf32>
    %261 = arith.mulf %259, %260 : vector<32x16xf32>
    %262 = arith.mulf %261, %158 : vector<32x16xf32>
    %cst_97 = arith.constant 9.000000e+00 : f32
    %263 = vector.broadcast %cst_97 : f32 to vector<32x16xf32>
    %264 = arith.subf %263, %13 : vector<32x16xf32>
    %cst_98 = arith.constant 5.000000e-01 : f32
    %265 = vector.broadcast %cst_98 : f32 to vector<32x16xf32>
    %266 = arith.mulf %264, %265 : vector<32x16xf32>
    %267 = arith.mulf %266, %169 : vector<32x16xf32>
    %268 = arith.addf %262, %267 : vector<32x16xf32>
    %cst_99 = arith.constant 7.000000e+00 : f32
    %269 = vector.broadcast %cst_99 : f32 to vector<32x16xf32>
    %270 = arith.subf %13, %269 : vector<32x16xf32>
    %cst_100 = arith.constant 5.000000e-01 : f32
    %271 = vector.broadcast %cst_100 : f32 to vector<32x16xf32>
    %272 = arith.mulf %270, %271 : vector<32x16xf32>
    %273 = arith.mulf %272, %169 : vector<32x16xf32>
    %cst_101 = arith.constant 1.000000e+01 : f32
    %274 = vector.broadcast %cst_101 : f32 to vector<32x16xf32>
    %275 = arith.subf %274, %13 : vector<32x16xf32>
    %cst_102 = arith.constant 5.000000e-01 : f32
    %276 = vector.broadcast %cst_102 : f32 to vector<32x16xf32>
    %277 = arith.mulf %275, %276 : vector<32x16xf32>
    %278 = arith.mulf %277, %180 : vector<32x16xf32>
    %279 = arith.addf %273, %278 : vector<32x16xf32>
    %cst_103 = arith.constant 8.000000e+00 : f32
    %280 = vector.broadcast %cst_103 : f32 to vector<32x16xf32>
    %281 = arith.subf %13, %280 : vector<32x16xf32>
    %cst_104 = arith.constant 5.000000e-01 : f32
    %282 = vector.broadcast %cst_104 : f32 to vector<32x16xf32>
    %283 = arith.mulf %281, %282 : vector<32x16xf32>
    %284 = arith.mulf %283, %180 : vector<32x16xf32>
    %cst_105 = arith.constant 1.100000e+01 : f32
    %285 = vector.broadcast %cst_105 : f32 to vector<32x16xf32>
    %286 = arith.subf %285, %13 : vector<32x16xf32>
    %cst_106 = arith.constant 5.000000e-01 : f32
    %287 = vector.broadcast %cst_106 : f32 to vector<32x16xf32>
    %288 = arith.mulf %286, %287 : vector<32x16xf32>
    %289 = arith.mulf %288, %191 : vector<32x16xf32>
    %290 = arith.addf %284, %289 : vector<32x16xf32>
    %cst_107 = arith.constant 0.000000e+00 : f32
    %291 = vector.broadcast %cst_107 : f32 to vector<32x16xf32>
    %292 = arith.subf %13, %291 : vector<32x16xf32>
    %cst_108 = arith.constant 0.333333343 : f32
    %293 = vector.broadcast %cst_108 : f32 to vector<32x16xf32>
    %294 = arith.mulf %292, %293 : vector<32x16xf32>
    %295 = arith.mulf %294, %202 : vector<32x16xf32>
    %cst_109 = arith.constant 4.000000e+00 : f32
    %296 = vector.broadcast %cst_109 : f32 to vector<32x16xf32>
    %297 = arith.subf %296, %13 : vector<32x16xf32>
    %cst_110 = arith.constant 0.333333343 : f32
    %298 = vector.broadcast %cst_110 : f32 to vector<32x16xf32>
    %299 = arith.mulf %297, %298 : vector<32x16xf32>
    %300 = arith.mulf %299, %213 : vector<32x16xf32>
    %301 = arith.addf %295, %300 : vector<32x16xf32>
    %cst_111 = arith.constant 1.000000e+00 : f32
    %302 = vector.broadcast %cst_111 : f32 to vector<32x16xf32>
    %303 = arith.subf %13, %302 : vector<32x16xf32>
    %cst_112 = arith.constant 0.333333343 : f32
    %304 = vector.broadcast %cst_112 : f32 to vector<32x16xf32>
    %305 = arith.mulf %303, %304 : vector<32x16xf32>
    %306 = arith.mulf %305, %213 : vector<32x16xf32>
    %cst_113 = arith.constant 5.000000e+00 : f32
    %307 = vector.broadcast %cst_113 : f32 to vector<32x16xf32>
    %308 = arith.subf %307, %13 : vector<32x16xf32>
    %cst_114 = arith.constant 0.333333343 : f32
    %309 = vector.broadcast %cst_114 : f32 to vector<32x16xf32>
    %310 = arith.mulf %308, %309 : vector<32x16xf32>
    %311 = arith.mulf %310, %224 : vector<32x16xf32>
    %312 = arith.addf %306, %311 : vector<32x16xf32>
    %cst_115 = arith.constant 2.000000e+00 : f32
    %313 = vector.broadcast %cst_115 : f32 to vector<32x16xf32>
    %314 = arith.subf %13, %313 : vector<32x16xf32>
    %cst_116 = arith.constant 0.333333343 : f32
    %315 = vector.broadcast %cst_116 : f32 to vector<32x16xf32>
    %316 = arith.mulf %314, %315 : vector<32x16xf32>
    %317 = arith.mulf %316, %224 : vector<32x16xf32>
    %cst_117 = arith.constant 6.000000e+00 : f32
    %318 = vector.broadcast %cst_117 : f32 to vector<32x16xf32>
    %319 = arith.subf %318, %13 : vector<32x16xf32>
    %cst_118 = arith.constant 0.333333343 : f32
    %320 = vector.broadcast %cst_118 : f32 to vector<32x16xf32>
    %321 = arith.mulf %319, %320 : vector<32x16xf32>
    %322 = arith.mulf %321, %235 : vector<32x16xf32>
    %323 = arith.addf %317, %322 : vector<32x16xf32>
    %cst_119 = arith.constant 3.000000e+00 : f32
    %324 = vector.broadcast %cst_119 : f32 to vector<32x16xf32>
    %325 = arith.subf %13, %324 : vector<32x16xf32>
    %cst_120 = arith.constant 0.333333343 : f32
    %326 = vector.broadcast %cst_120 : f32 to vector<32x16xf32>
    %327 = arith.mulf %325, %326 : vector<32x16xf32>
    %328 = arith.mulf %327, %235 : vector<32x16xf32>
    %cst_121 = arith.constant 7.000000e+00 : f32
    %329 = vector.broadcast %cst_121 : f32 to vector<32x16xf32>
    %330 = arith.subf %329, %13 : vector<32x16xf32>
    %cst_122 = arith.constant 0.333333343 : f32
    %331 = vector.broadcast %cst_122 : f32 to vector<32x16xf32>
    %332 = arith.mulf %330, %331 : vector<32x16xf32>
    %333 = arith.mulf %332, %246 : vector<32x16xf32>
    %334 = arith.addf %328, %333 : vector<32x16xf32>
    %cst_123 = arith.constant 4.000000e+00 : f32
    %335 = vector.broadcast %cst_123 : f32 to vector<32x16xf32>
    %336 = arith.subf %13, %335 : vector<32x16xf32>
    %cst_124 = arith.constant 0.333333343 : f32
    %337 = vector.broadcast %cst_124 : f32 to vector<32x16xf32>
    %338 = arith.mulf %336, %337 : vector<32x16xf32>
    %339 = arith.mulf %338, %246 : vector<32x16xf32>
    %cst_125 = arith.constant 8.000000e+00 : f32
    %340 = vector.broadcast %cst_125 : f32 to vector<32x16xf32>
    %341 = arith.subf %340, %13 : vector<32x16xf32>
    %cst_126 = arith.constant 0.333333343 : f32
    %342 = vector.broadcast %cst_126 : f32 to vector<32x16xf32>
    %343 = arith.mulf %341, %342 : vector<32x16xf32>
    %344 = arith.mulf %343, %257 : vector<32x16xf32>
    %345 = arith.addf %339, %344 : vector<32x16xf32>
    %cst_127 = arith.constant 5.000000e+00 : f32
    %346 = vector.broadcast %cst_127 : f32 to vector<32x16xf32>
    %347 = arith.subf %13, %346 : vector<32x16xf32>
    %cst_128 = arith.constant 0.333333343 : f32
    %348 = vector.broadcast %cst_128 : f32 to vector<32x16xf32>
    %349 = arith.mulf %347, %348 : vector<32x16xf32>
    %350 = arith.mulf %349, %257 : vector<32x16xf32>
    %cst_129 = arith.constant 9.000000e+00 : f32
    %351 = vector.broadcast %cst_129 : f32 to vector<32x16xf32>
    %352 = arith.subf %351, %13 : vector<32x16xf32>
    %cst_130 = arith.constant 0.333333343 : f32
    %353 = vector.broadcast %cst_130 : f32 to vector<32x16xf32>
    %354 = arith.mulf %352, %353 : vector<32x16xf32>
    %355 = arith.mulf %354, %268 : vector<32x16xf32>
    %356 = arith.addf %350, %355 : vector<32x16xf32>
    %cst_131 = arith.constant 6.000000e+00 : f32
    %357 = vector.broadcast %cst_131 : f32 to vector<32x16xf32>
    %358 = arith.subf %13, %357 : vector<32x16xf32>
    %cst_132 = arith.constant 0.333333343 : f32
    %359 = vector.broadcast %cst_132 : f32 to vector<32x16xf32>
    %360 = arith.mulf %358, %359 : vector<32x16xf32>
    %361 = arith.mulf %360, %268 : vector<32x16xf32>
    %cst_133 = arith.constant 1.000000e+01 : f32
    %362 = vector.broadcast %cst_133 : f32 to vector<32x16xf32>
    %363 = arith.subf %362, %13 : vector<32x16xf32>
    %cst_134 = arith.constant 0.333333343 : f32
    %364 = vector.broadcast %cst_134 : f32 to vector<32x16xf32>
    %365 = arith.mulf %363, %364 : vector<32x16xf32>
    %366 = arith.mulf %365, %279 : vector<32x16xf32>
    %367 = arith.addf %361, %366 : vector<32x16xf32>
    %cst_135 = arith.constant 7.000000e+00 : f32
    %368 = vector.broadcast %cst_135 : f32 to vector<32x16xf32>
    %369 = arith.subf %13, %368 : vector<32x16xf32>
    %cst_136 = arith.constant 0.333333343 : f32
    %370 = vector.broadcast %cst_136 : f32 to vector<32x16xf32>
    %371 = arith.mulf %369, %370 : vector<32x16xf32>
    %372 = arith.mulf %371, %279 : vector<32x16xf32>
    %cst_137 = arith.constant 1.100000e+01 : f32
    %373 = vector.broadcast %cst_137 : f32 to vector<32x16xf32>
    %374 = arith.subf %373, %13 : vector<32x16xf32>
    %cst_138 = arith.constant 0.333333343 : f32
    %375 = vector.broadcast %cst_138 : f32 to vector<32x16xf32>
    %376 = arith.mulf %374, %375 : vector<32x16xf32>
    %377 = arith.mulf %376, %290 : vector<32x16xf32>
    %378 = arith.addf %372, %377 : vector<32x16xf32>
    %379 = tpu.concatenate %301, %312, %323, %334, %345, %356, %367, %378 in 1 : vector<32x16xf32>, vector<32x16xf32>, vector<32x16xf32>, vector<32x16xf32>, vector<32x16xf32>, vector<32x16xf32>, vector<32x16xf32>, vector<32x16xf32> -> vector<32x128xf32>
    %cst_139 = arith.constant dense<0.000000e+00> : vector<32x32xf32>
    %380 = tpu.matmul %379, %2, %cst_139 {dimension_numbers = #tpu.dot_dimension_numbers<[1], [0], [0], [1], [0, 0, 1, 1], [], []>} : vector<32x128xf32>, vector<128x32xf32>, vector<32x32xf32> -> vector<32x32xf32>
    %381 = arith.addf %9, %380 : vector<32x32xf32>
    %c0_140 = arith.constant 0 : index
    %c0_141 = arith.constant 0 : index
    %382 = vector.load %arg4[%c0_140, %c0_141] : memref<32x128xf32, #tpu.memory_space<vmem>>, vector<32x128xf32>
    %c0_142 = arith.constant 0 : index
    %c0_143 = arith.constant 0 : index
    %383 = vector.load %arg5[%c0_142, %c0_143] : memref<256x128xf32, #tpu.memory_space<vmem>>, vector<256x128xf32>
    %384 = arith.negf %381 : vector<32x32xf32>
    %385 = math.exp %384 : vector<32x32xf32>
    %cst_144 = arith.constant 1.000000e+00 : f32
    %386 = vector.broadcast %cst_144 : f32 to vector<32x32xf32>
    %387 = arith.addf %386, %385 : vector<32x32xf32>
    %388 = arith.divf %386, %387 : vector<32x32xf32>
    %389 = arith.mulf %381, %388 : vector<32x32xf32>
    %cst_145 = arith.constant dense<0.000000e+00> : vector<32x128xf32>
    %390 = tpu.matmul %389, %382, %cst_145 {dimension_numbers = #tpu.dot_dimension_numbers<[1], [0], [0], [1], [0, 0, 1, 1], [], []>} : vector<32x32xf32>, vector<32x128xf32>, vector<32x128xf32> -> vector<32x128xf32>
    %cst_146 = arith.constant -2.200000e+00 : f32
    %391 = vector.broadcast %cst_146 : f32 to vector<32x32xf32>
    %392 = arith.subf %381, %391 : vector<32x32xf32>
    %cst_147 = arith.constant 2.500000e+00 : f32
    %393 = vector.broadcast %cst_147 : f32 to vector<32x32xf32>
    %394 = arith.mulf %392, %393 : vector<32x32xf32>
    %cst_148 = arith.constant 0.000000e+00 : f32
    %395 = vector.broadcast %cst_148 : f32 to vector<32x32xf32>
    %396 = arith.cmpf oge, %394, %395 : vector<32x32xf32>
    %cst_149 = arith.constant 1.000000e+00 : f32
    %397 = vector.broadcast %cst_149 : f32 to vector<32x32xf32>
    %398 = arith.cmpf oge, %394, %397 : vector<32x32xf32>
    %cst_150 = arith.constant 2.000000e+00 : f32
    %399 = vector.broadcast %cst_150 : f32 to vector<32x32xf32>
    %400 = arith.cmpf oge, %394, %399 : vector<32x32xf32>
    %cst_151 = arith.constant 3.000000e+00 : f32
    %401 = vector.broadcast %cst_151 : f32 to vector<32x32xf32>
    %402 = arith.cmpf oge, %394, %401 : vector<32x32xf32>
    %cst_152 = arith.constant 4.000000e+00 : f32
    %403 = vector.broadcast %cst_152 : f32 to vector<32x32xf32>
    %404 = arith.cmpf oge, %394, %403 : vector<32x32xf32>
    %cst_153 = arith.constant 5.000000e+00 : f32
    %405 = vector.broadcast %cst_153 : f32 to vector<32x32xf32>
    %406 = arith.cmpf oge, %394, %405 : vector<32x32xf32>
    %cst_154 = arith.constant 6.000000e+00 : f32
    %407 = vector.broadcast %cst_154 : f32 to vector<32x32xf32>
    %408 = arith.cmpf oge, %394, %407 : vector<32x32xf32>
    %cst_155 = arith.constant 7.000000e+00 : f32
    %409 = vector.broadcast %cst_155 : f32 to vector<32x32xf32>
    %410 = arith.cmpf oge, %394, %409 : vector<32x32xf32>
    %cst_156 = arith.constant 8.000000e+00 : f32
    %411 = vector.broadcast %cst_156 : f32 to vector<32x32xf32>
    %412 = arith.cmpf oge, %394, %411 : vector<32x32xf32>
    %cst_157 = arith.constant 9.000000e+00 : f32
    %413 = vector.broadcast %cst_157 : f32 to vector<32x32xf32>
    %414 = arith.cmpf oge, %394, %413 : vector<32x32xf32>
    %cst_158 = arith.constant 1.000000e+01 : f32
    %415 = vector.broadcast %cst_158 : f32 to vector<32x32xf32>
    %416 = arith.cmpf oge, %394, %415 : vector<32x32xf32>
    %cst_159 = arith.constant 1.100000e+01 : f32
    %417 = vector.broadcast %cst_159 : f32 to vector<32x32xf32>
    %418 = arith.cmpf oge, %394, %417 : vector<32x32xf32>
    %cst_160 = arith.constant dense<true> : vector<32x32xi1>
    %419 = arith.xori %398, %cst_160 : vector<32x32xi1>
    %420 = arith.andi %396, %419 : vector<32x32xi1>
    %421 = arith.extui %420 : vector<32x32xi1> to vector<32x32xi32>
    %422 = arith.sitofp %421 : vector<32x32xi32> to vector<32x32xf32>
    %cst_161 = arith.constant dense<true> : vector<32x32xi1>
    %423 = arith.xori %400, %cst_161 : vector<32x32xi1>
    %424 = arith.andi %398, %423 : vector<32x32xi1>
    %425 = arith.extui %424 : vector<32x32xi1> to vector<32x32xi32>
    %426 = arith.sitofp %425 : vector<32x32xi32> to vector<32x32xf32>
    %cst_162 = arith.constant dense<true> : vector<32x32xi1>
    %427 = arith.xori %402, %cst_162 : vector<32x32xi1>
    %428 = arith.andi %400, %427 : vector<32x32xi1>
    %429 = arith.extui %428 : vector<32x32xi1> to vector<32x32xi32>
    %430 = arith.sitofp %429 : vector<32x32xi32> to vector<32x32xf32>
    %cst_163 = arith.constant dense<true> : vector<32x32xi1>
    %431 = arith.xori %404, %cst_163 : vector<32x32xi1>
    %432 = arith.andi %402, %431 : vector<32x32xi1>
    %433 = arith.extui %432 : vector<32x32xi1> to vector<32x32xi32>
    %434 = arith.sitofp %433 : vector<32x32xi32> to vector<32x32xf32>
    %cst_164 = arith.constant dense<true> : vector<32x32xi1>
    %435 = arith.xori %406, %cst_164 : vector<32x32xi1>
    %436 = arith.andi %404, %435 : vector<32x32xi1>
    %437 = arith.extui %436 : vector<32x32xi1> to vector<32x32xi32>
    %438 = arith.sitofp %437 : vector<32x32xi32> to vector<32x32xf32>
    %cst_165 = arith.constant dense<true> : vector<32x32xi1>
    %439 = arith.xori %408, %cst_165 : vector<32x32xi1>
    %440 = arith.andi %406, %439 : vector<32x32xi1>
    %441 = arith.extui %440 : vector<32x32xi1> to vector<32x32xi32>
    %442 = arith.sitofp %441 : vector<32x32xi32> to vector<32x32xf32>
    %cst_166 = arith.constant dense<true> : vector<32x32xi1>
    %443 = arith.xori %410, %cst_166 : vector<32x32xi1>
    %444 = arith.andi %408, %443 : vector<32x32xi1>
    %445 = arith.extui %444 : vector<32x32xi1> to vector<32x32xi32>
    %446 = arith.sitofp %445 : vector<32x32xi32> to vector<32x32xf32>
    %cst_167 = arith.constant dense<true> : vector<32x32xi1>
    %447 = arith.xori %412, %cst_167 : vector<32x32xi1>
    %448 = arith.andi %410, %447 : vector<32x32xi1>
    %449 = arith.extui %448 : vector<32x32xi1> to vector<32x32xi32>
    %450 = arith.sitofp %449 : vector<32x32xi32> to vector<32x32xf32>
    %cst_168 = arith.constant dense<true> : vector<32x32xi1>
    %451 = arith.xori %414, %cst_168 : vector<32x32xi1>
    %452 = arith.andi %412, %451 : vector<32x32xi1>
    %453 = arith.extui %452 : vector<32x32xi1> to vector<32x32xi32>
    %454 = arith.sitofp %453 : vector<32x32xi32> to vector<32x32xf32>
    %cst_169 = arith.constant dense<true> : vector<32x32xi1>
    %455 = arith.xori %416, %cst_169 : vector<32x32xi1>
    %456 = arith.andi %414, %455 : vector<32x32xi1>
    %457 = arith.extui %456 : vector<32x32xi1> to vector<32x32xi32>
    %458 = arith.sitofp %457 : vector<32x32xi32> to vector<32x32xf32>
    %cst_170 = arith.constant dense<true> : vector<32x32xi1>
    %459 = arith.xori %418, %cst_170 : vector<32x32xi1>
    %460 = arith.andi %416, %459 : vector<32x32xi1>
    %461 = arith.extui %460 : vector<32x32xi1> to vector<32x32xi32>
    %462 = arith.sitofp %461 : vector<32x32xi32> to vector<32x32xf32>
    %cst_171 = arith.constant 0.000000e+00 : f32
    %463 = vector.broadcast %cst_171 : f32 to vector<32x32xf32>
    %464 = arith.subf %394, %463 : vector<32x32xf32>
    %cst_172 = arith.constant 1.000000e+00 : f32
    %465 = vector.broadcast %cst_172 : f32 to vector<32x32xf32>
    %466 = arith.mulf %464, %465 : vector<32x32xf32>
    %467 = arith.mulf %466, %422 : vector<32x32xf32>
    %cst_173 = arith.constant 2.000000e+00 : f32
    %468 = vector.broadcast %cst_173 : f32 to vector<32x32xf32>
    %469 = arith.subf %468, %394 : vector<32x32xf32>
    %cst_174 = arith.constant 1.000000e+00 : f32
    %470 = vector.broadcast %cst_174 : f32 to vector<32x32xf32>
    %471 = arith.mulf %469, %470 : vector<32x32xf32>
    %472 = arith.mulf %471, %426 : vector<32x32xf32>
    %473 = arith.addf %467, %472 : vector<32x32xf32>
    %cst_175 = arith.constant 1.000000e+00 : f32
    %474 = vector.broadcast %cst_175 : f32 to vector<32x32xf32>
    %475 = arith.subf %394, %474 : vector<32x32xf32>
    %cst_176 = arith.constant 1.000000e+00 : f32
    %476 = vector.broadcast %cst_176 : f32 to vector<32x32xf32>
    %477 = arith.mulf %475, %476 : vector<32x32xf32>
    %478 = arith.mulf %477, %426 : vector<32x32xf32>
    %cst_177 = arith.constant 3.000000e+00 : f32
    %479 = vector.broadcast %cst_177 : f32 to vector<32x32xf32>
    %480 = arith.subf %479, %394 : vector<32x32xf32>
    %cst_178 = arith.constant 1.000000e+00 : f32
    %481 = vector.broadcast %cst_178 : f32 to vector<32x32xf32>
    %482 = arith.mulf %480, %481 : vector<32x32xf32>
    %483 = arith.mulf %482, %430 : vector<32x32xf32>
    %484 = arith.addf %478, %483 : vector<32x32xf32>
    %cst_179 = arith.constant 2.000000e+00 : f32
    %485 = vector.broadcast %cst_179 : f32 to vector<32x32xf32>
    %486 = arith.subf %394, %485 : vector<32x32xf32>
    %cst_180 = arith.constant 1.000000e+00 : f32
    %487 = vector.broadcast %cst_180 : f32 to vector<32x32xf32>
    %488 = arith.mulf %486, %487 : vector<32x32xf32>
    %489 = arith.mulf %488, %430 : vector<32x32xf32>
    %cst_181 = arith.constant 4.000000e+00 : f32
    %490 = vector.broadcast %cst_181 : f32 to vector<32x32xf32>
    %491 = arith.subf %490, %394 : vector<32x32xf32>
    %cst_182 = arith.constant 1.000000e+00 : f32
    %492 = vector.broadcast %cst_182 : f32 to vector<32x32xf32>
    %493 = arith.mulf %491, %492 : vector<32x32xf32>
    %494 = arith.mulf %493, %434 : vector<32x32xf32>
    %495 = arith.addf %489, %494 : vector<32x32xf32>
    %cst_183 = arith.constant 3.000000e+00 : f32
    %496 = vector.broadcast %cst_183 : f32 to vector<32x32xf32>
    %497 = arith.subf %394, %496 : vector<32x32xf32>
    %cst_184 = arith.constant 1.000000e+00 : f32
    %498 = vector.broadcast %cst_184 : f32 to vector<32x32xf32>
    %499 = arith.mulf %497, %498 : vector<32x32xf32>
    %500 = arith.mulf %499, %434 : vector<32x32xf32>
    %cst_185 = arith.constant 5.000000e+00 : f32
    %501 = vector.broadcast %cst_185 : f32 to vector<32x32xf32>
    %502 = arith.subf %501, %394 : vector<32x32xf32>
    %cst_186 = arith.constant 1.000000e+00 : f32
    %503 = vector.broadcast %cst_186 : f32 to vector<32x32xf32>
    %504 = arith.mulf %502, %503 : vector<32x32xf32>
    %505 = arith.mulf %504, %438 : vector<32x32xf32>
    %506 = arith.addf %500, %505 : vector<32x32xf32>
    %cst_187 = arith.constant 4.000000e+00 : f32
    %507 = vector.broadcast %cst_187 : f32 to vector<32x32xf32>
    %508 = arith.subf %394, %507 : vector<32x32xf32>
    %cst_188 = arith.constant 1.000000e+00 : f32
    %509 = vector.broadcast %cst_188 : f32 to vector<32x32xf32>
    %510 = arith.mulf %508, %509 : vector<32x32xf32>
    %511 = arith.mulf %510, %438 : vector<32x32xf32>
    %cst_189 = arith.constant 6.000000e+00 : f32
    %512 = vector.broadcast %cst_189 : f32 to vector<32x32xf32>
    %513 = arith.subf %512, %394 : vector<32x32xf32>
    %cst_190 = arith.constant 1.000000e+00 : f32
    %514 = vector.broadcast %cst_190 : f32 to vector<32x32xf32>
    %515 = arith.mulf %513, %514 : vector<32x32xf32>
    %516 = arith.mulf %515, %442 : vector<32x32xf32>
    %517 = arith.addf %511, %516 : vector<32x32xf32>
    %cst_191 = arith.constant 5.000000e+00 : f32
    %518 = vector.broadcast %cst_191 : f32 to vector<32x32xf32>
    %519 = arith.subf %394, %518 : vector<32x32xf32>
    %cst_192 = arith.constant 1.000000e+00 : f32
    %520 = vector.broadcast %cst_192 : f32 to vector<32x32xf32>
    %521 = arith.mulf %519, %520 : vector<32x32xf32>
    %522 = arith.mulf %521, %442 : vector<32x32xf32>
    %cst_193 = arith.constant 7.000000e+00 : f32
    %523 = vector.broadcast %cst_193 : f32 to vector<32x32xf32>
    %524 = arith.subf %523, %394 : vector<32x32xf32>
    %cst_194 = arith.constant 1.000000e+00 : f32
    %525 = vector.broadcast %cst_194 : f32 to vector<32x32xf32>
    %526 = arith.mulf %524, %525 : vector<32x32xf32>
    %527 = arith.mulf %526, %446 : vector<32x32xf32>
    %528 = arith.addf %522, %527 : vector<32x32xf32>
    %cst_195 = arith.constant 6.000000e+00 : f32
    %529 = vector.broadcast %cst_195 : f32 to vector<32x32xf32>
    %530 = arith.subf %394, %529 : vector<32x32xf32>
    %cst_196 = arith.constant 1.000000e+00 : f32
    %531 = vector.broadcast %cst_196 : f32 to vector<32x32xf32>
    %532 = arith.mulf %530, %531 : vector<32x32xf32>
    %533 = arith.mulf %532, %446 : vector<32x32xf32>
    %cst_197 = arith.constant 8.000000e+00 : f32
    %534 = vector.broadcast %cst_197 : f32 to vector<32x32xf32>
    %535 = arith.subf %534, %394 : vector<32x32xf32>
    %cst_198 = arith.constant 1.000000e+00 : f32
    %536 = vector.broadcast %cst_198 : f32 to vector<32x32xf32>
    %537 = arith.mulf %535, %536 : vector<32x32xf32>
    %538 = arith.mulf %537, %450 : vector<32x32xf32>
    %539 = arith.addf %533, %538 : vector<32x32xf32>
    %cst_199 = arith.constant 7.000000e+00 : f32
    %540 = vector.broadcast %cst_199 : f32 to vector<32x32xf32>
    %541 = arith.subf %394, %540 : vector<32x32xf32>
    %cst_200 = arith.constant 1.000000e+00 : f32
    %542 = vector.broadcast %cst_200 : f32 to vector<32x32xf32>
    %543 = arith.mulf %541, %542 : vector<32x32xf32>
    %544 = arith.mulf %543, %450 : vector<32x32xf32>
    %cst_201 = arith.constant 9.000000e+00 : f32
    %545 = vector.broadcast %cst_201 : f32 to vector<32x32xf32>
    %546 = arith.subf %545, %394 : vector<32x32xf32>
    %cst_202 = arith.constant 1.000000e+00 : f32
    %547 = vector.broadcast %cst_202 : f32 to vector<32x32xf32>
    %548 = arith.mulf %546, %547 : vector<32x32xf32>
    %549 = arith.mulf %548, %454 : vector<32x32xf32>
    %550 = arith.addf %544, %549 : vector<32x32xf32>
    %cst_203 = arith.constant 8.000000e+00 : f32
    %551 = vector.broadcast %cst_203 : f32 to vector<32x32xf32>
    %552 = arith.subf %394, %551 : vector<32x32xf32>
    %cst_204 = arith.constant 1.000000e+00 : f32
    %553 = vector.broadcast %cst_204 : f32 to vector<32x32xf32>
    %554 = arith.mulf %552, %553 : vector<32x32xf32>
    %555 = arith.mulf %554, %454 : vector<32x32xf32>
    %cst_205 = arith.constant 1.000000e+01 : f32
    %556 = vector.broadcast %cst_205 : f32 to vector<32x32xf32>
    %557 = arith.subf %556, %394 : vector<32x32xf32>
    %cst_206 = arith.constant 1.000000e+00 : f32
    %558 = vector.broadcast %cst_206 : f32 to vector<32x32xf32>
    %559 = arith.mulf %557, %558 : vector<32x32xf32>
    %560 = arith.mulf %559, %458 : vector<32x32xf32>
    %561 = arith.addf %555, %560 : vector<32x32xf32>
    %cst_207 = arith.constant 9.000000e+00 : f32
    %562 = vector.broadcast %cst_207 : f32 to vector<32x32xf32>
    %563 = arith.subf %394, %562 : vector<32x32xf32>
    %cst_208 = arith.constant 1.000000e+00 : f32
    %564 = vector.broadcast %cst_208 : f32 to vector<32x32xf32>
    %565 = arith.mulf %563, %564 : vector<32x32xf32>
    %566 = arith.mulf %565, %458 : vector<32x32xf32>
    %cst_209 = arith.constant 1.100000e+01 : f32
    %567 = vector.broadcast %cst_209 : f32 to vector<32x32xf32>
    %568 = arith.subf %567, %394 : vector<32x32xf32>
    %cst_210 = arith.constant 1.000000e+00 : f32
    %569 = vector.broadcast %cst_210 : f32 to vector<32x32xf32>
    %570 = arith.mulf %568, %569 : vector<32x32xf32>
    %571 = arith.mulf %570, %462 : vector<32x32xf32>
    %572 = arith.addf %566, %571 : vector<32x32xf32>
    %cst_211 = arith.constant 0.000000e+00 : f32
    %573 = vector.broadcast %cst_211 : f32 to vector<32x32xf32>
    %574 = arith.subf %394, %573 : vector<32x32xf32>
    %cst_212 = arith.constant 5.000000e-01 : f32
    %575 = vector.broadcast %cst_212 : f32 to vector<32x32xf32>
    %576 = arith.mulf %574, %575 : vector<32x32xf32>
    %577 = arith.mulf %576, %473 : vector<32x32xf32>
    %cst_213 = arith.constant 3.000000e+00 : f32
    %578 = vector.broadcast %cst_213 : f32 to vector<32x32xf32>
    %579 = arith.subf %578, %394 : vector<32x32xf32>
    %cst_214 = arith.constant 5.000000e-01 : f32
    %580 = vector.broadcast %cst_214 : f32 to vector<32x32xf32>
    %581 = arith.mulf %579, %580 : vector<32x32xf32>
    %582 = arith.mulf %581, %484 : vector<32x32xf32>
    %583 = arith.addf %577, %582 : vector<32x32xf32>
    %cst_215 = arith.constant 1.000000e+00 : f32
    %584 = vector.broadcast %cst_215 : f32 to vector<32x32xf32>
    %585 = arith.subf %394, %584 : vector<32x32xf32>
    %cst_216 = arith.constant 5.000000e-01 : f32
    %586 = vector.broadcast %cst_216 : f32 to vector<32x32xf32>
    %587 = arith.mulf %585, %586 : vector<32x32xf32>
    %588 = arith.mulf %587, %484 : vector<32x32xf32>
    %cst_217 = arith.constant 4.000000e+00 : f32
    %589 = vector.broadcast %cst_217 : f32 to vector<32x32xf32>
    %590 = arith.subf %589, %394 : vector<32x32xf32>
    %cst_218 = arith.constant 5.000000e-01 : f32
    %591 = vector.broadcast %cst_218 : f32 to vector<32x32xf32>
    %592 = arith.mulf %590, %591 : vector<32x32xf32>
    %593 = arith.mulf %592, %495 : vector<32x32xf32>
    %594 = arith.addf %588, %593 : vector<32x32xf32>
    %cst_219 = arith.constant 2.000000e+00 : f32
    %595 = vector.broadcast %cst_219 : f32 to vector<32x32xf32>
    %596 = arith.subf %394, %595 : vector<32x32xf32>
    %cst_220 = arith.constant 5.000000e-01 : f32
    %597 = vector.broadcast %cst_220 : f32 to vector<32x32xf32>
    %598 = arith.mulf %596, %597 : vector<32x32xf32>
    %599 = arith.mulf %598, %495 : vector<32x32xf32>
    %cst_221 = arith.constant 5.000000e+00 : f32
    %600 = vector.broadcast %cst_221 : f32 to vector<32x32xf32>
    %601 = arith.subf %600, %394 : vector<32x32xf32>
    %cst_222 = arith.constant 5.000000e-01 : f32
    %602 = vector.broadcast %cst_222 : f32 to vector<32x32xf32>
    %603 = arith.mulf %601, %602 : vector<32x32xf32>
    %604 = arith.mulf %603, %506 : vector<32x32xf32>
    %605 = arith.addf %599, %604 : vector<32x32xf32>
    %cst_223 = arith.constant 3.000000e+00 : f32
    %606 = vector.broadcast %cst_223 : f32 to vector<32x32xf32>
    %607 = arith.subf %394, %606 : vector<32x32xf32>
    %cst_224 = arith.constant 5.000000e-01 : f32
    %608 = vector.broadcast %cst_224 : f32 to vector<32x32xf32>
    %609 = arith.mulf %607, %608 : vector<32x32xf32>
    %610 = arith.mulf %609, %506 : vector<32x32xf32>
    %cst_225 = arith.constant 6.000000e+00 : f32
    %611 = vector.broadcast %cst_225 : f32 to vector<32x32xf32>
    %612 = arith.subf %611, %394 : vector<32x32xf32>
    %cst_226 = arith.constant 5.000000e-01 : f32
    %613 = vector.broadcast %cst_226 : f32 to vector<32x32xf32>
    %614 = arith.mulf %612, %613 : vector<32x32xf32>
    %615 = arith.mulf %614, %517 : vector<32x32xf32>
    %616 = arith.addf %610, %615 : vector<32x32xf32>
    %cst_227 = arith.constant 4.000000e+00 : f32
    %617 = vector.broadcast %cst_227 : f32 to vector<32x32xf32>
    %618 = arith.subf %394, %617 : vector<32x32xf32>
    %cst_228 = arith.constant 5.000000e-01 : f32
    %619 = vector.broadcast %cst_228 : f32 to vector<32x32xf32>
    %620 = arith.mulf %618, %619 : vector<32x32xf32>
    %621 = arith.mulf %620, %517 : vector<32x32xf32>
    %cst_229 = arith.constant 7.000000e+00 : f32
    %622 = vector.broadcast %cst_229 : f32 to vector<32x32xf32>
    %623 = arith.subf %622, %394 : vector<32x32xf32>
    %cst_230 = arith.constant 5.000000e-01 : f32
    %624 = vector.broadcast %cst_230 : f32 to vector<32x32xf32>
    %625 = arith.mulf %623, %624 : vector<32x32xf32>
    %626 = arith.mulf %625, %528 : vector<32x32xf32>
    %627 = arith.addf %621, %626 : vector<32x32xf32>
    %cst_231 = arith.constant 5.000000e+00 : f32
    %628 = vector.broadcast %cst_231 : f32 to vector<32x32xf32>
    %629 = arith.subf %394, %628 : vector<32x32xf32>
    %cst_232 = arith.constant 5.000000e-01 : f32
    %630 = vector.broadcast %cst_232 : f32 to vector<32x32xf32>
    %631 = arith.mulf %629, %630 : vector<32x32xf32>
    %632 = arith.mulf %631, %528 : vector<32x32xf32>
    %cst_233 = arith.constant 8.000000e+00 : f32
    %633 = vector.broadcast %cst_233 : f32 to vector<32x32xf32>
    %634 = arith.subf %633, %394 : vector<32x32xf32>
    %cst_234 = arith.constant 5.000000e-01 : f32
    %635 = vector.broadcast %cst_234 : f32 to vector<32x32xf32>
    %636 = arith.mulf %634, %635 : vector<32x32xf32>
    %637 = arith.mulf %636, %539 : vector<32x32xf32>
    %638 = arith.addf %632, %637 : vector<32x32xf32>
    %cst_235 = arith.constant 6.000000e+00 : f32
    %639 = vector.broadcast %cst_235 : f32 to vector<32x32xf32>
    %640 = arith.subf %394, %639 : vector<32x32xf32>
    %cst_236 = arith.constant 5.000000e-01 : f32
    %641 = vector.broadcast %cst_236 : f32 to vector<32x32xf32>
    %642 = arith.mulf %640, %641 : vector<32x32xf32>
    %643 = arith.mulf %642, %539 : vector<32x32xf32>
    %cst_237 = arith.constant 9.000000e+00 : f32
    %644 = vector.broadcast %cst_237 : f32 to vector<32x32xf32>
    %645 = arith.subf %644, %394 : vector<32x32xf32>
    %cst_238 = arith.constant 5.000000e-01 : f32
    %646 = vector.broadcast %cst_238 : f32 to vector<32x32xf32>
    %647 = arith.mulf %645, %646 : vector<32x32xf32>
    %648 = arith.mulf %647, %550 : vector<32x32xf32>
    %649 = arith.addf %643, %648 : vector<32x32xf32>
    %cst_239 = arith.constant 7.000000e+00 : f32
    %650 = vector.broadcast %cst_239 : f32 to vector<32x32xf32>
    %651 = arith.subf %394, %650 : vector<32x32xf32>
    %cst_240 = arith.constant 5.000000e-01 : f32
    %652 = vector.broadcast %cst_240 : f32 to vector<32x32xf32>
    %653 = arith.mulf %651, %652 : vector<32x32xf32>
    %654 = arith.mulf %653, %550 : vector<32x32xf32>
    %cst_241 = arith.constant 1.000000e+01 : f32
    %655 = vector.broadcast %cst_241 : f32 to vector<32x32xf32>
    %656 = arith.subf %655, %394 : vector<32x32xf32>
    %cst_242 = arith.constant 5.000000e-01 : f32
    %657 = vector.broadcast %cst_242 : f32 to vector<32x32xf32>
    %658 = arith.mulf %656, %657 : vector<32x32xf32>
    %659 = arith.mulf %658, %561 : vector<32x32xf32>
    %660 = arith.addf %654, %659 : vector<32x32xf32>
    %cst_243 = arith.constant 8.000000e+00 : f32
    %661 = vector.broadcast %cst_243 : f32 to vector<32x32xf32>
    %662 = arith.subf %394, %661 : vector<32x32xf32>
    %cst_244 = arith.constant 5.000000e-01 : f32
    %663 = vector.broadcast %cst_244 : f32 to vector<32x32xf32>
    %664 = arith.mulf %662, %663 : vector<32x32xf32>
    %665 = arith.mulf %664, %561 : vector<32x32xf32>
    %cst_245 = arith.constant 1.100000e+01 : f32
    %666 = vector.broadcast %cst_245 : f32 to vector<32x32xf32>
    %667 = arith.subf %666, %394 : vector<32x32xf32>
    %cst_246 = arith.constant 5.000000e-01 : f32
    %668 = vector.broadcast %cst_246 : f32 to vector<32x32xf32>
    %669 = arith.mulf %667, %668 : vector<32x32xf32>
    %670 = arith.mulf %669, %572 : vector<32x32xf32>
    %671 = arith.addf %665, %670 : vector<32x32xf32>
    %cst_247 = arith.constant 0.000000e+00 : f32
    %672 = vector.broadcast %cst_247 : f32 to vector<32x32xf32>
    %673 = arith.subf %394, %672 : vector<32x32xf32>
    %cst_248 = arith.constant 0.333333343 : f32
    %674 = vector.broadcast %cst_248 : f32 to vector<32x32xf32>
    %675 = arith.mulf %673, %674 : vector<32x32xf32>
    %676 = arith.mulf %675, %583 : vector<32x32xf32>
    %cst_249 = arith.constant 4.000000e+00 : f32
    %677 = vector.broadcast %cst_249 : f32 to vector<32x32xf32>
    %678 = arith.subf %677, %394 : vector<32x32xf32>
    %cst_250 = arith.constant 0.333333343 : f32
    %679 = vector.broadcast %cst_250 : f32 to vector<32x32xf32>
    %680 = arith.mulf %678, %679 : vector<32x32xf32>
    %681 = arith.mulf %680, %594 : vector<32x32xf32>
    %682 = arith.addf %676, %681 : vector<32x32xf32>
    %cst_251 = arith.constant 1.000000e+00 : f32
    %683 = vector.broadcast %cst_251 : f32 to vector<32x32xf32>
    %684 = arith.subf %394, %683 : vector<32x32xf32>
    %cst_252 = arith.constant 0.333333343 : f32
    %685 = vector.broadcast %cst_252 : f32 to vector<32x32xf32>
    %686 = arith.mulf %684, %685 : vector<32x32xf32>
    %687 = arith.mulf %686, %594 : vector<32x32xf32>
    %cst_253 = arith.constant 5.000000e+00 : f32
    %688 = vector.broadcast %cst_253 : f32 to vector<32x32xf32>
    %689 = arith.subf %688, %394 : vector<32x32xf32>
    %cst_254 = arith.constant 0.333333343 : f32
    %690 = vector.broadcast %cst_254 : f32 to vector<32x32xf32>
    %691 = arith.mulf %689, %690 : vector<32x32xf32>
    %692 = arith.mulf %691, %605 : vector<32x32xf32>
    %693 = arith.addf %687, %692 : vector<32x32xf32>
    %cst_255 = arith.constant 2.000000e+00 : f32
    %694 = vector.broadcast %cst_255 : f32 to vector<32x32xf32>
    %695 = arith.subf %394, %694 : vector<32x32xf32>
    %cst_256 = arith.constant 0.333333343 : f32
    %696 = vector.broadcast %cst_256 : f32 to vector<32x32xf32>
    %697 = arith.mulf %695, %696 : vector<32x32xf32>
    %698 = arith.mulf %697, %605 : vector<32x32xf32>
    %cst_257 = arith.constant 6.000000e+00 : f32
    %699 = vector.broadcast %cst_257 : f32 to vector<32x32xf32>
    %700 = arith.subf %699, %394 : vector<32x32xf32>
    %cst_258 = arith.constant 0.333333343 : f32
    %701 = vector.broadcast %cst_258 : f32 to vector<32x32xf32>
    %702 = arith.mulf %700, %701 : vector<32x32xf32>
    %703 = arith.mulf %702, %616 : vector<32x32xf32>
    %704 = arith.addf %698, %703 : vector<32x32xf32>
    %cst_259 = arith.constant 3.000000e+00 : f32
    %705 = vector.broadcast %cst_259 : f32 to vector<32x32xf32>
    %706 = arith.subf %394, %705 : vector<32x32xf32>
    %cst_260 = arith.constant 0.333333343 : f32
    %707 = vector.broadcast %cst_260 : f32 to vector<32x32xf32>
    %708 = arith.mulf %706, %707 : vector<32x32xf32>
    %709 = arith.mulf %708, %616 : vector<32x32xf32>
    %cst_261 = arith.constant 7.000000e+00 : f32
    %710 = vector.broadcast %cst_261 : f32 to vector<32x32xf32>
    %711 = arith.subf %710, %394 : vector<32x32xf32>
    %cst_262 = arith.constant 0.333333343 : f32
    %712 = vector.broadcast %cst_262 : f32 to vector<32x32xf32>
    %713 = arith.mulf %711, %712 : vector<32x32xf32>
    %714 = arith.mulf %713, %627 : vector<32x32xf32>
    %715 = arith.addf %709, %714 : vector<32x32xf32>
    %cst_263 = arith.constant 4.000000e+00 : f32
    %716 = vector.broadcast %cst_263 : f32 to vector<32x32xf32>
    %717 = arith.subf %394, %716 : vector<32x32xf32>
    %cst_264 = arith.constant 0.333333343 : f32
    %718 = vector.broadcast %cst_264 : f32 to vector<32x32xf32>
    %719 = arith.mulf %717, %718 : vector<32x32xf32>
    %720 = arith.mulf %719, %627 : vector<32x32xf32>
    %cst_265 = arith.constant 8.000000e+00 : f32
    %721 = vector.broadcast %cst_265 : f32 to vector<32x32xf32>
    %722 = arith.subf %721, %394 : vector<32x32xf32>
    %cst_266 = arith.constant 0.333333343 : f32
    %723 = vector.broadcast %cst_266 : f32 to vector<32x32xf32>
    %724 = arith.mulf %722, %723 : vector<32x32xf32>
    %725 = arith.mulf %724, %638 : vector<32x32xf32>
    %726 = arith.addf %720, %725 : vector<32x32xf32>
    %cst_267 = arith.constant 5.000000e+00 : f32
    %727 = vector.broadcast %cst_267 : f32 to vector<32x32xf32>
    %728 = arith.subf %394, %727 : vector<32x32xf32>
    %cst_268 = arith.constant 0.333333343 : f32
    %729 = vector.broadcast %cst_268 : f32 to vector<32x32xf32>
    %730 = arith.mulf %728, %729 : vector<32x32xf32>
    %731 = arith.mulf %730, %638 : vector<32x32xf32>
    %cst_269 = arith.constant 9.000000e+00 : f32
    %732 = vector.broadcast %cst_269 : f32 to vector<32x32xf32>
    %733 = arith.subf %732, %394 : vector<32x32xf32>
    %cst_270 = arith.constant 0.333333343 : f32
    %734 = vector.broadcast %cst_270 : f32 to vector<32x32xf32>
    %735 = arith.mulf %733, %734 : vector<32x32xf32>
    %736 = arith.mulf %735, %649 : vector<32x32xf32>
    %737 = arith.addf %731, %736 : vector<32x32xf32>
    %cst_271 = arith.constant 6.000000e+00 : f32
    %738 = vector.broadcast %cst_271 : f32 to vector<32x32xf32>
    %739 = arith.subf %394, %738 : vector<32x32xf32>
    %cst_272 = arith.constant 0.333333343 : f32
    %740 = vector.broadcast %cst_272 : f32 to vector<32x32xf32>
    %741 = arith.mulf %739, %740 : vector<32x32xf32>
    %742 = arith.mulf %741, %649 : vector<32x32xf32>
    %cst_273 = arith.constant 1.000000e+01 : f32
    %743 = vector.broadcast %cst_273 : f32 to vector<32x32xf32>
    %744 = arith.subf %743, %394 : vector<32x32xf32>
    %cst_274 = arith.constant 0.333333343 : f32
    %745 = vector.broadcast %cst_274 : f32 to vector<32x32xf32>
    %746 = arith.mulf %744, %745 : vector<32x32xf32>
    %747 = arith.mulf %746, %660 : vector<32x32xf32>
    %748 = arith.addf %742, %747 : vector<32x32xf32>
    %cst_275 = arith.constant 7.000000e+00 : f32
    %749 = vector.broadcast %cst_275 : f32 to vector<32x32xf32>
    %750 = arith.subf %394, %749 : vector<32x32xf32>
    %cst_276 = arith.constant 0.333333343 : f32
    %751 = vector.broadcast %cst_276 : f32 to vector<32x32xf32>
    %752 = arith.mulf %750, %751 : vector<32x32xf32>
    %753 = arith.mulf %752, %660 : vector<32x32xf32>
    %cst_277 = arith.constant 1.100000e+01 : f32
    %754 = vector.broadcast %cst_277 : f32 to vector<32x32xf32>
    %755 = arith.subf %754, %394 : vector<32x32xf32>
    %cst_278 = arith.constant 0.333333343 : f32
    %756 = vector.broadcast %cst_278 : f32 to vector<32x32xf32>
    %757 = arith.mulf %755, %756 : vector<32x32xf32>
    %758 = arith.mulf %757, %671 : vector<32x32xf32>
    %759 = arith.addf %753, %758 : vector<32x32xf32>
    %760 = tpu.concatenate %682, %693, %704, %715, %726, %737, %748, %759 in 1 : vector<32x32xf32>, vector<32x32xf32>, vector<32x32xf32>, vector<32x32xf32>, vector<32x32xf32>, vector<32x32xf32>, vector<32x32xf32>, vector<32x32xf32> -> vector<32x256xf32>
    %cst_279 = arith.constant dense<0.000000e+00> : vector<32x128xf32>
    %761 = tpu.matmul %760, %383, %cst_279 {dimension_numbers = #tpu.dot_dimension_numbers<[1], [0], [0], [1], [0, 0, 1, 1], [], []>} : vector<32x256xf32>, vector<256x128xf32>, vector<32x128xf32> -> vector<32x128xf32>
    %762 = arith.addf %390, %761 : vector<32x128xf32>
    %c0_280 = arith.constant 0 : index
    %c0_281 = arith.constant 0 : index
    %763 = vector.load %arg6[%c0_280, %c0_281] : memref<32x128xf32, #tpu.memory_space<vmem>>, vector<32x128xf32>
    tpu.vector_store %arg6[%c0_280, %c0_281], %762 {strides = array<i32>} : memref<32x128xf32, #tpu.memory_space<vmem>>, vector<32x128xf32>,
    return
  }
  func.func @transform_0(%arg0: i32) -> (i32, i32) {
    %c0_i32 = arith.constant 0 : i32
    %c0_i32_0 = arith.constant 0 : i32
    return %arg0, %c0_i32 : i32, i32
  }
  func.func @transform_1(%arg0: i32) -> (i32, i32) {
    %c0_i32 = arith.constant 0 : i32
    %c0_i32_0 = arith.constant 0 : i32
    %c0_i32_1 = arith.constant 0 : i32
    return %c0_i32, %c0_i32_0 : i32, i32
  }
  func.func @transform_2(%arg0: i32) -> (i32, i32) {
    %c0_i32 = arith.constant 0 : i32
    %c0_i32_0 = arith.constant 0 : i32
    %c0_i32_1 = arith.constant 0 : i32
    return %c0_i32, %c0_i32_0 : i32, i32
  }
  func.func @transform_3(%arg0: i32) -> (i32, i32) {
    %c0_i32 = arith.constant 0 : i32
    %c0_i32_0 = arith.constant 0 : i32
    %c0_i32_1 = arith.constant 0 : i32
    return %c0_i32, %c0_i32_0 : i32, i32
  }
  func.func @transform_4(%arg0: i32) -> (i32, i32) {
    %c0_i32 = arith.constant 0 : i32
    %c0_i32_0 = arith.constant 0 : i32
    %c0_i32_1 = arith.constant 0 : i32
    return %c0_i32, %c0_i32_0 : i32, i32
  }
  func.func @transform_5(%arg0: i32) -> (i32, i32) {
    %c0_i32 = arith.constant 0 : i32
    %c0_i32_0 = arith.constant 0 : i32
    return %arg0, %c0_i32 : i32, i32
  }
}

</mosaic_0001>

<bundles_post_ra>
// kernel: tpu_custom_call.1
= control target key start
LH: loop header
LB: loop body
LE: loop exit
PB: predicated region body
PF: predicated region fallthrough
CT: control target
= control target key end

     0   :  { %10 = vsyncpa [#allocation3], 0  ;;  %s5064_s0 = inlined_call_operand.vmem [shape: f32[64,16], index: 0, kind: input, shape index: {}]   ;;  %s5065_s1 = inlined_call_operand.vmem [shape: f32[16,32], index: 1, kind: input, shape index: {}]   ;;  %s5066_s2 = inlined_call_operand.vmem [shape: f32[128,32], index: 2, kind: input, shape index: {}]   ;;  %s5067_s3 = inlined_call_operand.vmem [shape: f32[32,128], index: 3, kind: input, shape index: {}]   ;;  %s5068_s4 = inlined_call_operand.hbm [shape: f32[256,128], index: 4, kind: input, shape index: {}]   ;;  %s5069_s5 = inlined_call_operand.hbm [shape: f32[64,128], index: 5, kind: output, shape index: {}]  }
   0x1   :  { %11 = vsyncpa [#allocation4], 0 }
   0x2   :  { %13 = vsyncpa [#allocation4 + $0x1], 0  ;;  %s3319_s18 = smov 0   ;;  %s3321_s19 = smov 0  }
   0x3   :  { %s3323_s20 = smov 0   ;;  %s3325_s21 = smov 0  }
   0x4 LB: > { %s3340_s22 = sadd.s32 4294967295, %s3272_s21   ;;  %s2614_s23 = sadd.s32 4294967294, %s3272_s21   ;;  %s3272_s21 = sphi %s3325_s21, %s5134_s21   ;;  %s3268_s20 = sphi %s3323_s20, %s5133_s20   ;;  %s3264_s19 = sphi %s3321_s19, %s5132_s19   ;;  %s3260_s18 = sphi %s3319_s18, %s5131_s18  }
   0x5   : > { %s3344_s24 = sadd.s32 1, %s3272_s21   ;;  %s136_s25 = sadd.s32 1, %s3268_s20 }
   0x6   : > { %s133_s26 = ssub.s32 %s3272_s21, %s3344_s24  ;;  %p146_p0 = scmp.ne.s32.totalorder %s3268_s20, %s3264_s19 }
   0x7   : > { %p134_p1 = scmp.eq.s32.totalorder %s133_s26, 0  ;;  %p147_p2 = scmp.eq.s32.totalorder %s3340_s22, 1 }
   0x8   : > { %p152_p3 = scmp.ne.s32.totalorder %s3264_s19, %s3260_s18  ;;  %p153_p4 = scmp.eq.s32.totalorder %s2614_s23, 1 }
   0x9   : > { %s3355_s27 = scalar_select %p134_p1, %s3268_s20, %s136_s25  }
   0xa   : > { %p3357_p5 = por %p147_p2, %p146_p0  ;;  %p3361_p6 = por %p153_p4, %p152_p3 }
   0xb   : > { %p2615_p7 = scmp.ge.s32.totalorder %s3272_s21, 1  ;;  %p160_p8 = scmp.lt.s32.totalorder %s3272_s21, 3 }
   0xc   : > { %s5078_s29 = scalar_select %p3361_p6, 1, 0 }
   0xd   : > { %p2967_p9 = scmp.eq.s32.totalorder %s3340_s22, 0  ;;  %p3368_p10 = pnand %p2615_p7, %p160_p8 }
   0xe   : > { %s3274_s6 = smov [#allocation2]  }
   0xf   : > { %s181_s7 = sshll.u32 %s3274_s6, 4  ;;  %p2959_p11 = pneg %p3368_p10  ;;  %s182_s7 = int_to_ptr.vmem [resolvable:$true] %s181_s7 }
  0x10   : > { %s3193_s8 = scalar_lea.vmem %s182_s7, 4096  ;;  %p3201_p3 = scmp.lt.s32.totalorder %s182_s7, %s182_s7 }
  0x11   : > { %p2960_p12 = pnand %p2967_p9, %p2959_p11  ;;  %p3194_p0 = scmp.ne.s32.totalorder %s182_s7, %s3193_s8 }
  0x12   : > { %p3202_p4 = scmp.lt.s32.totalorder %s3193_s8, %s3193_s8 }
  0x13   : > { %p3184_p13 = pneg %p2960_p12 }
  0x14   : > { %p3203_p6 = por %p3202_p4, %p3201_p3 }
  0x15   : > { %p3196_p1 = pnand %p3194_p0, %p3184_p13 }
  0x17   : > { %p3197_p2 = pneg %p3196_p1 }
  0x19   : > { %p3204_p7 = pnand %p3203_p6, %p3197_p2 }
  0x1b   : > { %3207 = shalt.err (!%p3204_p7)
}
  0x1c   : > { %s3275_s9 = smov 128   ;;  %s3276_s10 = smov 8  }
  0x1d   : > { %2962 = dma.hbm_to_vmem [thread:$0]  (!%p2960_p12), %s5068_s4, 4096, %s182_s7, [#allocation3], %s3275_s9, %s3275_s9, %s3276_s10  }
  0x1e   : > { %206 = sbr.rel (%p3368_p10) target bundleno = 943 (0x3af), region = 40 }
  0x23   : > { %3251 = dma.done.wait (%p2967_p9), [#allocation3], 4096  }
  0x24   : > { %3253 = vsyncadd (%p2967_p9), [#allocation3], 4294963200  ;;  %s2621_s13 = sshll.u32 %s3340_s22, 2  ;;  %vm3277_vm6 = vmmov 1   ;;  %v5072_v12 = vmov 0.0   ;;  %s3279_s6 = smov 16  }
  0x25   : > { %p235_p8 = scmp.lt.s32.totalorder %s2621_s13, 7  ;;  %s3280_s26 = smov 48  }
  0x26   : > { %s3281_s30 = smov 32   ;;  %s3282_s23 = smov 64  }
  0x27   : > { %s5136_s13 = smov (!%p235_p8, %s2621_s13), 7  ;;  %s3283_s8 = smov 80  }
  0x28   : > { %s2622_s14 = sshll.u32 %s5136_s13, 3  ;;  %s3284_s13 = smov 96  }
  0x29   : > { %s3389_s17 = scalar_lea.vmem %s5064_s0, %s2622_s14  ;;  %s3285_s14 = smov 112  }
  0x2a   : > { %v241_v0 = vld [vmem:[%s3389_s17] sm:$0xff]  ;;  %v242_v1 = vld [vmem:[%s3389_s17 + $0x8] sm:$0xff]  ;;  %v243_v2 = vld [vmem:[%s3389_s17 + $0x10] sm:$0xff]  ;;  %s2812_s15 = sshll.u32 %s3340_s22, 9  ;;  %s3286_s22 = smov [#allocation5]  }
  0x2b   : > { %v2627_v3 = vadd.f32 2.2, %v241_v0  ;;  %v2628_v4 = vadd.f32 2.2, %v242_v1  ;;  %v244_v5 = vld [vmem:[%s3389_s17 + $0x18] sm:$0xff]  ;;  %s5020_s7 = scalar_lea.hbm %s5069_s5, %s2812_s15 }
  0x2c   : > { %v2629_v6 = vadd.f32 2.2, %v243_v2  ;;  %v3402_v9 = vadd.f32 2.2, %v244_v5 }
  0x2d   : > { %v3395_v7 = vmul.f32 2.5, %v2627_v3  ;;  %v3397_v8 = vmul.f32 2.5, %v2628_v4 }
  0x2e   : > { %v3410_v10 = vmul.f32 2.5, %v2629_v6 }
  0x2f   : > { %vm300_vm0 = vcmp.ge.f32.partialorder %v3397_v8, 0.0  ;;  %vm304_vm1 = vcmp.ge.f32.partialorder %v3397_v8, 1.0  ;;  %vm307_vm2 = vcmp.ge.f32.partialorder %v3395_v7, 2.0  ;;  %vm303_vm3 = vcmp.ge.f32.partialorder %v3395_v7, 1.0 }
  0x30   : > { %vm308_vm4 = vcmp.ge.f32.partialorder %v3397_v8, 2.0  ;;  %vm311_vm5 = vcmp.ge.f32.partialorder %v3395_v7, 3.0  ;;  %vm348_vm7 = vmxor %vm304_vm1, %vm3277_vm6  ;;  %vm312_vm8 = vcmp.ge.f32.partialorder %v3397_v8, 3.0  ;;  %vm315_vm9 = vcmp.ge.f32.partialorder %v3395_v7, 4.0 }
  0x31   : > { %vm316_vm10 = vcmp.ge.f32.partialorder %v3397_v8, 4.0  ;;  %vm352_vm11 = vmand %vm300_vm0, %vm348_vm7  ;;  %v527_v11 = vsub.f32 2.0, %v3395_v7  ;;  %v528_v14 = vsub.f32 2.0, %v3397_v8  ;;  %v2675_v15 = vadd.f32 -1.0, %v3395_v7 }
  0x32   : > { %v2632_v13 = vsel %vm352_vm11, 1.0, %v5072_v12  ;;  %vm363_vm12 = vmxor %vm307_vm2, %vm3277_vm6  ;;  %v2676_v16 = vadd.f32 -1.0, %v3397_v8  ;;  %vm319_vm13 = vcmp.ge.f32.partialorder %v3395_v7, 5.0  ;;  %v547_v18 = vsub.f32 3.0, %v3395_v7 }
  0x33   : > { %vm364_vm14 = vmxor %vm308_vm4, %vm3277_vm6  ;;  %v524_v17 = vmul.f32 %v2632_v13, %v3397_v8  ;;  %v548_v19 = vsub.f32 3.0, %v3397_v8  ;;  %v3431_v20 = vadd.f32 -2.0, %v3395_v7  ;;  %vm320_vm15 = vcmp.ge.f32.partialorder %v3397_v8, 5.0 }
  0x34   : > { %vm367_vm0 = vmand %vm303_vm3, %vm363_vm12  ;;  %v3437_v21 = vadd.f32 -2.0, %v3397_v8  ;;  %v567_v22 = vsub.f32 4.0, %v3395_v7  ;;  %v568_v23 = vsub.f32 4.0, %v3397_v8  ;;  %v3442_v24 = vadd.f32 -3.0, %v3395_v7 }
  0x35   : > { %vm368_vm7 = vmand %vm304_vm1, %vm364_vm14  ;;  %v2635_v25 = vsel %vm367_vm0, 1.0, %v5072_v12  ;;  %v3448_v26 = vadd.f32 -3.0, %v3397_v8  ;;  %v3451_v27 = vsub.f32 5.0, %v3395_v7  ;;  %v3454_v28 = vsub.f32 5.0, %v3397_v8 }
  0x36   : > { %v2636_v29 = vsel %vm368_vm7, 1.0, %v5072_v12  ;;  %vm379_vm11 = vmxor %vm311_vm5, %vm3277_vm6  ;;  %v543_v30 = vmul.f32 %v2675_v15, %v2635_v25  ;;  %v727_v31 = vmul.f32 0.5, %v547_v18  ;;  %v728_v32 = vmul.f32 0.5, %v548_v19 }
  0x37   : > { %vm380_vm1 = vmxor %vm312_vm8, %vm3277_vm6  ;;  %v532_v33 = vmul.f32 %v2636_v29, %v528_v14  ;;  %v544_v34 = vmul.f32 %v2676_v16, %v2636_v29  ;;  %v739_v35 = vmul.f32 0.5, %v2675_v15  ;;  %v740_v36 = vmul.f32 0.5, %v2676_v16 }
  0x38   : > { %vm383_vm12 = vmand %vm307_vm2, %vm379_vm11  ;;  %v747_v37 = vmul.f32 0.5, %v567_v22  ;;  %v748_v38 = vmul.f32 0.5, %v568_v23  ;;  %v759_v39 = vmul.f32 0.5, %v3431_v20  ;;  %v760_v40 = vmul.f32 0.5, %v3437_v21 }
  0x39   : > { %vm384_vm14 = vmand %vm308_vm4, %vm380_vm1  ;;  %v2639_v41 = vsel %vm383_vm12, 1.0, %v5072_v12  ;;  %v3470_v42 = vadd.f32 %v532_v33, %v524_v17  ;;  %v767_v43 = vmul.f32 0.5, %v3451_v27  ;;  %v3474_v44 = vmul.f32 0.5, %v3454_v28 }
  0x3a   : > { %v2640_v45 = vsel %vm384_vm14, 1.0, %v5072_v12  ;;  %vm395_vm2 = vmxor %vm315_vm9, %vm3277_vm6  ;;  %v551_v46 = vmul.f32 %v2639_v41, %v547_v18  ;;  %v563_v47 = vmul.f32 %v3431_v20, %v2639_v41  ;;  %v907_v48 = vmul.f32 0.33333334, %v567_v22 }
  0x3b   : > { %vm396_vm4 = vmxor %vm316_vm10, %vm3277_vm6  ;;  %v552_v49 = vmul.f32 %v2640_v45, %v548_v19  ;;  %v564_v50 = vmul.f32 %v3437_v21, %v2640_v45  ;;  %v908_v51 = vmul.f32 0.33333334, %v568_v23  ;;  %v919_v52 = vmul.f32 0.33333334, %v2675_v15 }
  0x3c   : > { %vm399_vm0 = vmand %vm311_vm5, %vm395_vm2  ;;  %v555_v53 = vadd.f32 %v551_v46, %v543_v30  ;;  %v920_v54 = vmul.f32 0.33333334, %v2676_v16  ;;  %v3488_v55 = vmul.f32 0.33333334, %v3451_v27  ;;  %v3491_v56 = vmul.f32 0.33333334, %v3454_v28 }
  0x3d   : > { %vm400_vm7 = vmand %vm312_vm8, %vm396_vm4  ;;  %v2643_v57 = vsel %vm399_vm0, 1.0, %v5072_v12  ;;  %v556_v58 = vadd.f32 %v552_v49, %v544_v34  ;;  %vm299_vm11 = vcmp.ge.f32.partialorder %v3395_v7, 0.0  ;;  %v531_v59 = vmul.f32 %v2635_v25, %v527_v11 }
  0x3e   : > { %v2644_v60 = vsel %vm400_vm7, 1.0, %v5072_v12  ;;  %vm411_vm5 = vmxor %vm319_vm13, %vm3277_vm6  ;;  %v571_v61 = vmul.f32 %v2643_v57, %v567_v22  ;;  %v583_v62 = vmul.f32 %v3442_v24, %v2643_v57  ;;  %v743_v63 = vmul.f32 %v739_v35, %v555_v53 }
  0x3f   : > { %vm412_vm8 = vmxor %vm320_vm15, %vm3277_vm6  ;;  %v572_v0 = vmul.f32 %v2644_v60, %v568_v23  ;;  %v584_v1 = vmul.f32 %v3448_v26, %v2644_v60  ;;  %v3508_v2 = vmul.f32 %v728_v32, %v556_v58  ;;  %v744_v3 = vmul.f32 %v740_v36, %v556_v58 }
  0x40   : > { %vm415_vm1 = vmand %vm315_vm9, %vm411_vm5  ;;  %v575_v4 = vadd.f32 %v571_v61, %v563_v47  ;;  %v3512_v5 = vmul.f32 %v727_v31, %v555_v53  ;;  %vm323_vm12 = vcmp.ge.f32.partialorder %v3395_v7, 6.0  ;;  %vm324_vm14 = vcmp.ge.f32.partialorder %v3397_v8, 6.0 }
  0x41   : > { %vm416_vm2 = vmand %vm316_vm10, %vm412_vm8  ;;  %v2647_v6 = vsel %vm415_vm1, 1.0, %v5072_v12  ;;  %v576_v11 = vadd.f32 %v572_v0, %v564_v50  ;;  %vm327_vm4 = vcmp.ge.f32.partialorder %v3395_v7, 7.0  ;;  %vm328_vm0 = vcmp.ge.f32.partialorder %v3397_v8, 7.0 }
  0x42   : > { %v2648_v13 = vsel %vm416_vm2, 1.0, %v5072_v12  ;;  %v591_v14 = vmul.f32 %v2647_v6, %v3451_v27  ;;  %v751_v15 = vmul.f32 %v747_v37, %v575_v4  ;;  %v763_v16 = vmul.f32 %v759_v39, %v575_v4  ;;  %vm347_vm9 = vmxor %vm303_vm3, %vm3277_vm6 }
  0x43   : > { %v592_v17 = vmul.f32 %v2648_v13, %v3454_v28  ;;  %v752_v18 = vmul.f32 %v748_v38, %v576_v11  ;;  %v764_v19 = vmul.f32 %v760_v40, %v576_v11  ;;  %vm351_vm10 = vmand %vm299_vm11, %vm347_vm9  ;;  %v3530_v22 = vadd.f32 -4.0, %v3395_v7 }
  0x44   : > { %v595_v23 = vadd.f32 %v591_v14, %v583_v62  ;;  %v755_v25 = vadd.f32 %v751_v15, %v743_v63  ;;  %v2631_v27 = vsel %vm351_vm10, 1.0, %v5072_v12  ;;  %vm427_vm7 = vmxor %vm323_vm12, %vm3277_vm6  ;;  %v3537_v29 = vadd.f32 -4.0, %v3397_v8 }
  0x45   : > { %v596_v28 = vadd.f32 %v592_v17, %v584_v1  ;;  %v756_v30 = vadd.f32 %v752_v18, %v744_v3  ;;  %v523_v31 = vmul.f32 %v2631_v27, %v3395_v7  ;;  %vm428_vm3 = vmxor %vm324_vm14, %vm3277_vm6  ;;  %v603_v32 = vmul.f32 %v3530_v22, %v2647_v6  ;;  %v262_v27 = vld [vmem:[%s5066_s2 + $0x78] sm:$0xff] }
  0x46   : > { %v771_v33 = vmul.f32 %v767_v43, %v595_v23  ;;  %v923_v34 = vmul.f32 %v919_v52, %v755_v25  ;;  %v3544_v35 = vmul.f32 %v907_v48, %v755_v25  ;;  %vm431_vm11 = vmand %vm319_vm13, %vm427_vm7  ;;  %v604_v36 = vmul.f32 %v3537_v29, %v2648_v13  ;;  %2891 = vmatprep.subr.mxu0 %v262_v27 }
  0x47   : > { %v772_v37 = vmul.f32 %v3474_v44, %v596_v28  ;;  %v3550_v38 = vmul.f32 %v908_v51, %v756_v30  ;;  %v924_v39 = vmul.f32 %v920_v54, %v756_v30  ;;  %v3552_v40 = vadd.f32 %v531_v59, %v523_v31  ;;  %vm432_vm5 = vmand %vm320_vm15, %vm428_vm3  ;;  %v261_v30 = vld [vmem:[%s5066_s2 + $0x70] sm:$0xff]  ;;  %2892 = vmatpush3.msra.mxu0 %v262_v27 }
  0x48   : > { %v3556_v41 = vadd.f32 %v771_v33, %v763_v16  ;;  %v2651_v43 = vsel %vm431_vm11, 1.0, %v5072_v12  ;;  %v2652_v45 = vsel %vm432_vm5, 1.0, %v5072_v12  ;;  %vm443_vm13 = vmxor %vm327_vm4, %vm3277_vm6  ;;  %v3564_v44 = vsub.f32 6.0, %v3395_v7  ;;  %2893 = vmatprep.subr.mxu0 %v261_v30 }
  0x49   : > { %v3566_v46 = vadd.f32 %v772_v37, %v764_v19  ;;  %vm444_vm8 = vmxor %vm328_vm0, %vm3277_vm6  ;;  %v3572_v47 = vsub.f32 6.0, %v3397_v8  ;;  %v3575_v48 = vadd.f32 -5.0, %v3395_v7  ;;  %v3578_v49 = vadd.f32 -5.0, %v3397_v8  ;;  %2894 = vmatpush3.msra.mxu0 %v261_v30  ;;  %v256_v30 = vld [vmem:[%s5066_s2 + $0x48] sm:$0xff] }
  0x4a   : > { %v931_v50 = vmul.f32 %v3488_v55, %v3556_v41  ;;  %vm447_vm15 = vmand %vm323_vm12, %vm443_vm13  ;;  %v611_v51 = vmul.f32 %v2651_v43, %v3564_v44  ;;  %v627_v52 = vsub.f32 7.0, %v3395_v7  ;;  %v628_v53 = vsub.f32 7.0, %v3397_v8 }
  0x4b   : > { %v932_v54 = vmul.f32 %v3491_v56, %v3566_v46  ;;  %vm448_vm1 = vmand %vm324_vm14, %vm444_vm8  ;;  %v2655_v57 = vsel %vm447_vm15, 1.0, %v5072_v12  ;;  %v612_v58 = vmul.f32 %v2652_v45, %v3572_v47  ;;  %v623_v55 = vmul.f32 %v3575_v48, %v2651_v43 }
  0x4c   : > { %v935_v59 = vadd.f32 %v931_v50, %v923_v34  ;;  %v2656_v60 = vsel %vm448_vm1, 1.0, %v5072_v12  ;;  %v615_v61 = vadd.f32 %v611_v51, %v603_v32  ;;  %v624_v62 = vmul.f32 %v3578_v49, %v2652_v45 }
  0x4d   : > { %v936_v63 = vadd.f32 %v932_v54, %v924_v39  ;;  %v616_v0 = vadd.f32 %v612_v58, %v604_v36  ;;  %v631_v1 = vmul.f32 %v2655_v57, %v627_v52  ;;  %v632_v3 = vmul.f32 %v2656_v60, %v628_v53 }
  0x4e   : > { %v3597_v56 = vadd.f32 -6.0, %v3395_v7  ;;  %v3600_v4 = vadd.f32 -6.0, %v3397_v8  ;;  %v779_v6 = vmul.f32 0.5, %v3442_v24  ;;  %v780_v11 = vmul.f32 0.5, %v3448_v26 }
  0x4f   : > { %v3016_v13 = vpack.i.bf16 %v936_v63, %v935_v59  ;;  %v3604_v14 = vadd.f32 %v631_v1, %v623_v55  ;;  %v3606_v15 = vadd.f32 %v632_v3, %v624_v62  ;;  %v787_v16 = vmul.f32 0.5, %v3564_v44  ;;  %v259_v59 = vld [vmem:[%s5066_s2 + $0x60] sm:$0xff] }
  0x50   : > { %v3610_v17 = vmul.f32 %v3597_v56, %v2655_v57  ;;  %v3613_v18 = vmul.f32 %v3600_v4, %v2656_v60  ;;  %v783_v19 = vmul.f32 %v779_v6, %v595_v23  ;;  %v784_v25 = vmul.f32 %v780_v11, %v596_v28  ;;  %v260_v23 = vld [vmem:[%s5066_s2 + $0x68] sm:$0xff] }
  0x51   : > { %3017 = vrot.lane.b32.xlu0 %v3016_v13, %s3279_s6  ;;  %v788_v31 = vmul.f32 0.5, %v3572_v47  ;;  %v791_v32 = vmul.f32 %v787_v16, %v615_v61  ;;  %v799_v33 = vmul.f32 0.5, %v3530_v22  ;;  %v800_v34 = vmul.f32 0.5, %v3537_v29  ;;  %2895 = vmatprep.subr.mxu0 %v260_v23 }
  0x52   : > { %v807_v28 = vmul.f32 0.5, %v627_v52  ;;  %v808_v36 = vmul.f32 0.5, %v628_v53  ;;  %v959_v37 = vmul.f32 0.33333334, %v3442_v24  ;;  %v960_v39 = vmul.f32 0.33333334, %v3448_v26  ;;  %2896 = vmatpush3.msra.mxu0 %v260_v23 }
  0x53   : > { %v792_v43 = vmul.f32 %v788_v31, %v616_v0  ;;  %v795_v45 = vadd.f32 %v791_v32, %v783_v19  ;;  %v803_v50 = vmul.f32 %v799_v33, %v615_v61  ;;  %v804_v51 = vmul.f32 %v800_v34, %v616_v0  ;;  %2897 = vmatprep.subr.mxu0 %v259_v59 }
  0x54   : > { %v811_v54 = vmul.f32 %v807_v28, %v3604_v14  ;;  %v812_v57 = vmul.f32 %v808_v36, %v3606_v15  ;;  %v967_v58 = vmul.f32 0.33333334, %v627_v52  ;;  %v968_v55 = vmul.f32 0.33333334, %v628_v53  ;;  %v258_v52 = vld [vmem:[%s5066_s2 + $0x58] sm:$0xff]  ;;  %2898 = vmatpush3.msra.mxu0 %v259_v59 }
  0x55   : > { %v796_v24 = vadd.f32 %v792_v43, %v784_v25  ;;  %v963_v60 = vmul.f32 %v959_v37, %v795_v45  ;;  %v939_v26 = vmul.f32 0.33333334, %v3431_v20  ;;  %v940_v62 = vmul.f32 0.33333334, %v3437_v21  ;;  %2899 = vmatprep.subr.mxu0 %v258_v52 }
  0x56   : > { %v815_v61 = vadd.f32 %v811_v54, %v803_v50  ;;  %v816_v63 = vadd.f32 %v812_v57, %v804_v51  ;;  %v947_v0 = vmul.f32 0.33333334, %v3564_v44  ;;  %v948_v1 = vmul.f32 0.33333334, %v3572_v47  ;;  %v257_v44 = vld [vmem:[%s5066_s2 + $0x50] sm:$0xff]  ;;  %2900 = vmatpush3.msra.mxu0 %v258_v52  ;;  %v255_v51 = vld [vmem:[%s5066_s2 + $0x40] sm:$0xff] }
  0x57   : > { %v964_v53 = vmul.f32 %v960_v39, %v796_v24  ;;  %v943_v3 = vmul.f32 %v939_v26, %v3556_v41  ;;  %v944_v6 = vmul.f32 %v940_v62, %v3566_v46  ;;  %vm331_vm12 = vcmp.ge.f32.partialorder %v3395_v7, 8.0  ;;  %2901 = vmatprep.subr.mxu0 %v257_v44 }
  0x58   : > { %v971_v20 = vmul.f32 %v967_v58, %v815_v61  ;;  %v972_v21 = vmul.f32 %v968_v55, %v816_v63  ;;  %v951_v11 = vmul.f32 %v947_v0, %v795_v45  ;;  %v952_v13 = vmul.f32 %v948_v1, %v796_v24  ;;  %vm459_vm14 = vmxor %vm331_vm12, %vm3277_vm6  ;;  %2902 = vmatpush3.msra.mxu0 %v257_v44  ;;  %v254_v55 = vld [vmem:[%s5066_s2 + $0x38] sm:$0xff] }
  0x59   : > { %vm332_vm2 = vcmp.ge.f32.partialorder %v3397_v8, 8.0  ;;  %vm463_vm9 = vmand %vm327_vm4, %vm459_vm14  ;;  %v647_v41 = vsub.f32 8.0, %v3395_v7  ;;  %v648_v46 = vsub.f32 8.0, %v3397_v8  ;;  %v819_v47 = vmul.f32 0.5, %v3575_v48  ;;  %2903 = vmatprep.subr.mxu0 %v256_v30 }
  0x5a   : > { %v975_v16 = vadd.f32 %v971_v20, %v963_v60  ;;  %v976_v19 = vadd.f32 %v972_v21, %v964_v53  ;;  %v955_v25 = vadd.f32 %v951_v11, %v943_v3  ;;  %v956_v27 = vadd.f32 %v952_v13, %v944_v6  ;;  %vm460_vm10 = vmxor %vm332_vm2, %vm3277_vm6  ;;  %2904 = vmatpush3.msra.mxu0 %v256_v30  ;;  %v252_v21 = vld [vmem:[%s5066_s2 + $0x28] sm:$0xff] }
  0x5b   : > { %vm464_vm4 = vmand %vm328_vm0, %vm460_vm10  ;;  %v2659_v31 = vsel %vm463_vm9, 1.0, %v5072_v12  ;;  %v820_v32 = vmul.f32 0.5, %v3578_v49  ;;  %v823_v33 = vmul.f32 %v819_v47, %v3604_v14  ;;  %v827_v34 = vmul.f32 0.5, %v647_v41  ;;  %2905 = vmatprep.subr.mxu0 %v255_v51 }
  0x5c   : > { %v3026_v23 = vpack.i.bf16 %v976_v19, %v975_v16  ;;  %v3021_v28 = vpack.i.bf16 %v956_v27, %v955_v25  ;;  %v2660_v36 = vsel %vm464_vm4, 1.0, %v5072_v12  ;;  %v651_v37 = vmul.f32 %v2659_v31, %v647_v41  ;;  %2906 = vmatpush3.msra.mxu0 %v255_v51  ;;  %v251_v25 = vld [vmem:[%s5066_s2 + $0x20] sm:$0xff] }
  0x5d   : > { %v652_v39 = vmul.f32 %v2660_v36, %v648_v46  ;;  %v824_v43 = vmul.f32 %v820_v32, %v3606_v15  ;;  %v828_v45 = vmul.f32 0.5, %v648_v46  ;;  %v979_v50 = vmul.f32 0.33333334, %v3530_v22  ;;  %2907 = vmatprep.subr.mxu0 %v254_v55 }
  0x5e   : > { %3027 = vrot.lane.b32.xlu1 %v3026_v23, %s3280_s26  ;;  %3022 = vrot.lane.b32.xlu0 %v3021_v28, %s3281_s30  ;;  %v655_v14 = vadd.f32 %v651_v37, %v3610_v17  ;;  %v980_v54 = vmul.f32 0.33333334, %v3537_v29  ;;  %v987_v57 = vmul.f32 0.33333334, %v647_v41  ;;  %v988_v15 = vmul.f32 0.33333334, %v648_v46 }
  0x5f   : > { %v656_v58 = vadd.f32 %v652_v39, %v3613_v18  ;;  %v983_v22 = vmul.f32 %v979_v50, %v815_v61  ;;  %vm335_vm0 = vcmp.ge.f32.partialorder %v3395_v7, 9.0  ;;  %vm336_vm7 = vcmp.ge.f32.partialorder %v3397_v8, 9.0  ;;  %v253_v61 = vld [vmem:[%s5066_s2 + $0x30] sm:$0xff]  ;;  %2908 = vmatpush3.msra.mxu0 %v254_v55 }
  0x60   : > { %v831_v59 = vmul.f32 %v827_v34, %v655_v14  ;;  %v984_v24 = vmul.f32 %v980_v54, %v816_v63  ;;  %vm475_vm3 = vmxor %vm335_vm0, %vm3277_vm6  ;;  %v3688_v29 = vadd.f32 -7.0, %v3395_v7  ;;  %v3691_v17 = vadd.f32 -7.0, %v3397_v8  ;;  %2909 = vmatprep.subr.mxu0 %v253_v61 }
  0x61   : > { %v832_v18 = vmul.f32 %v828_v45, %v656_v58  ;;  %vm476_vm11 = vmxor %vm336_vm7, %vm3277_vm6  ;;  %v667_v60 = vsub.f32 9.0, %v3395_v7  ;;  %v668_v26 = vsub.f32 9.0, %v3397_v8  ;;  %v839_v62 = vmul.f32 0.5, %v3597_v56  ;;  %2910 = vmatpush3.msra.mxu0 %v253_v61 }
  0x62   : > { %v835_v63 = vadd.f32 %v831_v59, %v823_v33  ;;  %vm479_vm5 = vmand %vm331_vm12, %vm475_vm3  ;;  %v663_v0 = vmul.f32 %v3688_v29, %v2659_v31  ;;  %v664_v1 = vmul.f32 %v3691_v17, %v2660_v36  ;;  %v840_v52 = vmul.f32 0.5, %v3600_v4  ;;  %2911 = vmatprep.subr.mxu0 %v252_v21 }
  0x63   : > { %v836_v53 = vadd.f32 %v832_v18, %v824_v43  ;;  %vm480_vm13 = vmand %vm332_vm2, %vm476_vm11  ;;  %v2663_v3 = vsel %vm479_vm5, 1.0, %v5072_v12  ;;  %v843_v6 = vmul.f32 %v839_v62, %v655_v14  ;;  %v847_v20 = vmul.f32 0.5, %v667_v60  ;;  %2912 = vmatpush3.msra.mxu0 %v252_v21  ;;  %v249_v21 = vld [vmem:[%s5066_s2 + $0x10] sm:$0xff] }
  0x64   : > { %v991_v11 = vmul.f32 %v987_v57, %v835_v63  ;;  %v2664_v13 = vsel %vm480_vm13, 1.0, %v5072_v12  ;;  %v671_v44 = vmul.f32 %v2663_v3, %v667_v60  ;;  %v844_v41 = vmul.f32 %v840_v52, %v656_v58  ;;  %2913 = vmatprep.subr.mxu0 %v251_v25 }
  0x65   : > { %v992_v46 = vmul.f32 %v988_v15, %v836_v53  ;;  %v672_v47 = vmul.f32 %v2664_v13, %v668_v26  ;;  %v848_v16 = vmul.f32 0.5, %v668_v26  ;;  %v999_v19 = vmul.f32 0.33333334, %v3575_v48  ;;  %v250_v48 = vld [vmem:[%s5066_s2 + $0x18] sm:$0xff]  ;;  %2914 = vmatpush3.msra.mxu0 %v251_v25 }
  0x66   : > { %v995_v27 = vadd.f32 %v991_v11, %v983_v22  ;;  %v675_v30 = vadd.f32 %v671_v44, %v663_v0  ;;  %v1000_v31 = vmul.f32 0.33333334, %v3578_v49  ;;  %v1007_v32 = vmul.f32 0.33333334, %v667_v60  ;;  %2915 = vmatprep.subr.mxu0 %v250_v48 }
  0x67   : > { %v996_v33 = vadd.f32 %v992_v46, %v984_v24  ;;  %v676_v34 = vadd.f32 %v672_v47, %v664_v1  ;;  %v1003_v23 = vmul.f32 %v999_v19, %v835_v63  ;;  %v1008_v28 = vmul.f32 0.33333334, %v668_v26  ;;  %2916 = vmatpush3.msra.mxu0 %v250_v48 }
  0x68   : > { %v851_v36 = vmul.f32 %v847_v20, %v675_v30  ;;  %v1004_v37 = vmul.f32 %v1000_v31, %v836_v53  ;;  %vm339_vm8 = vcmp.ge.f32.partialorder %v3395_v7, 10.0  ;;  %vm340_vm15 = vcmp.ge.f32.partialorder %v3397_v8, 10.0  ;;  %2917 = vmatprep.subr.mxu0 %v249_v21 }
  0x69   : > { %v3031_v39 = vpack.i.bf16 %v996_v33, %v995_v27  ;;  %v852_v49 = vmul.f32 %v848_v16, %v676_v34  ;;  %vm491_vm1 = vmxor %vm339_vm8, %vm3277_vm6  ;;  %v2703_v43 = vadd.f32 -8.0, %v3395_v7  ;;  %v2704_v45 = vadd.f32 -8.0, %v3397_v8  ;;  %2918 = vmatpush3.msra.mxu0 %v249_v21 }
  0x6a   : > { %v855_v50 = vadd.f32 %v851_v36, %v843_v6  ;;  %vm492_vm12 = vmxor %vm340_vm15, %vm3277_vm6  ;;  %v687_v51 = vsub.f32 10.0, %v3395_v7  ;;  %v688_v14 = vsub.f32 10.0, %v3397_v8  ;;  %v859_v54 = vmul.f32 0.5, %v3688_v29 }
  0x6b   : > { %3032 = vrot.lane.b32.xlu1 %v3031_v39, %s3282_s23  ;;  %v856_v57 = vadd.f32 %v852_v49, %v844_v41  ;;  %vm495_vm14 = vmand %vm335_vm0, %vm491_vm1  ;;  %v683_v15 = vmul.f32 %v2703_v43, %v2663_v3  ;;  %v684_v58 = vmul.f32 %v2704_v45, %v2664_v13  ;;  %v860_v22 = vmul.f32 0.5, %v3691_v17 }
  0x6c   : > { %v1011_v55 = vmul.f32 %v1007_v32, %v855_v50  ;;  %vm496_vm2 = vmand %vm336_vm7, %vm492_vm12  ;;  %v2667_v59 = vsel %vm495_vm14, 1.0, %v5072_v12  ;;  %v863_v24 = vmul.f32 %v859_v54, %v675_v30  ;;  %v867_v18 = vmul.f32 0.5, %v687_v51 }
  0x6d   : > { %v1012_v60 = vmul.f32 %v1008_v28, %v856_v57  ;;  %v2668_v26 = vsel %vm496_vm2, 1.0, %v5072_v12  ;;  %v691_v62 = vmul.f32 %v2667_v59, %v687_v51  ;;  %v864_v61 = vmul.f32 %v860_v22, %v676_v34 }
  0x6e   : > { %v1015_v63 = vadd.f32 %v1011_v55, %v1003_v23  ;;  %v692_v0 = vmul.f32 %v2668_v26, %v688_v14  ;;  %v868_v1 = vmul.f32 0.5, %v688_v14  ;;  %v1019_v52 = vmul.f32 0.33333334, %v3597_v56 }
  0x6f   : > { %v1016_v53 = vadd.f32 %v1012_v60, %v1004_v37  ;;  %v695_v3 = vadd.f32 %v691_v62, %v683_v15  ;;  %v1020_v6 = vmul.f32 0.33333334, %v3600_v4  ;;  %v1027_v20 = vmul.f32 0.33333334, %v687_v51  ;;  %v246_v15 = vld [vmem:[%s5065_s1 + $0x8] sm:$0xff] }
  0x70   : > { %v696_v11 = vadd.f32 %v692_v0, %v684_v58  ;;  %v1023_v13 = vmul.f32 %v1019_v52, %v855_v50  ;;  %v1028_v44 = vmul.f32 0.33333334, %v688_v14  ;;  %vm343_vm9 = vcmp.ge.f32.partialorder %v3395_v7, 11.0  ;;  %2929 = vmatprep.subr.mxu1 %v246_v15 }
  0x71   : > { %v3036_v41 = vpack.i.bf16 %v1016_v53, %v1015_v63  ;;  %v871_v46 = vmul.f32 %v867_v18, %v695_v3  ;;  %v1024_v47 = vmul.f32 %v1020_v6, %v856_v57  ;;  %vm344_vm10 = vcmp.ge.f32.partialorder %v3397_v8, 11.0  ;;  %vm507_vm4 = vmxor %vm343_vm9, %vm3277_vm6  ;;  %v248_v57 = vld [vmem:[%s5066_s2 + $0x8] sm:$0xff]  ;;  %2930 = vmatpush3.msra.mxu1 %v246_v15 }
  0x72   : > { %v872_v56 = vmul.f32 %v868_v1, %v696_v11  ;;  %vm508_vm0 = vmxor %vm344_vm10, %vm3277_vm6  ;;  %v2707_v4 = vadd.f32 -9.0, %v3395_v7  ;;  %v2708_v16 = vadd.f32 -9.0, %v3397_v8  ;;  %v707_v19 = vsub.f32 11.0, %v3395_v7  ;;  %2919 = vmatprep.subr.mxu0 %v248_v57 }
  0x73   : > { %3037 = vrot.lane.b32.xlu0 %v3036_v41, %s3283_s8  ;;  %v875_v25 = vadd.f32 %v871_v46, %v863_v24  ;;  %vm511_vm7 = vmand %vm339_vm8, %vm507_vm4  ;;  %v708_v27 = vsub.f32 11.0, %v3397_v8  ;;  %v879_v30 = vmul.f32 0.5, %v2703_v43  ;;  %v880_v31 = vmul.f32 0.5, %v2704_v45  ;;  %2920 = vmatpush3.msra.mxu0 %v248_v57 }
  0x74   : > { %v876_v32 = vadd.f32 %v872_v56, %v864_v61  ;;  %vm512_vm3 = vmand %vm340_vm15, %vm508_vm0  ;;  %v2671_v33 = vsel %vm511_vm7, 1.0, %v5072_v12  ;;  %v703_v34 = vmul.f32 %v2707_v4, %v2667_v59  ;;  %v704_v23 = vmul.f32 %v2708_v16, %v2668_v26 }
  0x75   : > { %v1031_v28 = vmul.f32 %v1027_v20, %v875_v25  ;;  %v2672_v48 = vsel %vm512_vm3, 1.0, %v5072_v12  ;;  %v711_v36 = vmul.f32 %v2671_v33, %v707_v19  ;;  %v3764_v37 = vmul.f32 2.5, %v3402_v9 }
  0x76   : > { %v1032_v39 = vmul.f32 %v1028_v44, %v876_v32  ;;  %v712_v49 = vmul.f32 %v2672_v48, %v708_v27  ;;  %v883_v50 = vmul.f32 %v879_v30, %v695_v3  ;;  %v887_v43 = vmul.f32 0.5, %v707_v19 }
  0x77   : > { %v1035_v45 = vadd.f32 %v1031_v28, %v1023_v13  ;;  %v715_v51 = vadd.f32 %v711_v36, %v703_v34  ;;  %v888_v14 = vmul.f32 0.5, %v708_v27  ;;  %v1039_v54 = vmul.f32 0.33333334, %v3688_v29 }
  0x78   : > { %v1036_v58 = vadd.f32 %v1032_v39, %v1024_v47  ;;  %v716_v9 = vadd.f32 %v712_v49, %v704_v23  ;;  %v884_v22 = vmul.f32 %v880_v31, %v696_v11  ;;  %v1040_v55 = vmul.f32 0.33333334, %v3691_v17 }
  0x79   : > { %v891_v59 = vmul.f32 %v887_v43, %v715_v51  ;;  %v1047_v24 = vmul.f32 0.33333334, %v707_v19  ;;  %v1048_v60 = vmul.f32 0.33333334, %v708_v27  ;;  %v1043_v62 = vmul.f32 %v1039_v54, %v875_v25 }
  0x7a   : > { %v3041_v29 = vpack.i.bf16 %v1036_v58, %v1035_v45  ;;  %v892_v18 = vmul.f32 %v888_v14, %v716_v9  ;;  %vm309_vm11 = vcmp.ge.f32.partialorder %v3410_v10, 2.0  ;;  %v1044_v63 = vmul.f32 %v1040_v55, %v876_v32 }
  0x7b   : > { %v895_v26 = vadd.f32 %v891_v59, %v883_v50  ;;  %vm310_vm5 = vcmp.ge.f32.partialorder %v3764_v37, 2.0  ;;  %vm305_vm13 = vcmp.ge.f32.partialorder %v3410_v10, 1.0  ;;  %vm306_vm8 = vcmp.ge.f32.partialorder %v3764_v37, 1.0  ;;  %vm365_vm2 = vmxor %vm309_vm11, %vm3277_vm6 }
  0x7c   : > { %3042 = vrot.lane.b32.xlu1 %v3041_v29, %s3284_s13  ;;  %v896_v61 = vadd.f32 %v892_v18, %v884_v22  ;;  %vm313_vm15 = vcmp.ge.f32.partialorder %v3410_v10, 3.0  ;;  %vm314_vm1 = vcmp.ge.f32.partialorder %v3764_v37, 3.0  ;;  %vm317_vm12 = vcmp.ge.f32.partialorder %v3410_v10, 4.0  ;;  %vm366_vm10 = vmxor %vm310_vm5, %vm3277_vm6 }
  0x7d   : > { %v1051_v17 = vmul.f32 %v1047_v24, %v895_v26  ;;  %vm318_vm14 = vcmp.ge.f32.partialorder %v3764_v37, 4.0  ;;  %vm321_vm9 = vcmp.ge.f32.partialorder %v3410_v10, 5.0  ;;  %v2677_v52 = vadd.f32 -1.0, %v3410_v10  ;;  %vm369_vm0 = vmand %vm305_vm13, %vm365_vm2 }
  0x7e   : > { %v1052_v0 = vmul.f32 %v1048_v60, %v896_v61  ;;  %v2678_v53 = vadd.f32 -1.0, %v3764_v37  ;;  %vm322_vm4 = vcmp.ge.f32.partialorder %v3764_v37, 5.0  ;;  %v529_v6 = vsub.f32 2.0, %v3410_v10  ;;  %vm370_vm7 = vmand %vm306_vm8, %vm366_vm10 }
  0x7f   : > { %v1055_v1 = vadd.f32 %v1051_v17, %v1043_v62  ;;  %v549_v20 = vsub.f32 3.0, %v3410_v10  ;;  %v550_v21 = vsub.f32 3.0, %v3764_v37  ;;  %v3801_v11 = vsel %vm369_vm0, 1.0, %v5072_v12  ;;  %vm381_vm3 = vmxor %vm313_vm15, %vm3277_vm6 }
  0x80   : > { %v1056_v3 = vadd.f32 %v1052_v0, %v1044_v63  ;;  %v3804_v13 = vadd.f32 -2.0, %v3410_v10  ;;  %v3807_v44 = vadd.f32 -2.0, %v3764_v37  ;;  %v569_v41 = vsub.f32 4.0, %v3410_v10  ;;  %vm382_vm2 = vmxor %vm314_vm1, %vm3277_vm6 }
  0x81   : > { %v3811_v47 = vsel %vm370_vm7, 1.0, %v5072_v12  ;;  %v570_v56 = vsub.f32 4.0, %v3764_v37  ;;  %v3818_v4 = vadd.f32 -3.0, %v3410_v10  ;;  %v545_v16 = vmul.f32 %v2677_v52, %v3801_v11  ;;  %vm385_vm10 = vmand %vm309_vm11, %vm381_vm3 }
  0x82   : > { %v3046_v46 = vpack.i.bf16 %v1056_v3, %v1055_v1  ;;  %v546_v19 = vmul.f32 %v2678_v53, %v3811_v47  ;;  %v3826_v25 = vadd.f32 -3.0, %v3764_v37  ;;  %v589_v27 = vsub.f32 5.0, %v3410_v10  ;;  %vm386_vm0 = vmand %vm310_vm5, %vm382_vm2 }
  0x83   : > { %v590_v30 = vsub.f32 5.0, %v3764_v37  ;;  %v729_v31 = vmul.f32 0.5, %v549_v20  ;;  %v730_v32 = vmul.f32 0.5, %v550_v21  ;;  %v741_v33 = vmul.f32 0.5, %v2677_v52  ;;  %vm397_vm7 = vmxor %vm317_vm12, %vm3277_vm6 }
  0x84   : > { %3047 = vrot.lane.b32.xlu0 %v3046_v46, %s3285_s14  ;;  %v2641_v34 = vsel %vm385_vm10, 1.0, %v5072_v12  ;;  %v742_v23 = vmul.f32 0.5, %v2678_v53  ;;  %v749_v28 = vmul.f32 0.5, %v569_v41  ;;  %v750_v48 = vmul.f32 0.5, %v570_v56  ;;  %vm398_vm11 = vmxor %vm318_vm14, %vm3277_vm6 }
  0x85   : > { %v2642_v36 = vsel %vm386_vm0, 1.0, %v5072_v12  ;;  %v553_v39 = vmul.f32 %v2641_v34, %v549_v20  ;;  %v761_v49 = vmul.f32 0.5, %v3804_v13  ;;  %v762_v50 = vmul.f32 0.5, %v3807_v44  ;;  %vm401_vm5 = vmand %vm313_vm15, %vm397_vm7 }
  0x86   : > { %v554_v43 = vmul.f32 %v2642_v36, %v550_v21  ;;  %v565_v45 = vmul.f32 %v3804_v13, %v2641_v34  ;;  %v566_v51 = vmul.f32 %v3807_v44, %v2642_v36  ;;  %v769_v14 = vmul.f32 0.5, %v589_v27  ;;  %vm402_vm3 = vmand %vm314_vm1, %vm398_vm11 }
  0x87   : > { %v557_v54 = vadd.f32 %v553_v39, %v545_v16  ;;  %v770_v57 = vmul.f32 0.5, %v590_v30  ;;  %v909_v15 = vmul.f32 0.33333334, %v569_v41  ;;  %v910_v58 = vmul.f32 0.33333334, %v570_v56  ;;  %vm413_vm2 = vmxor %vm321_vm9, %vm3277_vm6 }
  0x88   : > { %v2645_v9 = vsel %vm401_vm5, 1.0, %v5072_v12  ;;  %v558_v22 = vadd.f32 %v554_v43, %v546_v19  ;;  %v921_v55 = vmul.f32 0.33333334, %v2677_v52  ;;  %v922_v59 = vmul.f32 0.33333334, %v2678_v53  ;;  %vm414_vm15 = vmxor %vm322_vm4, %vm3277_vm6  ;;  %v247_v43 = vld [vmem:[%s5066_s2] sm:$0xff] }
  0x89   : > { %v2646_v24 = vsel %vm402_vm3, 1.0, %v5072_v12  ;;  %v573_v29 = vmul.f32 %v2645_v9, %v569_v41  ;;  %v929_v18 = vmul.f32 0.33333334, %v589_v27  ;;  %v930_v60 = vmul.f32 0.33333334, %v590_v30  ;;  %vm417_vm1 = vmand %vm317_vm12, %vm413_vm2  ;;  %2921 = vmatprep.subr.mxu0 %v247_v43 }
  0x8a   : > { %v574_v26 = vmul.f32 %v2646_v24, %v570_v56  ;;  %v585_v62 = vmul.f32 %v3818_v4, %v2645_v9  ;;  %v3860_v61 = vmul.f32 %v730_v32, %v558_v22  ;;  %v745_v63 = vmul.f32 %v741_v33, %v557_v54  ;;  %vm418_vm10 = vmand %vm318_vm14, %vm414_vm15  ;;  %2922 = vmatpush3.msra.mxu0 %v247_v43 }
  0x8b   : > { %v577_v17 = vadd.f32 %v573_v29, %v565_v45  ;;  %v586_v0 = vmul.f32 %v3826_v25, %v2646_v24  ;;  %v746_v1 = vmul.f32 %v742_v23, %v558_v22  ;;  %v3865_v52 = vmul.f32 %v729_v31, %v557_v54  ;;  %v245_v45 = vld [vmem:[%s5065_s1] sm:$0xff] }
  0x8c   : > { %v2649_v53 = vsel %vm417_vm1, 1.0, %v5072_v12  ;;  %v578_v3 = vadd.f32 %v574_v26, %v566_v51  ;;  %vm325_vm0 = vcmp.ge.f32.partialorder %v3410_v10, 6.0  ;;  %vm326_vm7 = vcmp.ge.f32.partialorder %v3764_v37, 6.0  ;;  %2931 = vmatprep.subr.mxu1 %v245_v45 }
  0x8d   : > { %v2650_v20 = vsel %vm418_vm10, 1.0, %v5072_v12  ;;  %v593_v21 = vmul.f32 %v2649_v53, %v589_v27  ;;  %v753_v41 = vmul.f32 %v749_v28, %v577_v17  ;;  %v765_v46 = vmul.f32 %v761_v49, %v577_v17  ;;  %vm429_vm12 = vmxor %vm325_vm0, %vm3277_vm6  ;;  %2932 = vmatpush3.msra.mxu1 %v245_v45 }
  0x8e   : > { %v594_v56 = vmul.f32 %v2650_v20, %v590_v30  ;;  %v754_v16 = vmul.f32 %v750_v48, %v578_v3  ;;  %v766_v19 = vmul.f32 %v762_v50, %v578_v3  ;;  %v3877_v31 = vadd.f32 -4.0, %v3410_v10  ;;  %vm430_vm14 = vmxor %vm326_vm7, %vm3277_vm6 }
  0x8f   : > { %v597_v32 = vadd.f32 %v593_v21, %v585_v62  ;;  %v757_v33 = vadd.f32 %v753_v41, %v745_v63  ;;  %v3883_v27 = vadd.f32 -4.0, %v3764_v37  ;;  %v609_v30 = vsub.f32 6.0, %v3410_v10  ;;  %vm433_vm11 = vmand %vm321_vm9, %vm429_vm12 }
  0x90   : > { %v598_v34 = vadd.f32 %v594_v56, %v586_v0  ;;  %v758_v23 = vadd.f32 %v754_v16, %v746_v1  ;;  %v605_v28 = vmul.f32 %v3877_v31, %v2649_v53  ;;  %v610_v48 = vsub.f32 6.0, %v3764_v37  ;;  %vm434_vm5 = vmand %vm322_vm4, %vm430_vm14 }
  0x91   : > { %v773_v36 = vmul.f32 %v769_v14, %v597_v32  ;;  %v925_v39 = vmul.f32 %v921_v55, %v757_v33  ;;  %v3890_v49 = vmul.f32 %v909_v15, %v757_v33  ;;  %v2653_v50 = vsel %vm433_vm11, 1.0, %v5072_v12 }
  0x92   : > { %v774_v51 = vmul.f32 %v770_v57, %v598_v34  ;;  %v3901_v54 = vmul.f32 %v910_v58, %v758_v23  ;;  %v926_v14 = vmul.f32 %v922_v59, %v758_v23  ;;  %v2654_v15 = vsel %vm434_vm5, 1.0, %v5072_v12 }
  0x93   : > { %v777_v9 = vadd.f32 %v773_v36, %v765_v46  ;;  %v606_v22 = vmul.f32 %v3883_v27, %v2650_v20  ;;  %v613_v55 = vmul.f32 %v2653_v50, %v609_v30  ;;  %v614_v24 = vmul.f32 %v2654_v15, %v610_v48 }
  0x94   : > { %v778_v29 = vadd.f32 %v774_v51, %v766_v19  ;;  %v781_v26 = vmul.f32 0.5, %v3818_v4  ;;  %v782_v62 = vmul.f32 0.5, %v3826_v25  ;;  %v789_v63 = vmul.f32 0.5, %v609_v30 }
  0x95   : > { %v933_v57 = vmul.f32 %v929_v18, %v777_v9  ;;  %v617_v58 = vadd.f32 %v613_v55, %v605_v28  ;;  %v618_v59 = vadd.f32 %v614_v24, %v606_v22  ;;  %v790_v17 = vmul.f32 0.5, %v610_v48 }
  0x96   : > { %v934_v0 = vmul.f32 %v930_v60, %v778_v29  ;;  %v785_v1 = vmul.f32 %v781_v26, %v597_v32  ;;  %v786_v53 = vmul.f32 %v782_v62, %v598_v34  ;;  %v941_v3 = vmul.f32 0.33333334, %v3804_v13 }
  0x97   : > { %v937_v20 = vadd.f32 %v933_v57, %v925_v39  ;;  %v793_v21 = vmul.f32 %v789_v63, %v617_v58  ;;  %v794_v41 = vmul.f32 %v790_v17, %v618_v59  ;;  %v942_v46 = vmul.f32 0.33333334, %v3807_v44 }
  0x98   : > { %v938_v56 = vadd.f32 %v934_v0, %v926_v14  ;;  %v945_v16 = vmul.f32 %v941_v3, %v777_v9  ;;  %v949_v19 = vmul.f32 0.33333334, %v609_v30  ;;  %v950_v33 = vmul.f32 0.33333334, %v610_v48 }
  0x99   : > { %v797_v23 = vadd.f32 %v793_v21, %v785_v1  ;;  %v798_v36 = vadd.f32 %v794_v41, %v786_v53  ;;  %v946_v18 = vmul.f32 %v942_v46, %v778_v29  ;;  %vm329_vm9 = vcmp.ge.f32.partialorder %v3410_v10, 7.0 }
  0x9a   : > { %v3051_v28 = vpack.i.bf16 %v938_v56, %v937_v20  ;;  %vm330_vm4 = vcmp.ge.f32.partialorder %v3764_v37, 7.0  ;;  %vm445_vm3 = vmxor %vm329_vm9, %vm3277_vm6  ;;  %v3915_v13 = vadd.f32 -5.0, %v3410_v10  ;;  %v3918_v44 = vadd.f32 -5.0, %v3764_v37 }
  0x9b   : > { %v953_v60 = vmul.f32 %v949_v19, %v797_v23  ;;  %v954_v32 = vmul.f32 %v950_v33, %v798_v36  ;;  %vm446_vm2 = vmxor %vm330_vm4, %vm3277_vm6  ;;  %v629_v30 = vsub.f32 7.0, %v3410_v10  ;;  %v630_v34 = vsub.f32 7.0, %v3764_v37 }
  0x9c   : > { %3052 = vrot.lane.b32.xlu1 %v3051_v28, %s3279_s6  ;;  %vm449_vm15 = vmand %vm325_vm0, %vm445_vm3  ;;  %v625_v48 = vmul.f32 %v3915_v13, %v2653_v50  ;;  %v626_v39 = vmul.f32 %v3918_v44, %v2654_v15  ;;  %v801_v43 = vmul.f32 0.5, %v3877_v31  ;;  %v802_v45 = vmul.f32 0.5, %v3883_v27 }
  0x9d   : > { %v957_v51 = vadd.f32 %v953_v60, %v945_v16  ;;  %v958_v14 = vadd.f32 %v954_v32, %v946_v18  ;;  %vm450_vm1 = vmand %vm326_vm7, %vm446_vm2  ;;  %v2657_v9 = vsel %vm449_vm15, 1.0, %v5072_v12  ;;  %v809_v22 = vmul.f32 0.5, %v629_v30 }
  0x9e   : > { %v2658_v55 = vsel %vm450_vm1, 1.0, %v5072_v12  ;;  %v633_v24 = vmul.f32 %v2657_v9, %v629_v30  ;;  %v805_v29 = vmul.f32 %v801_v43, %v617_v58  ;;  %v806_v26 = vmul.f32 %v802_v45, %v618_v59 }
  0x9f   : > { %v3056_v50 = vpack.i.bf16 %v958_v14, %v957_v51  ;;  %v634_v62 = vmul.f32 %v2658_v55, %v630_v34  ;;  %v810_v15 = vmul.f32 0.5, %v630_v34  ;;  %v961_v63 = vmul.f32 0.33333334, %v3818_v4 }
  0xa0   : > { %v637_v57 = vadd.f32 %v633_v24, %v625_v48  ;;  %v962_v17 = vmul.f32 0.33333334, %v3826_v25  ;;  %v969_v0 = vmul.f32 0.33333334, %v629_v30  ;;  %v970_v1 = vmul.f32 0.33333334, %v630_v34 }
  0xa1   : > { %3057 = vrot.lane.b32.xlu0 %v3056_v50, %s3281_s30  ;;  %v638_v53 = vadd.f32 %v634_v62, %v626_v39  ;;  %v965_v3 = vmul.f32 %v961_v63, %v797_v23  ;;  %vm333_vm10 = vcmp.ge.f32.partialorder %v3410_v10, 8.0  ;;  %vm334_vm0 = vcmp.ge.f32.partialorder %v3764_v37, 8.0 }
  0xa2   : > { %v813_v58 = vmul.f32 %v809_v22, %v637_v57  ;;  %v966_v59 = vmul.f32 %v962_v17, %v798_v36  ;;  %vm461_vm7 = vmxor %vm333_vm10, %vm3277_vm6  ;;  %v3945_v4 = vadd.f32 -6.0, %v3410_v10  ;;  %v3948_v25 = vadd.f32 -6.0, %v3764_v37 }
  0xa3   : > { %v814_v20 = vmul.f32 %v810_v15, %v638_v53  ;;  %vm462_vm12 = vmxor %vm334_vm0, %vm3277_vm6  ;;  %v649_v21 = vsub.f32 8.0, %v3410_v10  ;;  %v650_v41 = vsub.f32 8.0, %v3764_v37  ;;  %v821_v46 = vmul.f32 0.5, %v3915_v13 }
  0xa4   : > { %v817_v56 = vadd.f32 %v813_v58, %v805_v29  ;;  %vm465_vm14 = vmand %vm329_vm9, %vm461_vm7  ;;  %v645_v16 = vmul.f32 %v3945_v4, %v2657_v9  ;;  %v646_v19 = vmul.f32 %v3948_v25, %v2658_v55  ;;  %v822_v33 = vmul.f32 0.5, %v3918_v44 }
  0xa5   : > { %v818_v23 = vadd.f32 %v814_v20, %v806_v26  ;;  %vm466_vm11 = vmand %vm330_vm4, %vm462_vm12  ;;  %v2661_v36 = vsel %vm465_vm14, 1.0, %v5072_v12  ;;  %v825_v18 = vmul.f32 %v821_v46, %v637_v57  ;;  %v829_v28 = vmul.f32 0.5, %v649_v21 }
  0xa6   : > { %v973_v60 = vmul.f32 %v969_v0, %v817_v56  ;;  %v2662_v32 = vsel %vm466_vm11, 1.0, %v5072_v12  ;;  %v653_v30 = vmul.f32 %v2661_v36, %v649_v21  ;;  %v826_v34 = vmul.f32 %v822_v33, %v638_v53 }
  0xa7   : > { %v974_v48 = vmul.f32 %v970_v1, %v818_v23  ;;  %v654_v39 = vmul.f32 %v2662_v32, %v650_v41  ;;  %v830_v43 = vmul.f32 0.5, %v650_v41  ;;  %v981_v45 = vmul.f32 0.33333334, %v3877_v31 }
  0xa8   : > { %v977_v51 = vadd.f32 %v973_v60, %v965_v3  ;;  %v657_v14 = vadd.f32 %v653_v30, %v645_v16  ;;  %v982_v9 = vmul.f32 0.33333334, %v3883_v27  ;;  %v989_v22 = vmul.f32 0.33333334, %v649_v21 }
  0xa9   : > { %v978_v55 = vadd.f32 %v974_v48, %v966_v59  ;;  %v658_v24 = vadd.f32 %v654_v39, %v646_v19  ;;  %v985_v29 = vmul.f32 %v981_v45, %v817_v56  ;;  %v990_v26 = vmul.f32 0.33333334, %v650_v41 }
  0xaa   : > { %v833_v50 = vmul.f32 %v829_v28, %v657_v14  ;;  %v986_v62 = vmul.f32 %v982_v9, %v818_v23  ;;  %vm337_vm5 = vcmp.ge.f32.partialorder %v3410_v10, 9.0  ;;  %vm338_vm9 = vcmp.ge.f32.partialorder %v3764_v37, 9.0 }
  0xab   : > { %v3061_v15 = vpack.i.bf16 %v978_v55, %v977_v51  ;;  %v834_v63 = vmul.f32 %v830_v43, %v658_v24  ;;  %vm477_vm4 = vmxor %vm337_vm5, %vm3277_vm6  ;;  %v3973_v31 = vadd.f32 -7.0, %v3410_v10  ;;  %v3976_v27 = vadd.f32 -7.0, %v3764_v37 }
  0xac   : > { %v837_v57 = vadd.f32 %v833_v50, %v825_v18  ;;  %vm478_vm3 = vmxor %vm338_vm9, %vm3277_vm6  ;;  %v669_v17 = vsub.f32 9.0, %v3410_v10  ;;  %v670_v0 = vsub.f32 9.0, %v3764_v37  ;;  %v841_v1 = vmul.f32 0.5, %v3945_v4 }
  0xad   : > { %3062 = vrot.lane.b32.xlu1 %v3061_v15, %s3280_s26  ;;  %v838_v53 = vadd.f32 %v834_v63, %v826_v34  ;;  %vm481_vm2 = vmand %vm333_vm10, %vm477_vm4  ;;  %v665_v3 = vmul.f32 %v3973_v31, %v2661_v36  ;;  %v666_v58 = vmul.f32 %v3976_v27, %v2662_v32  ;;  %v842_v59 = vmul.f32 0.5, %v3948_v25  ;;  %s3212_s26 = sshll.u32 %s3286_s22, 4  ;;  %s3213_s26 = int_to_ptr.vmem [resolvable:$false] %s3212_s26 }
  0xae   : > { %v993_v20 = vmul.f32 %v989_v22, %v837_v57  ;;  %vm482_vm15 = vmand %vm334_vm0, %vm478_vm3  ;;  %v2665_v21 = vsel %vm481_vm2, 1.0, %v5072_v12  ;;  %v845_v41 = vmul.f32 %v841_v1, %v657_v14  ;;  %v849_v46 = vmul.f32 0.5, %v669_v17 }
  0xaf   : > { %v994_v56 = vmul.f32 %v990_v26, %v838_v53  ;;  %v2666_v16 = vsel %vm482_vm15, 1.0, %v5072_v12  ;;  %v673_v19 = vmul.f32 %v2665_v21, %v669_v17  ;;  %v846_v33 = vmul.f32 %v842_v59, %v658_v24 }
  0xb0   : > { %v997_v23 = vadd.f32 %v993_v20, %v985_v29  ;;  %v674_v18 = vmul.f32 %v2666_v16, %v670_v0  ;;  %v850_v36 = vmul.f32 0.5, %v670_v0  ;;  %v1001_v28 = vmul.f32 0.33333334, %v3915_v13 }
  0xb1   : > { %v998_v60 = vadd.f32 %v994_v56, %v986_v62  ;;  %v677_v32 = vadd.f32 %v673_v19, %v665_v3  ;;  %v1002_v30 = vmul.f32 0.33333334, %v3918_v44  ;;  %v1009_v34 = vmul.f32 0.33333334, %v669_v17 }
  0xb2   : > { %v678_v48 = vadd.f32 %v674_v18, %v666_v58  ;;  %v1005_v39 = vmul.f32 %v1001_v28, %v837_v57  ;;  %v1010_v43 = vmul.f32 0.33333334, %v670_v0  ;;  %vm341_vm1 = vcmp.ge.f32.partialorder %v3410_v10, 10.0 }
  0xb3   : > { %v3066_v45 = vpack.i.bf16 %v998_v60, %v997_v23  ;;  %v853_v51 = vmul.f32 %v849_v46, %v677_v32  ;;  %v1006_v14 = vmul.f32 %v1002_v30, %v838_v53  ;;  %vm342_vm10 = vcmp.ge.f32.partialorder %v3764_v37, 10.0  ;;  %vm493_vm0 = vmxor %vm341_vm1, %vm3277_vm6 }
  0xb4   : > { %v854_v13 = vmul.f32 %v850_v36, %v678_v48  ;;  %vm494_vm7 = vmxor %vm342_vm10, %vm3277_vm6  ;;  %v2705_v44 = vadd.f32 -8.0, %v3410_v10  ;;  %v2706_v9 = vadd.f32 -8.0, %v3764_v37  ;;  %v689_v22 = vsub.f32 10.0, %v3410_v10 }
  0xb5   : > { %3067 = vrot.lane.b32.xlu0 %v3066_v45, %s3282_s23  ;;  %v857_v55 = vadd.f32 %v853_v51, %v845_v41  ;;  %vm497_vm12 = vmand %vm337_vm5, %vm493_vm0  ;;  %v690_v24 = vsub.f32 10.0, %v3764_v37  ;;  %v861_v29 = vmul.f32 0.5, %v3973_v31  ;;  %v862_v26 = vmul.f32 0.5, %v3976_v27 }
  0xb6   : > { %v858_v50 = vadd.f32 %v854_v13, %v846_v33  ;;  %vm498_vm14 = vmand %vm338_vm9, %vm494_vm7  ;;  %v2669_v62 = vsel %vm497_vm12, 1.0, %v5072_v12  ;;  %v685_v15 = vmul.f32 %v2705_v44, %v2665_v21  ;;  %v686_v63 = vmul.f32 %v2706_v9, %v2666_v16 }
  0xb7   : > { %v1013_v57 = vmul.f32 %v1009_v34, %v857_v55  ;;  %v2670_v17 = vsel %vm498_vm14, 1.0, %v5072_v12  ;;  %v693_v0 = vmul.f32 %v2669_v62, %v689_v22  ;;  %v865_v1 = vmul.f32 %v861_v29, %v677_v32  ;;  %vm350_vm0 = vmxor %vm306_vm8, %vm3277_vm6 }
  0xb8   : > { %v1014_v53 = vmul.f32 %v1010_v43, %v858_v50  ;;  %v694_v3 = vmul.f32 %v2670_v17, %v690_v24  ;;  %v866_v58 = vmul.f32 %v862_v26, %v678_v48  ;;  %v869_v59 = vmul.f32 0.5, %v689_v22 }
  0xb9   : > { %v1017_v20 = vadd.f32 %v1013_v57, %v1005_v39  ;;  %v697_v41 = vadd.f32 %v693_v0, %v685_v15  ;;  %v870_v46 = vmul.f32 0.5, %v690_v24  ;;  %v1021_v56 = vmul.f32 0.33333334, %v3945_v4 }
  0xba   : > { %v1018_v19 = vadd.f32 %v1014_v53, %v1006_v14  ;;  %v698_v33 = vadd.f32 %v694_v3, %v686_v63  ;;  %v1022_v23 = vmul.f32 0.33333334, %v3948_v25  ;;  %v1029_v21 = vmul.f32 0.33333334, %v689_v22 }
  0xbb   : > { %v873_v16 = vmul.f32 %v869_v59, %v697_v41  ;;  %v1025_v18 = vmul.f32 %v1021_v56, %v857_v55  ;;  %v1030_v36 = vmul.f32 0.33333334, %v690_v24  ;;  %vm345_vm11 = vcmp.ge.f32.partialorder %v3410_v10, 11.0 }
  0xbc   : > { %vm302_vm5 = vcmp.ge.f32.partialorder %v3764_v37, 0.0  ;;  %v3071_v28 = vpack.i.bf16 %v1018_v19, %v1017_v20  ;;  %v874_v60 = vmul.f32 %v870_v46, %v698_v33  ;;  %v1026_v32 = vmul.f32 %v1022_v23, %v858_v50  ;;  %vm509_vm4 = vmxor %vm345_vm11, %vm3277_vm6 }
  0xbd   : > { %vm346_vm9 = vcmp.ge.f32.partialorder %v3764_v37, 11.0  ;;  %v877_v4 = vadd.f32 %v873_v16, %v865_v1  ;;  %v2709_v25 = vadd.f32 -9.0, %v3410_v10  ;;  %v2710_v30 = vadd.f32 -9.0, %v3764_v37  ;;  %vm513_vm2 = vmand %vm341_vm1, %vm509_vm4 }
  0xbe   : > { %vm510_vm3 = vmxor %vm346_vm9, %vm3277_vm6  ;;  %v709_v34 = vsub.f32 11.0, %v3410_v10  ;;  %3072 = vrot.lane.b32.xlu1 %v3071_v28, %s3283_s8  ;;  %v878_v48 = vadd.f32 %v874_v60, %v866_v58  ;;  %v710_v39 = vsub.f32 11.0, %v3764_v37  ;;  %v881_v43 = vmul.f32 0.5, %v2705_v44  ;;  %s3214_s8 = scalar_lea.vmem %s3213_s26, 1024 }
  0xbf   : > { %v882_v45 = vmul.f32 0.5, %v2706_v9  ;;  %v1033_v51 = vmul.f32 %v1029_v21, %v877_v4  ;;  %vm514_vm15 = vmand %vm342_vm10, %vm510_vm3  ;;  %v2673_v14 = vsel %vm513_vm2, 1.0, %v5072_v12  ;;  %v705_v13 = vmul.f32 %v2709_v25, %v2669_v62 }
  0xc0   : > { %v706_v22 = vmul.f32 %v2710_v30, %v2670_v17  ;;  %v530_v55 = vsub.f32 2.0, %v3764_v37  ;;  %v1034_v24 = vmul.f32 %v1030_v36, %v878_v48  ;;  %v2674_v29 = vsel %vm514_vm15, 1.0, %v5072_v12  ;;  %vm349_vm10 = vmxor %vm305_vm13, %vm3277_vm6 }
  0xc1   : > { %v713_v26 = vmul.f32 %v2673_v14, %v709_v34  ;;  %v1037_v50 = vadd.f32 %v1033_v51, %v1025_v18  ;;  %v714_v15 = vmul.f32 %v2674_v29, %v710_v39  ;;  %v885_v63 = vmul.f32 %v881_v43, %v697_v41  ;;  %vm354_vm13 = vmand %vm302_vm5, %vm350_vm0 }
  0xc2   : > { %v889_v57 = vmul.f32 0.5, %v709_v34  ;;  %v1038_v44 = vadd.f32 %v1034_v24, %v1026_v32  ;;  %v890_v0 = vmul.f32 0.5, %v710_v39  ;;  %v1041_v1 = vmul.f32 0.33333334, %v3973_v31  ;;  %v3178_v24 = vld [vmem:[%s3389_s17] sm:$0xff] }
  0xc3   : > { %v717_v9 = vadd.f32 %v713_v26, %v705_v13  ;;  %vm301_vm1 = vcmp.ge.f32.partialorder %v3410_v10, 0.0  ;;  %v718_v62 = vadd.f32 %v714_v15, %v706_v22  ;;  %v886_v17 = vmul.f32 %v882_v45, %v698_v33 }
  0xc4   : > { %v1042_v53 = vmul.f32 0.33333334, %v3976_v27  ;;  %v3076_v3 = vpack.i.bf16 %v1038_v44, %v1037_v50  ;;  %v1049_v59 = vmul.f32 0.33333334, %v709_v34  ;;  %v719_v20 = vmul.f32 0.5, %v3395_v7  ;;  %vm4047_vm7 = vmand %vm301_vm1, %vm349_vm10 }
  0xc5   : > { %v893_v58 = vmul.f32 %v889_v57, %v717_v9  ;;  %v894_v31 = vmul.f32 %v890_v0, %v718_v62  ;;  %v1050_v41 = vmul.f32 0.33333334, %v710_v39  ;;  %v720_v46 = vmul.f32 0.5, %v3397_v8  ;;  %v4083_v57 = vld [vmem:[%s3389_s17 + $0x18] sm:$0xff] }
  0xc6   : > { %3077 = vrot.lane.b32.xlu0 %v3076_v3, %s3284_s13  ;;  %v1045_v19 = vmul.f32 %v1041_v1, %v877_v4  ;;  %v1046_v33 = vmul.f32 %v1042_v53, %v878_v48  ;;  %v899_v23 = vmul.f32 0.33333334, %v3395_v7  ;;  %v900_v18 = vmul.f32 0.33333334, %v3397_v8 }
  0xc7   : > { %v897_v27 = vadd.f32 %v893_v58, %v885_v63  ;;  %v898_v21 = vadd.f32 %v894_v31, %v886_v17  ;;  %v724_v16 = vmul.f32 %v720_v46, %v3470_v42  ;;  %v723_v36 = vmul.f32 %v719_v20, %v3552_v40 }
  0xc8   : > { %v534_v28 = vmul.f32 %v3811_v47, %v530_v55  ;;  %v533_v60 = vmul.f32 %v3801_v11, %v529_v6  ;;  %v2633_v42 = vsel %vm4047_vm7, 1.0, %v5072_v12  ;;  %v2634_v8 = vsel %vm354_vm13, 1.0, %v5072_v12 }
  0xc9   : > { %v1053_v32 = vmul.f32 %v1049_v59, %v897_v27  ;;  %v1054_v4 = vmul.f32 %v1050_v41, %v898_v21  ;;  %v736_v7 = vadd.f32 %v3508_v2, %v724_v16  ;;  %v735_v25 = vadd.f32 %v3512_v5, %v723_v36 }
  0xca   : > { %v525_v40 = vmul.f32 %v2633_v42, %v3410_v10  ;;  %v721_v47 = vmul.f32 0.5, %v3410_v10  ;;  %v526_v48 = vmul.f32 %v2634_v8, %v3764_v37  ;;  %v722_v5 = vmul.f32 0.5, %v3764_v37 }
  0xcb   : > { %v1057_v30 = vadd.f32 %v1053_v32, %v1045_v19  ;;  %v1058_v34 = vadd.f32 %v1054_v4, %v1046_v33  ;;  %v904_v6 = vmul.f32 %v900_v18, %v736_v7  ;;  %v903_v11 = vmul.f32 %v899_v23, %v735_v25 }
  0xcc   : > { %v537_v2 = vadd.f32 %v533_v60, %v525_v40  ;;  %v538_v51 = vadd.f32 %v534_v28, %v526_v48  ;;  %v901_v22 = vmul.f32 0.33333334, %v3410_v10  ;;  %v902_v55 = vmul.f32 0.33333334, %v3764_v37 }
  0xcd   : > { %v3081_v39 = vpack.i.bf16 %v1058_v34, %v1057_v30  ;;  %v916_v43 = vadd.f32 %v3550_v38, %v904_v6  ;;  %v915_v45 = vadd.f32 %v3544_v35, %v903_v11  ;;  %v2623_v29 = vmul.f32 -1.442695, %v3178_v24  ;;  %v3179_v38 = vld [vmem:[%s3389_s17 + $0x8] sm:$0xff]  ;;  %v3180_v35 = vld [vmem:[%s3389_s17 + $0x10] sm:$0xff] }
  0xce   : > { %v725_v14 = vmul.f32 %v721_v47, %v537_v2  ;;  %v726_v13 = vmul.f32 %v722_v5, %v538_v51  ;;  %v2624_v15 = vmul.f32 -1.442695, %v3179_v38  ;;  %v2625_v63 = vmul.f32 -1.442695, %v3180_v35 }
  0xcf   : > { %3082 = vrot.lane.b32.xlu1 %v3081_v39, %s3285_s14  ;;  %3146 = vpow2.f32 %v2623_v29  ;;  %v2626_v44 = vmul.f32 -1.442695, %v4083_v57  ;;  %vm1171_vm8 = vcmask 130048   ;;  %vm5075_vm12 = vcmask 261120  }
  0xd0   : > { %v737_v26 = vadd.f32 %v3865_v52, %v725_v14  ;;  %v738_v50 = vadd.f32 %v3860_v61, %v726_v13  ;;  %3148 = vpow2.f32 %v2624_v15  ;;  %v3018_v52 = vpop.permute.xlu0 %3017  ;;  %v3028_v59 = vpop.permute.xlu1 %3027  ;;  %vm1181_vm14 = vcmask 392192  }
  0xd1   : > { %3150 = vpow2.f32 %v2625_v63  ;;  %v3019_v41 = vunpack.i.l.bf16 %v3018_v52  ;;  %v3030_v21 = vunpack.i.h.bf16 %v3028_v59  ;;  %v3029_v16 = vunpack.i.l.bf16 %v3028_v59 }
  0xd2   : > { %v905_v9 = vmul.f32 %v901_v22, %v737_v26  ;;  %v906_v0 = vmul.f32 %v902_v55, %v738_v50  ;;  %3152 = vpow2.f32 %v2626_v44  ;;  %vm5071_vm11 = vcmask 523264  }
  0xd3   : > { %v1172_v27 = vsel %vm1171_vm8, %v915_v45, %v3019_v41  ;;  %vm1191_vm5 = vcmask 654336   ;;  %vm5070_vm9 = vcmask 785408   ;;  %vm1201_vm4 = vcmask 916480  }
  0xd4   : > { %v4087_v10 = vadd.f32 %v3890_v49, %v905_v9  ;;  %v4090_v37 = vadd.f32 %v3901_v54, %v906_v0  ;;  %v3023_v20 = vpop.permute.xlu0 %3022  ;;  %v3020_v49 = vunpack.i.h.bf16 %v3018_v52 }
  0xd5   : > { %v3025_v54 = vunpack.i.h.bf16 %v3023_v20  ;;  %v3024_v46 = vunpack.i.l.bf16 %v3023_v20 }
  0xd6   : > { %v1173_v56 = vsel %vm1171_vm8, %v916_v43, %v3020_v49 }
  0xd7   : > { %v1177_v33 = vsel %vm5075_vm12, %v1172_v27, %v3024_v46  ;;  %v1178_v23 = vsel %vm5075_vm12, %v1173_v56, %v3025_v54 }
  0xd8   : > { %v1182_v32 = vsel %vm1181_vm14, %v1177_v33, %v3029_v16  ;;  %v1183_v4 = vsel %vm1181_vm14, %v1178_v23, %v3030_v21 }
  0xdc   : > { %v3147_v61 = vpop.eup %3146 }
  0xdd   : > { %v275_v1 = vadd.f32 1.0, %v3147_v61  ;;  %v3149_v62 = vpop.eup %3148  ;;  %v3033_v19 = vpop.permute.xlu1 %3032 }
  0xde   : > { %v3151_v17 = vpop.eup %3150  ;;  %v276_v53 = vadd.f32 1.0, %v3149_v62  ;;  %v3035_v18 = vunpack.i.h.bf16 %v3033_v19  ;;  %v3034_v36 = vunpack.i.l.bf16 %v3033_v19 }
  0xdf   : > { %3154 = vrcp.f32 %v275_v1  ;;  %v3153_v3 = vpop.eup %3152  ;;  %v277_v58 = vadd.f32 1.0, %v3151_v17 }
  0xe0   : > { %3156 = vrcp.f32 %v276_v53  ;;  %v278_v31 = vadd.f32 1.0, %v3153_v3  ;;  %v1187_v40 = vsel %vm5071_vm11, %v1182_v32, %v3034_v36  ;;  %v1188_v47 = vsel %vm5071_vm11, %v1183_v4, %v3035_v18  ;;  %v1391_v36 = vld [vmem:[%s5067_s3 + $0x18] sm:$0xff]  ;;  %v1388_v32 = vld [vmem:[%s5067_s3] sm:$0xff] }
  0xe1   : > { %3158 = vrcp.f32 %v277_v58  ;;  %2939 = vmatprep.subr.mxu0 %v1391_v36 }
  0xe2   : > { %3160 = vrcp.f32 %v278_v31 }
  0xe5   : > { %v3038_v28 = vpop.permute.xlu0 %3037 }
  0xe6   : > { %v3040_v25 = vunpack.i.h.bf16 %v3038_v28  ;;  %v3039_v42 = vunpack.i.l.bf16 %v3038_v28  ;;  %v1390_v28 = vld [vmem:[%s5067_s3 + $0x10] sm:$0xff] }
  0xe8   : > { %v1192_v39 = vsel %vm1191_vm5, %v1187_v40, %v3039_v42  ;;  %v1193_v43 = vsel %vm1191_vm5, %v1188_v47, %v3040_v25 }
  0xec   : > { %v3155_v60 = vpop.eup %3154 }
  0xed   : > { %v287_v7 = vmul.f32 %v3178_v24, %v3155_v60  ;;  %v3157_v8 = vpop.eup %3156  ;;  %v1389_v60 = vld [vmem:[%s5067_s3 + $0x8] sm:$0xff] }
  0xee   : > { %v3043_v30 = vpop.permute.xlu1 %3042  ;;  %v3159_v34 = vpop.eup %3158  ;;  %v288_v6 = vmul.f32 %v3179_v38, %v3157_v8 }
  0xef   : > { %2933 = vmatprep.mubr.msk.f32.mxu1 %vm1171_vm8, %v287_v7  ;;  %v3161_v11 = vpop.eup %3160  ;;  %v3045_v48 = vunpack.i.h.bf16 %v3043_v30  ;;  %v3044_v2 = vunpack.i.l.bf16 %v3043_v30  ;;  %v289_v5 = vmul.f32 %v3180_v35, %v3159_v34 }
  0xf0   : > { %2934 = vmatmul.mubr.msk.f32.vlgmr.msra.gmra.mxu1 %vm1171_vm8, %v288_v6  ;;  %v290_v45 = vmul.f32 %v4083_v57, %v3161_v11 }
  0xf1   : > { %2936 = vmatprep.mubr.msk.f32.mxu1 %vm1171_vm8, %v289_v5  ;;  %v1197_v22 = vsel %vm5070_vm9, %v1192_v39, %v3044_v2  ;;  %v1198_v55 = vsel %vm5070_vm9, %v1193_v43, %v3045_v48 }
  0xf4   : > { %2937 = vmatmul.mubr.msk.f32.gmra.mxu1 %vm1171_vm8, %v290_v45 }
  0xf6   : > { %v3048_v51 = vpop.permute.xlu0 %3047 }
  0xf7   : > { %v3050_v14 = vunpack.i.h.bf16 %v3048_v51  ;;  %v3049_v13 = vunpack.i.l.bf16 %v3048_v51 }
  0xf9   : > { %v1202_v24 = vsel %vm1201_vm4, %v1197_v22, %v3049_v13  ;;  %v1203_v29 = vsel %vm1201_vm4, %v1198_v55, %v3050_v14 }
  0xfa   : > { %2923 = vmatprep.mubr.f32.mxu0 %v1202_v24 }
  0xfb   : > { %2924 = vmatmul.mubr.f32.vlgmr.msra.gmra.mxu0 %v1203_v29 }
  0xfc   : > { %2940 = vmatpush3.msra.mxu0 %v1391_v36 }
  0xfd   : > { %2941 = vmatprep.subr.mxu0 %v1390_v28 }
  0xfe   : > { %2942 = vmatpush3.msra.mxu0 %v1390_v28 }
  0xff   : > { %2943 = vmatprep.subr.mxu0 %v1389_v60 }
 0x100   : > { %2944 = vmatpush3.msra.mxu0 %v1389_v60 }
 0x101   : > { %2945 = vmatprep.subr.mxu0 %v1388_v32 }
 0x102   : > { %2946 = vmatpush3.msra.mxu0 %v1388_v32 }
 0x10e   : > { %v3053_v26 = vpop.permute.xlu1 %3052 }
 0x10f   : > { %v3055_v15 = vunpack.i.h.bf16 %v3053_v26  ;;  %v3054_v35 = vunpack.i.l.bf16 %v3053_v26 }
 0x111   : > { %v1175_v9 = vsel %vm1171_vm8, %v4090_v37, %v3055_v15  ;;  %v1174_v0 = vsel %vm1171_vm8, %v4087_v10, %v3054_v35 }
 0x113   : > { %v3058_v50 = vpop.permute.xlu0 %3057 }
 0x114   : > { %v3060_v57 = vunpack.i.h.bf16 %v3058_v50  ;;  %v3059_v44 = vunpack.i.l.bf16 %v3058_v50 }
 0x116   : > { %v1180_v1 = vsel %vm5075_vm12, %v1175_v9, %v3060_v57  ;;  %v1179_v62 = vsel %vm5075_vm12, %v1174_v0, %v3059_v44 }
 0x11f   : > { %v3063_v38 = vpop.permute.xlu1 %3062 }
 0x120   : > { %v3065_v61 = vunpack.i.h.bf16 %v3063_v38  ;;  %v3064_v52 = vunpack.i.l.bf16 %v3063_v38 }
 0x122   : > { %v1184_v59 = vsel %vm1181_vm14, %v1179_v62, %v3064_v52  ;;  %v1185_v20 = vsel %vm1181_vm14, %v1180_v1, %v3065_v61 }
 0x127   : > { %v3068_v63 = vpop.permute.xlu0 %3067 }
 0x128   : > { %v3070_v17 = vunpack.i.h.bf16 %v3068_v63  ;;  %v3069_v53 = vunpack.i.l.bf16 %v3068_v63 }
 0x12a   : > { %v1189_v37 = vsel %vm5071_vm11, %v1184_v59, %v3069_v53  ;;  %v1190_v10 = vsel %vm5071_vm11, %v1185_v20, %v3070_v17 }
 0x130   : > { %v3073_v3 = vpop.permute.xlu1 %3072 }
 0x131   : > { %v3075_v31 = vunpack.i.h.bf16 %v3073_v3  ;;  %v3074_v49 = vunpack.i.l.bf16 %v3073_v3 }
 0x133   : > { %v1194_v46 = vsel %vm1191_vm5, %v1189_v37, %v3074_v49  ;;  %v1195_v56 = vsel %vm1191_vm5, %v1190_v10, %v3075_v31 }
 0x138   : > { %v3078_v58 = vpop.permute.xlu0 %3077 }
 0x139   : > { %v3080_v41 = vunpack.i.h.bf16 %v3078_v58  ;;  %v3079_v54 = vunpack.i.l.bf16 %v3078_v58 }
 0x13b   : > { %v1199_v19 = vsel %vm5070_vm9, %v1194_v46, %v3079_v54  ;;  %v1200_v33 = vsel %vm5070_vm9, %v1195_v56, %v3080_v41 }
 0x141   : > { %v3083_v27 = vpop.permute.xlu1 %3082 }
 0x142   : > { %v3085_v23 = vunpack.i.h.bf16 %v3083_v27  ;;  %v3084_v21 = vunpack.i.l.bf16 %v3083_v27 }
 0x144   : > { %v1204_v16 = vsel %vm1201_vm4, %v1199_v19, %v3084_v21  ;;  %v1205_v18 = vsel %vm1201_vm4, %v1200_v33, %v3085_v23 }
 0x145   : > { %2926 = vmatprep.mubr.f32.mxu0 %v1204_v16 }
 0x146   : > { %2927 = vmatmul.mubr.f32.gmra.mxu0 %v1205_v18 }
 0x1b0   : > { %v2935_v4 = vpop.f32.mrf.mxu1 }
 0x1b2   : > { %v1369_v25 = vpop.f32.mrf.mxu1 }
 0x1bb   : > { %v2925_v7 = vpop.f32.mrf.mxu0 }
 0x1bc   : > { %v4139_v42 = vadd.f32 %v2935_v4, %v2925_v7 }
 0x1bd   : > { %v1272_v30 = vpop.f32.mrf.mxu0 }
 0x1be   : > { %v2716_v8 = vmul.f32 -1.442695, %v4139_v42  ;;  %v2720_v40 = vadd.f32 2.2, %v4139_v42  ;;  %v4143_v47 = vadd.f32 %v1369_v25, %v1272_v30 }
 0x1c0   : > { %3162 = vpow2.f32 %v2716_v8  ;;  %v4145_v34 = vmul.f32 2.5, %v2720_v40  ;;  %v2715_v6 = vmul.f32 -1.442695, %v4143_v47  ;;  %v2719_v11 = vadd.f32 2.2, %v4143_v47 }
 0x1c2   : > { %3164 = vpow2.f32 %v2715_v6  ;;  %vm1469_vm3 = vcmp.ge.f32.partialorder %v4145_v34, 2.0  ;;  %vm1473_vm2 = vcmp.ge.f32.partialorder %v4145_v34, 3.0  ;;  %vm1477_vm15 = vcmp.ge.f32.partialorder %v4145_v34, 4.0 }
 0x1c3   : > { %vm1541_vm1 = vmxor %vm1473_vm2, %vm3277_vm6  ;;  %v4153_v48 = vmul.f32 2.5, %v2719_v11  ;;  %vm1481_vm10 = vcmp.ge.f32.partialorder %v4145_v34, 5.0  ;;  %vm1485_vm0 = vcmp.ge.f32.partialorder %v4145_v34, 6.0  ;;  %v2772_v2 = vadd.f32 -2.0, %v4145_v34 }
 0x1c4   : > { %vm1545_vm7 = vmand %vm1469_vm3, %vm1541_vm1  ;;  %vm1489_vm13 = vcmp.ge.f32.partialorder %v4145_v34, 7.0  ;;  %vm1493_vm8 = vcmp.ge.f32.partialorder %v4145_v34, 8.0  ;;  %vm1497_vm14 = vcmp.ge.f32.partialorder %v4145_v34, 9.0  ;;  %vm1501_vm4 = vcmp.ge.f32.partialorder %v4145_v34, 10.0 }
 0x1c5   : > { %v4164_v5 = vsel %vm1545_vm7, 1.0, %v5072_v12  ;;  %vm1557_vm5 = vmxor %vm1477_vm15, %vm3277_vm6  ;;  %v4172_v43 = vsub.f32 4.0, %v4145_v34  ;;  %v4175_v45 = vadd.f32 -3.0, %v4145_v34  ;;  %v4178_v51 = vsub.f32 5.0, %v4145_v34 }
 0x1c6   : > { %vm1561_vm9 = vmand %vm1473_vm2, %vm1557_vm5  ;;  %v1725_v39 = vmul.f32 %v2772_v2, %v4164_v5  ;;  %v4185_v13 = vadd.f32 -4.0, %v4145_v34  ;;  %v1769_v22 = vsub.f32 6.0, %v4145_v34  ;;  %v4189_v55 = vadd.f32 -6.0, %v4145_v34 }
 0x1c7   : > { %v2736_v14 = vsel %vm1561_vm9, 1.0, %v5072_v12  ;;  %vm1573_vm1 = vmxor %vm1481_vm10, %vm3277_vm6  ;;  %v4196_v26 = vsub.f32 8.0, %v4145_v34  ;;  %v4199_v50 = vsub.f32 9.0, %v4145_v34  ;;  %v4206_v15 = vadd.f32 -7.0, %v4145_v34 }
 0x1c8   : > { %vm1577_vm2 = vmand %vm1477_vm15, %vm1573_vm1  ;;  %v1733_v24 = vmul.f32 %v2736_v14, %v4172_v43  ;;  %v1745_v29 = vmul.f32 %v4175_v45, %v2736_v14  ;;  %v4209_v35 = vadd.f32 -8.0, %v4145_v34  ;;  %v4212_v63 = vsub.f32 10.0, %v4145_v34 }
 0x1c9   : > { %v2740_v38 = vsel %vm1577_vm2, 1.0, %v5072_v12  ;;  %vm1589_vm9 = vmxor %vm1485_vm0, %vm3277_vm6  ;;  %v1921_v0 = vmul.f32 0.5, %v2772_v2  ;;  %v1929_v52 = vmul.f32 0.5, %v4178_v51  ;;  %v1941_v1 = vmul.f32 0.5, %v4175_v45 }
 0x1ca   : > { %vm1593_vm15 = vmand %vm1481_vm10, %vm1589_vm9  ;;  %v4216_v57 = vadd.f32 %v1733_v24, %v1725_v39  ;;  %v1753_v44 = vmul.f32 %v2740_v38, %v4178_v51  ;;  %v1765_v9 = vmul.f32 %v4185_v13, %v2740_v38  ;;  %v1949_v62 = vmul.f32 0.5, %v1769_v22 }
 0x1cb   : > { %v2744_v61 = vsel %vm1593_vm15, 1.0, %v5072_v12  ;;  %vm1605_vm7 = vmxor %vm1489_vm13, %vm3277_vm6  ;;  %v2001_v3 = vmul.f32 0.5, %v4189_v55  ;;  %v2009_v58 = vmul.f32 0.5, %v4199_v50  ;;  %v2021_v49 = vmul.f32 0.5, %v4206_v15 }
 0x1cc   : > { %vm1609_vm10 = vmand %vm1485_vm0, %vm1605_vm7  ;;  %v1757_v17 = vadd.f32 %v1753_v44, %v1745_v29  ;;  %v1773_v53 = vmul.f32 %v2744_v61, %v1769_v22  ;;  %v1925_v31 = vmul.f32 %v1921_v0, %v4216_v57  ;;  %v2029_v37 = vmul.f32 0.5, %v4212_v63 }
 0x1cd   : > { %v3163_v59 = vpop.eup %3162  ;;  %v2748_v20 = vsel %vm1609_vm10, 1.0, %v5072_v12  ;;  %vm1621_vm5 = vmxor %vm1493_vm8, %vm3277_vm6  ;;  %v2101_v33 = vmul.f32 0.33333334, %v2772_v2  ;;  %v2109_v23 = vmul.f32 0.33333334, %v1769_v22  ;;  %vm5074_vm9 = vcmp.ge.f32.partialorder %v4145_v34, 1.0 }
 0x1ce   : > { %v1437_v10 = vadd.f32 1.0, %v3163_v59  ;;  %vm1625_vm0 = vmand %vm1489_vm13, %vm1621_vm5  ;;  %v4239_v41 = vadd.f32 %v1773_v53, %v1765_v9  ;;  %v1805_v54 = vmul.f32 %v4189_v55, %v2748_v20  ;;  %v1933_v46 = vmul.f32 %v1929_v52, %v1757_v17 }
 0x1cf   : > { %v3165_v56 = vpop.eup %3164  ;;  %v2752_v27 = vsel %vm1625_vm0, 1.0, %v5072_v12  ;;  %vm1637_vm1 = vmxor %vm1497_vm14, %vm3277_vm6  ;;  %v1945_v19 = vmul.f32 %v1941_v1, %v1757_v17  ;;  %v2768_v40 = vadd.f32 -1.0, %v4145_v34  ;;  %v1709_v39 = vsub.f32 3.0, %v4145_v34 }
 0x1d0   : > { %3166 = vrcp.f32 %v1437_v10  ;;  %v1436_v21 = vadd.f32 1.0, %v3165_v56  ;;  %vm1641_vm13 = vmand %vm1493_vm8, %vm1637_vm1  ;;  %v1813_v16 = vmul.f32 %v2752_v27, %v4196_v26  ;;  %v1825_v18 = vmul.f32 %v4206_v15, %v2752_v27 }
 0x1d1   : > { %v2756_v36 = vsel %vm1641_vm13, 1.0, %v5072_v12  ;;  %vm1653_vm2 = vmxor %vm1501_vm4, %vm3277_vm6  ;;  %v1937_v28 = vadd.f32 %v1933_v46, %v1925_v31  ;;  %v1953_v60 = vmul.f32 %v1949_v62, %v4239_v41  ;;  %v2784_v24 = vadd.f32 -5.0, %v4145_v34 }
 0x1d2   : > { %3168 = vrcp.f32 %v1436_v21  ;;  %vm1657_vm15 = vmand %vm1497_vm14, %vm1653_vm2  ;;  %v1817_v32 = vadd.f32 %v1813_v16, %v1805_v54  ;;  %v1833_v4 = vmul.f32 %v2756_v36, %v4199_v50  ;;  %v1845_v7 = vmul.f32 %v4209_v35, %v2756_v36 }
 0x1d3   : > { %v4261_v25 = vsel %vm1657_vm15, 1.0, %v5072_v12  ;;  %v4263_v30 = vadd.f32 %v1953_v60, %v1945_v19  ;;  %v2105_v8 = vmul.f32 %v2101_v33, %v1937_v28  ;;  %vm1525_vm8 = vmxor %vm1469_vm3, %vm3277_vm6  ;;  %v4280_v29 = vsub.f32 7.0, %v4145_v34 }
 0x1d4   : > { %v1837_v6 = vadd.f32 %v1833_v4, %v1825_v18  ;;  %v1853_v11 = vmul.f32 %v4261_v25, %v4212_v63  ;;  %v2005_v2 = vmul.f32 %v2001_v3, %v1817_v32  ;;  %vm1529_vm14 = vmand %vm5074_vm9, %vm1525_vm8  ;;  %v2181_v52 = vmul.f32 0.33333334, %v4189_v55 }
 0x1d5   : > { %v2113_v14 = vmul.f32 %v2109_v23, %v4263_v30  ;;  %v4276_v22 = vsel %vm1529_vm14, 1.0, %v5072_v12  ;;  %v1713_v1 = vmul.f32 %v4164_v5, %v1709_v39  ;;  %v1785_v62 = vmul.f32 %v2784_v24, %v2744_v61 }
 0x1d6   : > { %v4282_v38 = vadd.f32 %v1853_v11, %v1845_v7  ;;  %v2013_v44 = vmul.f32 %v2009_v58, %v1837_v6  ;;  %v2025_v9 = vmul.f32 %v2021_v49, %v1837_v6  ;;  %v1705_v0 = vmul.f32 %v2768_v40, %v4276_v22 }
 0x1d7   : > { %v1793_v17 = vmul.f32 %v2748_v20, %v4280_v29  ;;  %v2189_v59 = vmul.f32 0.33333334, %v4212_v63  ;;  %v1901_v31 = vmul.f32 0.5, %v2768_v40  ;;  %v1909_v58 = vmul.f32 0.5, %v4172_v43 }
 0x1d8   : > { %v2017_v53 = vadd.f32 %v2013_v44, %v2005_v2  ;;  %v2033_v3 = vmul.f32 %v2029_v37, %v4282_v38  ;;  %v1717_v10 = vadd.f32 %v1713_v1, %v1705_v0  ;;  %v1981_v49 = vmul.f32 0.5, %v2784_v24  ;;  %v1421_v1 = vld [vmem:[#allocation2 + $0xe8] sm:$0xff] }
 0x1d9   : > { %v4290_v54 = vadd.f32 %v1793_v17, %v1785_v62  ;;  %v2117_v55 = vadd.f32 %v2113_v14, %v2105_v8  ;;  %v1989_v5 = vmul.f32 0.5, %v4196_v26  ;;  %v1889_v61 = vmul.f32 0.5, %v1709_v39 }
 0x1da   : > { %v4293_v46 = vadd.f32 %v2033_v3, %v2025_v9  ;;  %v2185_v56 = vmul.f32 %v2181_v52, %v2017_v53  ;;  %v1905_v20 = vmul.f32 %v1901_v31, %v1717_v10  ;;  %v1913_v27 = vmul.f32 %v1909_v58, %v4216_v57  ;;  %v1405_v3 = vld [vmem:[#allocation2 + $0x68] sm:$0xff] }
 0x1db   : > { %v1985_v37 = vmul.f32 %v1981_v49, %v4290_v54  ;;  %v1993_v19 = vmul.f32 %v1989_v5, %v1817_v32  ;;  %v2069_v33 = vmul.f32 0.33333334, %v4172_v43  ;;  %v2089_v23 = vmul.f32 0.33333334, %v4178_v51  ;;  %v1420_v49 = vld [vmem:[#allocation2 + $0xe0] sm:$0xff] }
 0x1dc   : > { %v2193_v63 = vmul.f32 %v2189_v59, %v4293_v46  ;;  %v1917_v16 = vadd.f32 %v1913_v27, %v1905_v20  ;;  %v2081_v18 = vmul.f32 0.33333334, %v2768_v40  ;;  %v2149_v36 = vmul.f32 0.33333334, %v4196_v26  ;;  %v1404_v20 = vld [vmem:[#allocation2 + $0x60] sm:$0xff] }
 0x1dd   : > { %v3167_v21 = vpop.eup %3166  ;;  %v2169_v60 = vmul.f32 0.33333334, %v4199_v50  ;;  %v1997_v7 = vadd.f32 %v1993_v19, %v1985_v37  ;;  %v2093_v8 = vmul.f32 %v2089_v23, %v1937_v28  ;;  %v2161_v57 = vmul.f32 0.33333334, %v2784_v24  ;;  %v1407_v50 = vld [vmem:[#allocation2 + $0x78] sm:$0xff]  ;;  %v1422_v28 = vld [vmem:[#allocation2 + $0xf0] sm:$0xff] }
 0x1de   : > { %v2197_v4 = vadd.f32 %v2193_v63, %v2185_v56  ;;  %v1449_v11 = vmul.f32 %v3167_v21, %v4139_v42  ;;  %v2085_v2 = vmul.f32 %v2081_v18, %v1917_v16  ;;  %v4304_v39 = vmul.f32 %v1889_v61, %v1717_v10  ;;  %v1406_v24 = vld [vmem:[#allocation2 + $0x70] sm:$0xff] }
 0x1df   : > { %v3169_v6 = vpop.eup %3168  ;;  %v2173_v32 = vmul.f32 %v2169_v60, %v2017_v53  ;;  %v4307_v14 = vmul.f32 %v2149_v36, %v1997_v7  ;;  %v2165_v40 = vmul.f32 %v2161_v57, %v1997_v7  ;;  %v4309_v44 = vmul.f32 %v2069_v33, %v1917_v16  ;;  %v1419_v33 = vld [vmem:[#allocation2 + $0xd8] sm:$0xff]  ;;  %v1418_v57 = vld [vmem:[#allocation2 + $0xd0] sm:$0xff] }
 0x1e0   : > { %5082 = vst [vmem:[#allocation8_spill] sm:$0xff] %v4304_v39  ;;  %v1448_v43 = vmul.f32 %v3169_v6, %v4143_v47  ;;  %v3091_v51 = vpack.i.bf16 %v2117_v55, %v2197_v4  ;;  %v2097_v26 = vadd.f32 %v2093_v8, %v2085_v2  ;;  %vm1468_vm3 = vcmp.ge.f32.partialorder %v4153_v48, 2.0  ;;  %v1423_v47 = vld [vmem:[#allocation2 + $0xf8] sm:$0xff] }
 0x1e1   : > { %5083 = vst [vmem:[#allocation9_spill] sm:$0xff] %v4309_v44  ;;  %vm1472_vm7 = vcmp.ge.f32.partialorder %v4153_v48, 3.0  ;;  %v2177_v42 = vadd.f32 %v2173_v32, %v2165_v40  ;;  %vm1476_vm10 = vcmp.ge.f32.partialorder %v4153_v48, 4.0  ;;  %vm1480_vm0 = vcmp.ge.f32.partialorder %v4153_v48, 5.0  ;;  %2839 = vmatprep.subr.mxu1 %v1423_v47  ;;  %v1403_v36 = vld [vmem:[#allocation2 + $0x58] sm:$0xff]  ;;  %v1417_v47 = vld [vmem:[#allocation2 + $0xc8] sm:$0xff] }
 0x1e2   : > { %3092 = vrot.lane.b32.xlu0 %v3091_v51, %s3282_s23  ;;  %vm1540_vm5 = vmxor %vm1472_vm7, %vm3277_vm6  ;;  %2947 = vmatprep.mubr.msk.f32.mxu0 %vm5075_vm12, %v1448_v43  ;;  %vm1484_vm1 = vcmp.ge.f32.partialorder %v4153_v48, 6.0  ;;  %vm1488_vm13 = vcmp.ge.f32.partialorder %v4153_v48, 7.0  ;;  %vm1492_vm2 = vcmp.ge.f32.partialorder %v4153_v48, 8.0  ;;  %vm1496_vm8 = vcmp.ge.f32.partialorder %v4153_v48, 9.0  ;;  %v1402_v43 = vld [vmem:[#allocation2 + $0x50] sm:$0xff] }
 0x1e3   : > { %vm1544_vm15 = vmand %vm1468_vm3, %vm1540_vm5  ;;  %2948 = vmatmul.mubr.msk.f32.vlgmr.msra.gmra.mxu0 %vm5075_vm12, %v1449_v11  ;;  %v3086_v9 = vpack.i.bf16 %v2097_v26, %v2177_v42  ;;  %v4334_v52 = vadd.f32 -2.0, %v4153_v48  ;;  %2840 = vmatpush3.msra.mxu1 %v1407_v50  ;;  %vm1500_vm5 = vcmp.ge.f32.partialorder %v4153_v48, 10.0  ;;  %v4340_v62 = vsub.f32 4.0, %v4153_v48 }
 0x1e4   : > { %v4328_v0 = vsel %vm1544_vm15, 1.0, %v5072_v12  ;;  %vm1556_vm14 = vmxor %vm1476_vm10, %vm3277_vm6  ;;  %v4343_v17 = vadd.f32 -3.0, %v4153_v48  ;;  %v4346_v53 = vsub.f32 5.0, %v4153_v48  ;;  %2841 = vmatprep.subr.mxu1 %v1422_v28  ;;  %v4356_v10 = vadd.f32 -4.0, %v4153_v48 }
 0x1e5   : > { %vm1560_vm11 = vmand %vm1472_vm7, %vm1556_vm14  ;;  %3087 = vrot.lane.b32.xlu1 %v3086_v9, %s3281_s30  ;;  %v1724_v31 = vmul.f32 %v4334_v52, %v4328_v0  ;;  %v1768_v58 = vsub.f32 6.0, %v4153_v48  ;;  %2842 = vmatpush3.msra.mxu1 %v1406_v24  ;;  %v2787_v5 = vadd.f32 -6.0, %v4153_v48  ;;  %v4365_v61 = vsub.f32 8.0, %v4153_v48 }
 0x1e6   : > { %v2735_v59 = vsel %vm1560_vm11, 1.0, %v5072_v12  ;;  %vm1572_vm15 = vmxor %vm1480_vm0, %vm3277_vm6  ;;  %2843 = vmatprep.subr.mxu1 %v1421_v1  ;;  %v4372_v37 = vadd.f32 -7.0, %v4153_v48  ;;  %v4375_v63 = vsub.f32 9.0, %v4153_v48  ;;  %v4378_v19 = vadd.f32 -8.0, %v4153_v48  ;;  %v1401_v1 = vld [vmem:[#allocation2 + $0x48] sm:$0xff] }
 0x1e7   : > { %vm1576_vm7 = vmand %vm1476_vm10, %vm1572_vm15  ;;  %v1732_v55 = vmul.f32 %v2735_v59, %v4340_v62  ;;  %v1744_v56 = vmul.f32 %v4343_v17, %v2735_v59  ;;  %2844 = vmatpush3.msra.mxu1 %v1405_v3  ;;  %v1920_v18 = vmul.f32 0.5, %v4334_v52  ;;  %v4394_v4 = vsub.f32 10.0, %v4153_v48  ;;  %v1416_v3 = vld [vmem:[#allocation2 + $0xc0] sm:$0xff] }
 0x1e8   : > { %v2739_v27 = vsel %vm1576_vm7, 1.0, %v5072_v12  ;;  %vm1588_vm11 = vmxor %vm1484_vm1, %vm3277_vm6  ;;  %2845 = vmatprep.subr.mxu1 %v1420_v49  ;;  %v1928_v7 = vmul.f32 0.5, %v4346_v53  ;;  %v1940_v8 = vmul.f32 0.5, %v4343_v17  ;;  %v1948_v32 = vmul.f32 0.5, %v1768_v58 }
 0x1e9   : > { %vm1592_vm10 = vmand %vm1480_vm0, %vm1588_vm11  ;;  %v4382_v23 = vadd.f32 %v1732_v55, %v1724_v31  ;;  %v1752_v21 = vmul.f32 %v2739_v27, %v4346_v53  ;;  %v1764_v16 = vmul.f32 %v4356_v10, %v2739_v27  ;;  %2846 = vmatpush3.msra.mxu1 %v1404_v20  ;;  %v2000_v40 = vmul.f32 0.5, %v2787_v5 }
 0x1ea   : > { %v4388_v60 = vsel %vm1592_vm10, 1.0, %v5072_v12  ;;  %vm1604_vm14 = vmxor %vm1488_vm13, %vm3277_vm6  ;;  %2847 = vmatprep.subr.mxu1 %v1419_v33  ;;  %v2008_v26 = vmul.f32 0.5, %v4375_v63  ;;  %v2020_v42 = vmul.f32 0.5, %v4372_v37  ;;  %v2028_v31 = vmul.f32 0.5, %v4394_v4 }
 0x1eb   : > { %vm1608_vm0 = vmand %vm1484_vm1, %vm1604_vm14  ;;  %v1756_v6 = vadd.f32 %v1752_v21, %v1744_v56  ;;  %v1772_v11 = vmul.f32 %v4388_v60, %v1768_v58  ;;  %v1924_v2 = vmul.f32 %v1920_v18, %v4382_v23  ;;  %2848 = vmatpush3.msra.mxu1 %v1403_v36  ;;  %v2100_v49 = vmul.f32 0.33333334, %v4334_v52  ;;  %v1400_v21 = vld [vmem:[#allocation2 + $0x40] sm:$0xff]  ;;  %v1415_v18 = vld [vmem:[#allocation2 + $0xb8] sm:$0xff] }
 0x1ec   : > { %v4403_v51 = vsel %vm1608_vm0, 1.0, %v5072_v12  ;;  %vm1620_vm15 = vmxor %vm1492_vm2, %vm3277_vm6  ;;  %2849 = vmatprep.subr.mxu1 %v1418_v57  ;;  %v2108_v55 = vmul.f32 0.33333334, %v1768_v58  ;;  %v2180_v52 = vmul.f32 0.33333334, %v2787_v5  ;;  %vm1464_vm10 = vcmp.ge.f32.partialorder %v4153_v48, 1.0 }
 0x1ed   : > { %vm1624_vm1 = vmand %vm1488_vm13, %vm1620_vm15  ;;  %v4412_v50 = vadd.f32 %v1772_v11, %v1764_v16  ;;  %v1804_v28 = vmul.f32 %v2787_v5, %v4403_v51  ;;  %v1932_v24 = vmul.f32 %v1928_v7, %v1756_v6  ;;  %v1944_v9 = vmul.f32 %v1940_v8, %v1756_v6  ;;  %2850 = vmatpush3.msra.mxu1 %v1402_v43  ;;  %v1399_v6 = vld [vmem:[#allocation2 + $0x38] sm:$0xff]  ;;  %v1414_v43 = vld [vmem:[#allocation2 + $0xb0] sm:$0xff] }
 0x1ee   : > { %v2751_v59 = vsel %vm1624_vm1, 1.0, %v5072_v12  ;;  %vm1636_vm7 = vmxor %vm1496_vm8, %vm3277_vm6  ;;  %2851 = vmatprep.subr.mxu1 %v1417_v47  ;;  %v2767_v58 = vadd.f32 -1.0, %v4153_v48 }
 0x1ef   : > { %vm1640_vm13 = vmand %vm1492_vm2, %vm1636_vm7  ;;  %v1812_v56 = vmul.f32 %v2751_v59, %v4365_v61  ;;  %v1824_v20 = vmul.f32 %v4372_v37, %v2751_v59  ;;  %v4425_v27 = vadd.f32 %v1932_v24, %v1924_v2  ;;  %v1952_v33 = vmul.f32 %v1948_v32, %v4412_v50  ;;  %2852 = vmatpush3.msra.mxu1 %v1401_v1  ;;  %v1398_v1 = vld [vmem:[#allocation2 + $0x30] sm:$0xff] }
 0x1f0   : > { %v2755_v16 = vsel %vm1640_vm13, 1.0, %v5072_v12  ;;  %vm1652_vm11 = vmxor %vm1500_vm5, %vm3277_vm6  ;;  %2853 = vmatprep.subr.mxu1 %v1416_v3  ;;  %v1708_v2 = vsub.f32 3.0, %v4153_v48  ;;  %v2783_v32 = vadd.f32 -5.0, %v4153_v48 }
 0x1f1   : > { %vm1656_vm2 = vmand %vm1496_vm8, %vm1652_vm11  ;;  %v1816_v36 = vadd.f32 %v1812_v56, %v1804_v28  ;;  %v1832_v7 = vmul.f32 %v2755_v16, %v4375_v63  ;;  %v1844_v8 = vmul.f32 %v4378_v19, %v2755_v16  ;;  %v4438_v57 = vadd.f32 %v1952_v33, %v1944_v9  ;;  %2854 = vmatpush3.msra.mxu1 %v1400_v21  ;;  %v1397_v16 = vld [vmem:[#allocation2 + $0x28] sm:$0xff] }
 0x1f2   : > { %v4441_v5 = vsel %vm1656_vm2, 1.0, %v5072_v12  ;;  %v2104_v11 = vmul.f32 %v2100_v49, %v4425_v27  ;;  %vm1524_vm14 = vmxor %vm1468_vm3, %vm3277_vm6  ;;  %2855 = vmatprep.subr.mxu1 %v1415_v18  ;;  %v1712_v59 = vmul.f32 %v4328_v0, %v1708_v2  ;;  %v1784_v49 = vmul.f32 %v2783_v32, %v4388_v60 }
 0x1f3   : > { %v1836_v47 = vadd.f32 %v1832_v7, %v1824_v20  ;;  %v1852_v28 = vmul.f32 %v4441_v5, %v4394_v4  ;;  %v2004_v24 = vmul.f32 %v2000_v40, %v1816_v36  ;;  %v2112_v9 = vmul.f32 %v2108_v55, %v4438_v57  ;;  %vm1528_vm8 = vmand %vm1464_vm10, %vm1524_vm14  ;;  %2856 = vmatpush3.msra.mxu1 %v1399_v6  ;;  %v1413_v20 = vld [vmem:[#allocation2 + $0xa8] sm:$0xff] }
 0x1f4   : > { %v4455_v3 = vsel %vm1528_vm8, 1.0, %v5072_v12  ;;  %v4460_v56 = vsub.f32 7.0, %v4153_v48  ;;  %v2188_v21 = vmul.f32 0.33333334, %v4394_v4  ;;  %2857 = vmatprep.subr.mxu1 %v1414_v43  ;;  %v1900_v60 = vmul.f32 0.5, %v2767_v58  ;;  %v1412_v12 = vld [vmem:[#allocation2 + $0xa0] sm:$0xff] }
 0x1f5   : > { %v4462_v40 = vadd.f32 %v1852_v28, %v1844_v8  ;;  %v2012_v55 = vmul.f32 %v2008_v26, %v1836_v47  ;;  %v2024_v33 = vmul.f32 %v2020_v42, %v1836_v47  ;;  %v2116_v18 = vadd.f32 %v2112_v9, %v2104_v11  ;;  %2858 = vmatpush3.msra.mxu1 %v1398_v1  ;;  %v1396_v42 = vld [vmem:[#allocation2 + $0x20] sm:$0xff]  ;;  %v1395_v1 = vld [vmem:[#allocation2 + $0x18] sm:$0xff] }
 0x1f6   : > { %v1704_v7 = vmul.f32 %v2767_v58, %v4455_v3  ;;  %v1792_v0 = vmul.f32 %v4403_v51, %v4460_v56  ;;  %v1908_v8 = vmul.f32 0.5, %v4340_v62  ;;  %v1980_v26 = vmul.f32 0.5, %v2783_v32  ;;  %2859 = vmatprep.subr.mxu1 %v1413_v20 }
 0x1f7   : > { %v2016_v44 = vadd.f32 %v2012_v55, %v2004_v24  ;;  %v2032_v6 = vmul.f32 %v2028_v31, %v4462_v40  ;;  %v1988_v11 = vmul.f32 0.5, %v4365_v61  ;;  %v2068_v47 = vmul.f32 0.33333334, %v4340_v62  ;;  %2860 = vmatpush3.msra.mxu1 %v1397_v16  ;;  %v1411_v31 = vld [vmem:[#allocation2 + $0x98] sm:$0xff] }
 0x1f8   : > { %v1716_v4 = vadd.f32 %v1712_v59, %v1704_v7  ;;  %v4470_v43 = vadd.f32 %v1792_v0, %v1784_v49  ;;  %v1912_v24 = vmul.f32 %v1908_v8, %v4382_v23  ;;  %v2080_v9 = vmul.f32 0.33333334, %v2767_v58  ;;  %2861 = vmatprep.subr.mxu1 %v1412_v12  ;;  %v1410_v7 = vld [vmem:[#allocation2 + $0x90] sm:$0xff] }
 0x1f9   : > { %v4474_v51 = vadd.f32 %v2032_v6, %v2024_v33  ;;  %v2184_v28 = vmul.f32 %v2180_v52, %v2016_v44  ;;  %v1992_v59 = vmul.f32 %v1988_v11, %v1816_v36  ;;  %v2088_v49 = vmul.f32 0.33333334, %v4346_v53  ;;  %2862 = vmatpush3.msra.mxu1 %v1396_v42  ;;  %v1394_v23 = vld [vmem:[#allocation2 + $0x10] sm:$0xff] }
 0x1fa   : > { %v1904_v55 = vmul.f32 %v1900_v60, %v1716_v4  ;;  %v1984_v20 = vmul.f32 %v1980_v26, %v4470_v43  ;;  %v1888_v16 = vmul.f32 0.5, %v1708_v2  ;;  %v2148_v33 = vmul.f32 0.33333334, %v4365_v61  ;;  %2863 = vmatprep.subr.mxu1 %v1411_v31 }
 0x1fb   : > { %v2192_v62 = vmul.f32 %v2188_v21, %v4474_v51  ;;  %v2168_v52 = vmul.f32 0.33333334, %v4375_v63  ;;  %v2092_v0 = vmul.f32 %v2088_v49, %v4425_v27  ;;  %v2160_v60 = vmul.f32 0.33333334, %v2783_v32  ;;  %2864 = vmatpush3.msra.mxu1 %v1395_v1 }
 0x1fc   : > { %v1916_v12 = vadd.f32 %v1912_v24, %v1904_v55  ;;  %v1996_v58 = vadd.f32 %v1992_v59, %v1984_v20  ;;  %v4483_v53 = vmul.f32 %v1888_v16, %v1716_v4  ;;  %2865 = vmatprep.subr.mxu1 %v1410_v7  ;;  %vm1505_vm3 = vcmp.ge.f32.partialorder %v4145_v34, 11.0 }
 0x1fd   : > { %v2196_v36 = vadd.f32 %v2192_v62, %v2184_v28  ;;  %v2172_v6 = vmul.f32 %v2168_v52, %v2016_v44  ;;  %2866 = vmatpush3.msra.mxu1 %v1394_v23  ;;  %v2800_v26 = vadd.f32 -9.0, %v4145_v34  ;;  %v1869_v27 = vsub.f32 11.0, %v4145_v34  ;;  %vm1669_vm0 = vmxor %vm1505_vm3, %vm3277_vm6  ;;  %v2938_v62 = vpop.f32.mrf.mxu1 }
 0x1fe   : > { %v2084_v8 = vmul.f32 %v2080_v9, %v1916_v12  ;;  %v4485_v21 = vmul.f32 %v2148_v33, %v1996_v58  ;;  %v2164_v2 = vmul.f32 %v2160_v60, %v1996_v58  ;;  %v4487_v61 = vmul.f32 %v2068_v47, %v1916_v12  ;;  %vm1673_vm15 = vmand %vm1501_vm4, %vm1669_vm0 }
 0x1ff   : > { %v3101_v63 = vpack.i.bf16 %v2116_v18, %v2196_v36  ;;  %v1961_v44 = vmul.f32 0.5, %v4185_v13  ;;  %v1969_v4 = vmul.f32 0.5, %v4280_v29  ;;  %v1865_v18 = vmul.f32 %v2800_v26, %v4261_v25 }
 0x200   : > { %5084 = vst [vmem:[#allocation10_spill] sm:$0xff] %v4487_v61  ;;  %v2096_v32 = vadd.f32 %v2092_v0, %v2084_v8  ;;  %v2176_v42 = vadd.f32 %v2172_v6, %v2164_v2  ;;  %v2041_v11 = vmul.f32 0.5, %v4209_v35  ;;  %v2121_v47 = vmul.f32 0.33333334, %v4175_v45  ;;  %v1379_v6 = vpop.f32.mrf.mxu1 }
 0x201   : > { %3102 = vrot.lane.b32.xlu1 %v3101_v63, %s3282_s23  ;;  %v5085_v24 = vmov 0.0   ;;  %v1965_v31 = vmul.f32 %v1961_v44, %v4239_v41  ;;  %v1973_v1 = vmul.f32 %v1969_v4, %v4290_v54  ;;  %v2049_v59 = vmul.f32 0.5, %v1869_v27  ;;  %v1409_v44 = vld [vmem:[#allocation2 + $0x88] sm:$0xff] }
 0x202   : > { %v3096_v28 = vpack.i.bf16 %v2096_v32, %v2176_v42  ;;  %v2764_v9 = vsel %vm1673_vm15, 1.0, %v5085_v24  ;;  %v2045_v20 = vmul.f32 %v2041_v11, %v4282_v38  ;;  %v2125_v49 = vmul.f32 %v2121_v47, %v4263_v30  ;;  %2867 = vmatprep.subr.mxu1 %v1409_v44  ;;  %v1393_v11 = vld [vmem:[#allocation2 + $0x8] sm:$0xff]  ;;  %v1408_v47 = vld [vmem:[#allocation2 + $0x80] sm:$0xff] }
 0x203   : > { %v1873_v55 = vmul.f32 %v2764_v9, %v1869_v27  ;;  %v1977_v25 = vadd.f32 %v1973_v1, %v1965_v31  ;;  %v2129_v35 = vmul.f32 0.33333334, %v4280_v29  ;;  %v2141_v45 = vmul.f32 0.33333334, %v4185_v13  ;;  %2868 = vmatpush3.msra.mxu1 %v1393_v11 }
 0x204   : > { %3097 = vrot.lane.b32.xlu0 %v3096_v28, %s3281_s30  ;;  %v2201_v7 = vmul.f32 0.33333334, %v4206_v15  ;;  %v2209_v41 = vmul.f32 0.33333334, %v1869_v27  ;;  %vm1504_vm4 = vcmp.ge.f32.partialorder %v4153_v48, 11.0  ;;  %v2799_v54 = vadd.f32 -9.0, %v4153_v48  ;;  %2869 = vmatprep.subr.mxu1 %v1408_v47 }
 0x205   : > { %v1877_v16 = vadd.f32 %v1873_v55, %v1865_v18  ;;  %v2133_v38 = vmul.f32 %v2129_v35, %v1977_v25  ;;  %v4512_v33 = vmul.f32 %v2141_v45, %v1977_v25  ;;  %vm1668_vm1 = vmxor %vm1504_vm4, %vm3277_vm6  ;;  %v1868_v30 = vsub.f32 11.0, %v4153_v48  ;;  %v1392_v28 = vld [vmem:[#allocation2] sm:$0xff] }
 0x206   : > { %v1960_v29 = vmul.f32 0.5, %v4356_v10  ;;  %v2928_v52 = vpop.f32.mrf.mxu0  ;;  %v2205_v15 = vmul.f32 %v2201_v7, %v4293_v46  ;;  %vm1672_vm7 = vmand %vm1500_vm5, %vm1668_vm1  ;;  %v1864_v23 = vmul.f32 %v2799_v54, %v4441_v5  ;;  %v1968_v12 = vmul.f32 0.5, %v4460_v56  ;;  %2870 = vmatpush3.msra.mxu1 %v1392_v28 }
 0x207   : > { %v2053_v13 = vmul.f32 %v2049_v59, %v1877_v16  ;;  %v4522_v58 = vadd.f32 %v2938_v62, %v2928_v52  ;;  %v2763_v0 = vsel %vm1672_vm7, 1.0, %v5085_v24  ;;  %v2040_v36 = vmul.f32 0.5, %v4378_v19 }
 0x208   : > { %v1964_v60 = vmul.f32 %v1960_v29, %v4412_v50  ;;  %v1282_v8 = vpop.f32.mrf.mxu0  ;;  %v2137_v63 = vadd.f32 %v2133_v38, %v2125_v49  ;;  %v1872_v46 = vmul.f32 %v2763_v0, %v1868_v30  ;;  %v1972_v26 = vmul.f32 %v1968_v12, %v4470_v43 }
 0x209   : > { %v2057_v2 = vadd.f32 %v2053_v13, %v2045_v20  ;;  %v2718_v27 = vmul.f32 -1.442695, %v4522_v58  ;;  %v4529_v5 = vadd.f32 %v1379_v6, %v1282_v8  ;;  %v2044_v32 = vmul.f32 %v2040_v36, %v4462_v40 }
 0x20a   : > { %v2048_v42 = vmul.f32 0.5, %v1868_v30  ;;  %v1876_v18 = vadd.f32 %v1872_v46, %v1864_v23  ;;  %v1976_v50 = vadd.f32 %v1972_v26, %v1964_v60  ;;  %v2120_v19 = vmul.f32 0.33333334, %v4343_v17 }
 0x20b   : > { %v2213_v4 = vmul.f32 %v2209_v41, %v2057_v2  ;;  %3170 = vpow2.f32 %v2718_v27  ;;  %v2722_v43 = vadd.f32 2.2, %v4522_v58  ;;  %v2717_v9 = vmul.f32 -1.442695, %v4529_v5 }
 0x20c   : > { %v2721_v31 = vadd.f32 2.2, %v4529_v5  ;;  %v2052_v1 = vmul.f32 %v2048_v42, %v1876_v18  ;;  %v2124_v55 = vmul.f32 %v2120_v19, %v4438_v57  ;;  %v2128_v20 = vmul.f32 0.33333334, %v4460_v56 }
 0x20d   : > { %v2217_v40 = vadd.f32 %v2213_v4, %v2205_v15  ;;  %3172 = vpow2.f32 %v2717_v9  ;;  %v2140_v59 = vmul.f32 0.33333334, %v4356_v10  ;;  %v2200_v49 = vmul.f32 0.33333334, %v4372_v37 }
 0x20e   : > { %v4538_v17 = vmul.f32 2.5, %v2721_v31  ;;  %v2056_v35 = vadd.f32 %v2052_v1, %v2044_v32  ;;  %v2132_v45 = vmul.f32 %v2128_v20, %v1976_v50  ;;  %v2208_v7 = vmul.f32 0.33333334, %v1868_v30 }
 0x20f   : > { %v3106_v25 = vpack.i.bf16 %v2137_v63, %v2217_v40  ;;  %v4542_v62 = vmul.f32 %v2140_v59, %v1976_v50  ;;  %v2204_v16 = vmul.f32 %v2200_v49, %v4474_v51  ;;  %v4552_v10 = vmul.f32 2.5, %v2722_v43 }
 0x210   : > { %vm1470_vm5 = vcmp.ge.f32.partialorder %v4538_v17, 2.0  ;;  %vm1474_vm13 = vcmp.ge.f32.partialorder %v4538_v17, 3.0  ;;  %v2136_v57 = vadd.f32 %v2132_v45, %v2124_v55  ;;  %v2212_v56 = vmul.f32 %v2208_v7, %v2056_v35 }
 0x211   : > { %3107 = vrot.lane.b32.xlu1 %v3106_v25, %s3284_s13  ;;  %vm1478_vm11 = vcmp.ge.f32.partialorder %v4538_v17, 4.0  ;;  %vm1542_vm2 = vmxor %vm1474_vm13, %vm3277_vm6  ;;  %vm1482_vm14 = vcmp.ge.f32.partialorder %v4538_v17, 5.0  ;;  %vm1486_vm8 = vcmp.ge.f32.partialorder %v4538_v17, 6.0  ;;  %vm1490_vm3 = vcmp.ge.f32.partialorder %v4538_v17, 7.0 }
 0x212   : > { %vm1546_vm0 = vmand %vm1470_vm5, %vm1542_vm2  ;;  %v2216_v37 = vadd.f32 %v2212_v56, %v2204_v16  ;;  %vm1494_vm15 = vcmp.ge.f32.partialorder %v4538_v17, 8.0  ;;  %v2773_v41 = vadd.f32 -2.0, %v4538_v17  ;;  %vm1498_vm1 = vcmp.ge.f32.partialorder %v4538_v17, 9.0 }
 0x213   : > { %v4561_v51 = vsel %vm1546_vm0, 1.0, %v5085_v24  ;;  %vm1558_vm4 = vmxor %vm1478_vm11, %vm3277_vm6  ;;  %vm1502_vm7 = vcmp.ge.f32.partialorder %v4538_v17, 10.0  ;;  %v4572_v54 = vsub.f32 4.0, %v4538_v17  ;;  %v4575_v38 = vadd.f32 -3.0, %v4538_v17 }
 0x214   : > { %vm1562_vm9 = vmand %vm1474_vm13, %vm1558_vm4  ;;  %v3111_v30 = vpack.i.bf16 %v2136_v57, %v2216_v37  ;;  %v1726_v52 = vmul.f32 %v2773_v41, %v4561_v51  ;;  %v4583_v13 = vsub.f32 5.0, %v4538_v17  ;;  %v4590_v12 = vadd.f32 -4.0, %v4538_v17 }
 0x215   : > { %v2737_v29 = vsel %vm1562_vm9, 1.0, %v5085_v24  ;;  %vm1574_vm2 = vmxor %vm1482_vm14, %vm3277_vm6  ;;  %v1770_v0 = vsub.f32 6.0, %v4538_v17  ;;  %v2789_v36 = vadd.f32 -6.0, %v4538_v17  ;;  %v4600_v6 = vsub.f32 8.0, %v4538_v17 }
 0x216   : > { %vm1578_vm13 = vmand %vm1478_vm11, %vm1574_vm2  ;;  %v1734_v15 = vmul.f32 %v2737_v29, %v4572_v54  ;;  %v1746_v23 = vmul.f32 %v4575_v38, %v2737_v29  ;;  %3112 = vrot.lane.b32.xlu0 %v3111_v30, %s3284_s13  ;;  %v4603_v8 = vadd.f32 -7.0, %v4538_v17  ;;  %v4612_v26 = vsub.f32 9.0, %v4538_v17 }
 0x217   : > { %v2741_v60 = vsel %vm1578_vm13, 1.0, %v5085_v24  ;;  %vm1590_vm9 = vmxor %vm1486_vm8, %vm3277_vm6  ;;  %v4621_v42 = vadd.f32 -8.0, %v4538_v17  ;;  %v1850_v44 = vsub.f32 10.0, %v4538_v17  ;;  %v1922_v4 = vmul.f32 0.5, %v2773_v41 }
 0x218   : > { %vm1594_vm11 = vmand %vm1482_vm14, %vm1590_vm9  ;;  %v4607_v2 = vadd.f32 %v1734_v15, %v1726_v52  ;;  %v1754_v63 = vmul.f32 %v2741_v60, %v4583_v13  ;;  %v1766_v46 = vmul.f32 %v4590_v12, %v2741_v60  ;;  %v3171_v27 = vpop.eup %3170  ;;  %v1930_v11 = vmul.f32 0.5, %v4583_v13 }
 0x219   : > { %v4615_v32 = vsel %vm1594_vm11, 1.0, %v5085_v24  ;;  %vm1606_vm0 = vmxor %vm1490_vm3, %vm3277_vm6  ;;  %v1439_v18 = vadd.f32 1.0, %v3171_v27  ;;  %v1942_v9 = vmul.f32 0.5, %v4575_v38  ;;  %v1950_v31 = vmul.f32 0.5, %v1770_v0 }
 0x21a   : > { %vm1610_vm14 = vmand %vm1486_vm8, %vm1606_vm0  ;;  %v1758_v50 = vadd.f32 %v1754_v63, %v1746_v23  ;;  %v1774_v19 = vmul.f32 %v4615_v32, %v1770_v0  ;;  %v3173_v47 = vpop.eup %3172  ;;  %v1926_v43 = vmul.f32 %v1922_v4, %v4607_v2  ;;  %v2002_v25 = vmul.f32 0.5, %v2789_v36 }
 0x21b   : > { %v2749_v28 = vsel %vm1610_vm14, 1.0, %v5085_v24  ;;  %vm1622_vm4 = vmxor %vm1494_vm15, %vm3277_vm6  ;;  %3174 = vrcp.f32 %v1439_v18  ;;  %v1438_v40 = vadd.f32 1.0, %v3173_v47  ;;  %v2010_v56 = vmul.f32 0.5, %v4612_v26 }
 0x21c   : > { %vm1626_vm8 = vmand %vm1490_vm3, %vm1622_vm4  ;;  %v4636_v1 = vadd.f32 %v1774_v19, %v1766_v46  ;;  %v1806_v55 = vmul.f32 %v2789_v36, %v2749_v28  ;;  %v1934_v59 = vmul.f32 %v1930_v11, %v1758_v50  ;;  %v1946_v49 = vmul.f32 %v1942_v9, %v1758_v50 }
 0x21d   : > { %v2753_v20 = vsel %vm1626_vm8, 1.0, %v5085_v24  ;;  %vm1638_vm2 = vmxor %vm1498_vm1, %vm3277_vm6  ;;  %3176 = vrcp.f32 %v1438_v40  ;;  %v2102_v37 = vmul.f32 0.33333334, %v2773_v41  ;;  %v2022_v60 = vmul.f32 0.5, %v4603_v8 }
 0x21e   : > { %vm1642_vm13 = vmand %vm1494_vm15, %vm1638_vm2  ;;  %v1814_v35 = vmul.f32 %v2753_v20, %v4600_v6  ;;  %v1826_v45 = vmul.f32 %v4603_v8, %v2753_v20  ;;  %v1954_v7 = vmul.f32 %v1950_v31, %v4636_v1  ;;  %v1938_v57 = vadd.f32 %v1934_v59, %v1926_v43 }
 0x21f   : > { %v2757_v16 = vsel %vm1642_vm13, 1.0, %v5085_v24  ;;  %vm1654_vm3 = vmxor %vm1502_vm7, %vm3277_vm6  ;;  %v2030_v63 = vmul.f32 0.5, %v1850_v44  ;;  %v2110_v46 = vmul.f32 0.33333334, %v1770_v0  ;;  %v2182_v19 = vmul.f32 0.33333334, %v2789_v36 }
 0x220   : > { %vm1658_vm9 = vmand %vm1498_vm1, %vm1654_vm3  ;;  %v1818_v30 = vadd.f32 %v1814_v35, %v1806_v55  ;;  %v1834_v29 = vmul.f32 %v2757_v16, %v4612_v26  ;;  %v1846_v52 = vmul.f32 %v4621_v42, %v2757_v16  ;;  %v4656_v15 = vadd.f32 %v1954_v7, %v1946_v49 }
 0x221   : > { %v4659_v23 = vsel %vm1658_vm9, 1.0, %v5085_v24  ;;  %vm1526_vm15 = vmxor %vm1470_vm5, %vm3277_vm6  ;;  %v2106_v18 = vmul.f32 %v2102_v37, %v1938_v57  ;;  %vm5076_vm1 = vcmp.ge.f32.partialorder %v4538_v17, 1.0  ;;  %v2769_v11 = vadd.f32 -1.0, %v4538_v17 }
 0x222   : > { %v1838_v41 = vadd.f32 %v1834_v29, %v1826_v45  ;;  %v1854_v27 = vmul.f32 %v4659_v23, %v1850_v44  ;;  %v2006_v4 = vmul.f32 %v2002_v25, %v1818_v30  ;;  %v2114_v50 = vmul.f32 %v2110_v46, %v4656_v15  ;;  %vm1530_vm11 = vmand %vm5076_vm1, %vm1526_vm15 }
 0x223   : > { %v1710_v9 = vsub.f32 3.0, %v4538_v17  ;;  %v2190_v31 = vmul.f32 0.33333334, %v1850_v44  ;;  %v4675_v40 = vsel %vm1530_vm11, 1.0, %v5085_v24  ;;  %v2785_v55 = vadd.f32 -5.0, %v4538_v17 }
 0x224   : > { %v4669_v47 = vadd.f32 %v1854_v27, %v1846_v52  ;;  %v2014_v43 = vmul.f32 %v2010_v56, %v1838_v41  ;;  %v2026_v0 = vmul.f32 %v2022_v60, %v1838_v41  ;;  %v4679_v36 = vsub.f32 7.0, %v4538_v17 }
 0x225   : > { %v1706_v49 = vmul.f32 %v2769_v11, %v4675_v40  ;;  %v1714_v25 = vmul.f32 %v4561_v51, %v1710_v9  ;;  %v2118_v35 = vadd.f32 %v2114_v50, %v2106_v18  ;;  %v1786_v45 = vmul.f32 %v2785_v55, %v4615_v32 }
 0x226   : > { %v2018_v20 = vadd.f32 %v2014_v43, %v2006_v4  ;;  %v2034_v59 = vmul.f32 %v2030_v63, %v4669_v47  ;;  %v1794_v44 = vmul.f32 %v2749_v28, %v4679_v36  ;;  %v1902_v7 = vmul.f32 0.5, %v2769_v11 }
 0x227   : > { %v1718_v37 = vadd.f32 %v1714_v25, %v1706_v49  ;;  %v1910_v29 = vmul.f32 0.5, %v4572_v54  ;;  %v1890_v63 = vmul.f32 0.5, %v1710_v9  ;;  %v1982_v46 = vmul.f32 0.5, %v2785_v55 }
 0x228   : > { %v4686_v16 = vadd.f32 %v2034_v59, %v2026_v0  ;;  %v2186_v56 = vmul.f32 %v2182_v19, %v2018_v20  ;;  %v3175_v52 = vpop.eup %3174  ;;  %v4689_v60 = vadd.f32 %v1794_v44, %v1786_v45  ;;  %v1990_v41 = vmul.f32 0.5, %v4600_v6 }
 0x229   : > { %v1451_v51 = vmul.f32 %v3175_v52, %v4522_v58  ;;  %v1906_v27 = vmul.f32 %v1902_v7, %v1718_v37  ;;  %v1914_v28 = vmul.f32 %v1910_v29, %v4607_v2  ;;  %v2082_v19 = vmul.f32 0.33333334, %v2769_v11 }
 0x22a   : > { %v2194_v32 = vmul.f32 %v2190_v31, %v4686_v16  ;;  %v3177_v4 = vpop.eup %3176  ;;  %v1986_v18 = vmul.f32 %v1982_v46, %v4689_v60  ;;  %v1994_v50 = vmul.f32 %v1990_v41, %v1818_v30  ;;  %v2090_v43 = vmul.f32 0.33333334, %v4583_v13 }
 0x22b   : > { %v1450_v0 = vmul.f32 %v3177_v4, %v4529_v5  ;;  %v1918_v59 = vadd.f32 %v1914_v28, %v1906_v27  ;;  %v2150_v49 = vmul.f32 0.33333334, %v4600_v6  ;;  %v2162_v45 = vmul.f32 0.33333334, %v2785_v55 }
 0x22c   : > { %v2198_v9 = vadd.f32 %v2194_v32, %v2186_v56  ;;  %v1998_v25 = vadd.f32 %v1994_v50, %v1986_v18  ;;  %v2094_v58 = vmul.f32 %v2090_v43, %v1938_v57  ;;  %v2170_v31 = vmul.f32 0.33333334, %v4612_v26 }
 0x22d   : > { %v2070_v7 = vmul.f32 0.33333334, %v4572_v54  ;;  %v2086_v30 = vmul.f32 %v2082_v19, %v1918_v59  ;;  %2950 = vmatprep.mubr.msk.f32.mxu0 %vm5075_vm12, %v1450_v0  ;;  %v4705_v56 = vmul.f32 %v1890_v63, %v1718_v37  ;;  %vm1467_vm5 = vcmp.ge.f32.partialorder %v4552_v10, 1.0 }
 0x22e   : > { %v3121_v44 = vpack.i.bf16 %v2118_v35, %v2198_v9  ;;  %v4703_v13 = vmul.f32 %v2150_v49, %v1998_v25  ;;  %v2166_v5 = vmul.f32 %v2162_v45, %v1998_v25  ;;  %v2174_v11 = vmul.f32 %v2170_v31, %v2018_v20  ;;  %2951 = vmatmul.mubr.msk.f32.gmra.mxu0 %vm5075_vm12, %v1451_v51 }
 0x22f   : > { %5086 = vst [vmem:[#allocation11_spill] sm:$0xff] %v4705_v56  ;;  %v2098_v6 = vadd.f32 %v2094_v58, %v2086_v30  ;;  %v4709_v26 = vmul.f32 %v2070_v7, %v1918_v59  ;;  %vm1471_vm0 = vcmp.ge.f32.partialorder %v4552_v10, 2.0  ;;  %vm1475_vm14 = vcmp.ge.f32.partialorder %v4552_v10, 3.0 }
 0x230   : > { %3122 = vrot.lane.b32.xlu1 %v3121_v44, %s3282_s23  ;;  %v2178_v57 = vadd.f32 %v2174_v11, %v2166_v5  ;;  %vm1479_vm4 = vcmp.ge.f32.partialorder %v4552_v10, 4.0  ;;  %vm1527_vm8 = vmxor %vm1471_vm0, %vm3277_vm6  ;;  %vm1483_vm2 = vcmp.ge.f32.partialorder %v4552_v10, 5.0  ;;  %vm1487_vm13 = vcmp.ge.f32.partialorder %v4552_v10, 6.0 }
 0x231   : > { %5087 = vst [vmem:[#allocation12_spill] sm:$0xff] %v4709_v26  ;;  %vm1491_vm3 = vcmp.ge.f32.partialorder %v4552_v10, 7.0  ;;  %vm1495_vm9 = vcmp.ge.f32.partialorder %v4552_v10, 8.0  ;;  %vm1531_vm15 = vmand %vm1467_vm5, %vm1527_vm8  ;;  %v2770_v37 = vadd.f32 -1.0, %v4552_v10  ;;  %vm1499_vm12 = vcmp.ge.f32.partialorder %v4552_v10, 9.0 }
 0x232   : > { %v3116_v55 = vpack.i.bf16 %v2098_v6, %v2178_v57  ;;  %v4726_v20 = vsel %vm1531_vm15, 1.0, %v5085_v24  ;;  %vm1543_vm11 = vmxor %vm1475_vm14, %vm3277_vm6  ;;  %v1711_v29 = vsub.f32 3.0, %v4552_v10  ;;  %v4738_v52 = vadd.f32 -2.0, %v4552_v10 }
 0x233   : > { %vm1547_vm1 = vmand %vm1471_vm0, %vm1543_vm11  ;;  %v1731_v63 = vsub.f32 4.0, %v4552_v10  ;;  %v4742_v46 = vadd.f32 -3.0, %v4552_v10  ;;  %v1707_v51 = vmul.f32 %v2770_v37, %v4726_v20  ;;  %v1751_v32 = vsub.f32 5.0, %v4552_v10 }
 0x234   : > { %3117 = vrot.lane.b32.xlu0 %v3116_v55, %s3281_s30  ;;  %v2734_v41 = vsel %vm1547_vm1, 1.0, %v5085_v24  ;;  %vm1559_vm8 = vmxor %vm1479_vm4, %vm3277_vm6  ;;  %v2786_v27 = vadd.f32 -5.0, %v4552_v10  ;;  %v4756_v18 = vsub.f32 7.0, %v4552_v10  ;;  %v4759_v50 = vadd.f32 -6.0, %v4552_v10 }
 0x235   : > { %vm1563_vm0 = vmand %vm1475_vm14, %vm1559_vm8  ;;  %v1715_v28 = vmul.f32 %v2734_v41, %v1711_v29  ;;  %v1727_v4 = vmul.f32 %v4738_v52, %v2734_v41  ;;  %v1811_v43 = vsub.f32 8.0, %v4552_v10  ;;  %v4767_v0 = vadd.f32 -7.0, %v4552_v10 }
 0x236   : > { %v2738_v19 = vsel %vm1563_vm0, 1.0, %v5085_v24  ;;  %vm1575_vm1 = vmxor %vm1483_vm2, %vm3277_vm6  ;;  %v1831_v9 = vsub.f32 9.0, %v4552_v10  ;;  %v1891_v58 = vmul.f32 0.5, %v1711_v29  ;;  %v1903_v31 = vmul.f32 0.5, %v2770_v37 }
 0x237   : > { %vm1579_vm14 = vmand %vm1479_vm4, %vm1575_vm1  ;;  %v1719_v59 = vadd.f32 %v1715_v28, %v1707_v51  ;;  %v1735_v49 = vmul.f32 %v2738_v19, %v1731_v63  ;;  %v1747_v25 = vmul.f32 %v4742_v46, %v2738_v19  ;;  %v1911_v44 = vmul.f32 0.5, %v1731_v63 }
 0x238   : > { %v4774_v45 = vsel %vm1579_vm14, 1.0, %v5085_v24  ;;  %vm1591_vm15 = vmxor %vm1487_vm13, %vm3277_vm6  ;;  %v1923_v7 = vmul.f32 0.5, %v4738_v52  ;;  %v1931_v11 = vmul.f32 0.5, %v1751_v32  ;;  %v1983_v6 = vmul.f32 0.5, %v2786_v27 }
 0x239   : > { %vm1595_vm11 = vmand %vm1483_vm2, %vm1591_vm15  ;;  %v1739_v30 = vadd.f32 %v1735_v49, %v1727_v4  ;;  %v1755_v5 = vmul.f32 %v4774_v45, %v1751_v32  ;;  %v1907_v55 = vmul.f32 %v1903_v31, %v1719_v59  ;;  %v1991_v29 = vmul.f32 0.5, %v1811_v43 }
 0x23a   : > { %v4784_v57 = vsel %vm1595_vm11, 1.0, %v5085_v24  ;;  %vm1607_vm4 = vmxor %vm1491_vm3, %vm3277_vm6  ;;  %v2003_v41 = vmul.f32 0.5, %v4759_v50  ;;  %v2011_v54 = vmul.f32 0.5, %v1831_v9  ;;  %v2071_v31 = vmul.f32 0.33333334, %v1731_v63 }
 0x23b   : > { %vm1611_vm8 = vmand %vm1487_vm13, %vm1607_vm4  ;;  %v4792_v51 = vadd.f32 %v1755_v5, %v1747_v25  ;;  %v1787_v28 = vmul.f32 %v2786_v27, %v4784_v57  ;;  %v1915_v4 = vmul.f32 %v1911_v44, %v1739_v30  ;;  %v1927_v19 = vmul.f32 %v1923_v7, %v1739_v30 }
 0x23c   : > { %v2750_v49 = vsel %vm1611_vm8, 1.0, %v5085_v24  ;;  %vm1623_vm2 = vmxor %vm1495_vm9, %vm3277_vm6  ;;  %v2083_v2 = vmul.f32 0.33333334, %v2770_v37  ;;  %v2091_v30 = vmul.f32 0.33333334, %v1751_v32  ;;  %vm1463_vm1 = vcmp.ge.f32.partialorder %v4552_v10, 0.0 }
 0x23d   : > { %vm1627_vm0 = vmand %vm1491_vm3, %vm1623_vm2  ;;  %v1795_v35 = vmul.f32 %v2750_v49, %v4756_v18  ;;  %v1807_v25 = vmul.f32 %v4759_v50, %v2750_v49  ;;  %v1919_v5 = vadd.f32 %v1915_v4, %v1907_v55  ;;  %v1935_v44 = vmul.f32 %v1931_v11, %v4792_v51 }
 0x23e   : > { %v2754_v7 = vsel %vm1627_vm0, 1.0, %v5085_v24  ;;  %vm1639_vm13 = vmxor %vm1499_vm12, %vm3277_vm6  ;;  %v2151_v26 = vmul.f32 0.33333334, %v1811_v43  ;;  %v2163_v61 = vmul.f32 0.33333334, %v2786_v27  ;;  %vm1507_vm8 = vcmp.ge.f32.partialorder %v4552_v10, 11.0 }
 0x23f   : > { %vm1643_vm3 = vmand %vm1495_vm9, %vm1639_vm13  ;;  %v4811_v37 = vadd.f32 %v1795_v35, %v1787_v28  ;;  %v1815_v63 = vmul.f32 %v2754_v7, %v1811_v43  ;;  %v1827_v55 = vmul.f32 %v4767_v0, %v2754_v7  ;;  %v4814_v4 = vadd.f32 %v1935_v44, %v1927_v19 }
 0x240   : > { %v4817_v11 = vsel %vm1643_vm3, 1.0, %v5085_v24  ;;  %v2087_v49 = vmul.f32 %v2083_v2, %v1919_v5  ;;  %v2171_v56 = vmul.f32 0.33333334, %v1831_v9  ;;  %vm1511_vm14 = vmxor %vm1467_vm5, %vm3277_vm6  ;;  %v5090_v2 = vsub.f32 2.0, %v4552_v10 }
 0x241   : > { %v1819_v32 = vadd.f32 %v1815_v63, %v1807_v25  ;;  %v1835_v39 = vmul.f32 %v4817_v11, %v1831_v9  ;;  %v1987_v35 = vmul.f32 %v1983_v6, %v4811_v37  ;;  %v2095_v43 = vmul.f32 %v2091_v30, %v4814_v4  ;;  %vm4827_vm9 = vmand %vm1463_vm1, %vm1511_vm14 }
 0x242   : > { %v4834_v27 = vmul.f32 %v4726_v20, %v5090_v2  ;;  %v4836_v19 = vmul.f32 %v1891_v58, %v1719_v59  ;;  %v4838_v25 = vmul.f32 %v2071_v31, %v1919_v5  ;;  %vm1506_vm5 = vcmp.ge.f32.partialorder %v4538_v17, 11.0  ;;  %vm1671_vm0 = vmxor %vm1507_vm8, %vm3277_vm6 }
 0x243   : > { %v4841_v9 = vadd.f32 %v1835_v39, %v1827_v55  ;;  %v1995_v6 = vmul.f32 %v1991_v29, %v1819_v32  ;;  %v2007_v44 = vmul.f32 %v2003_v41, %v1819_v32  ;;  %v2099_v7 = vadd.f32 %v2095_v43, %v2087_v49  ;;  %vm1670_vm15 = vmxor %vm1506_vm5, %vm3277_vm6 }
 0x244   : > { %5091 = vst [vmem:[#allocation13_spill] sm:$0xff] %v4836_v19  ;;  %5092 = vst [vmem:[#allocation14_spill] sm:$0xff] %v4838_v25  ;;  %v2801_v30 = vadd.f32 -9.0, %v4538_v17  ;;  %v1870_v20 = vsub.f32 11.0, %v4538_v17  ;;  %v1962_v59 = vmul.f32 0.5, %v4590_v12  ;;  %v1970_v58 = vmul.f32 0.5, %v4679_v36 }
 0x245   : > { %vm1674_vm11 = vmand %vm1502_vm7, %vm1670_vm15  ;;  %v1999_v31 = vadd.f32 %v1995_v6, %v1987_v35  ;;  %v2015_v39 = vmul.f32 %v2011_v54, %v4841_v9  ;;  %v2042_v41 = vmul.f32 0.5, %v4621_v42  ;;  %v2122_v19 = vmul.f32 0.33333334, %v4575_v38 }
 0x246   : > { %v2765_v29 = vsel %vm1674_vm11, 1.0, %v5085_v24  ;;  %v1866_v5 = vmul.f32 %v2801_v30, %v4659_v23  ;;  %v1966_v55 = vmul.f32 %v1962_v59, %v4636_v1  ;;  %v1974_v49 = vmul.f32 %v1970_v58, %v4689_v60  ;;  %vm1508_vm3 = vmxor %vm1464_vm10, %vm3277_vm6 }
 0x247   : > { %v1874_v63 = vmul.f32 %v2765_v29, %v1870_v20  ;;  %v4856_v32 = vadd.f32 %v2015_v39, %v2007_v44  ;;  %v4858_v43 = vmul.f32 %v2151_v26, %v1999_v31  ;;  %v2167_v2 = vmul.f32 %v2163_v61, %v1999_v31 }
 0x248   : > { %v2046_v35 = vmul.f32 %v2042_v41, %v4669_v47  ;;  %v1978_v54 = vadd.f32 %v1974_v49, %v1966_v55  ;;  %v2050_v25 = vmul.f32 0.5, %v1870_v20  ;;  %v2130_v23 = vmul.f32 0.33333334, %v4679_v36 }
 0x249   : > { %v1878_v6 = vadd.f32 %v1874_v63, %v1866_v5  ;;  %v2175_v42 = vmul.f32 %v2171_v56, %v4856_v32  ;;  %v2142_v1 = vmul.f32 0.33333334, %v4590_v12  ;;  %v2202_v60 = vmul.f32 0.33333334, %v4603_v8 }
 0x24a   : > { %v2126_v26 = vmul.f32 %v2122_v19, %v4656_v15  ;;  %v2210_v30 = vmul.f32 0.33333334, %v1870_v20  ;;  %vm1503_vm7 = vcmp.ge.f32.partialorder %v4552_v10, 10.0  ;;  %v2134_v47 = vmul.f32 %v2130_v23, %v1978_v54 }
 0x24b   : > { %v2054_v44 = vmul.f32 %v2050_v25, %v1878_v6  ;;  %v2179_v61 = vadd.f32 %v2175_v42, %v2167_v2  ;;  %v4868_v59 = vmul.f32 %v2142_v1, %v1978_v54  ;;  %v2206_v38 = vmul.f32 %v2202_v60, %v4686_v16  ;;  %vm1655_vm4 = vmxor %vm1503_vm7, %vm3277_vm6 }
 0x24c   : > { %vm1659_vm2 = vmand %vm1499_vm12, %vm1655_vm4  ;;  %v2782_v12 = vadd.f32 -4.0, %v4552_v10  ;;  %v1771_v8 = vsub.f32 6.0, %v4552_v10  ;;  %v2138_v56 = vadd.f32 %v2134_v47, %v2126_v26  ;;  %v2798_v16 = vadd.f32 -8.0, %v4552_v10 }
 0x24d   : > { %v2058_v36 = vadd.f32 %v2054_v44, %v2046_v35  ;;  %v3126_v15 = vpack.i.bf16 %v2099_v7, %v2179_v61  ;;  %v2762_v19 = vsel %vm1659_vm2, 1.0, %v5085_v24  ;;  %vm1675_vm13 = vmand %vm1503_vm7, %vm1671_vm0  ;;  %v1851_v31 = vsub.f32 10.0, %v4552_v10 }
 0x24e   : > { %v1767_v20 = vmul.f32 %v2782_v12, %v4774_v45  ;;  %v1775_v58 = vmul.f32 %v4784_v57, %v1771_v8  ;;  %vm1460_vm12 = vcmp.ge.f32.partialorder %v4153_v48, 0.0  ;;  %v2766_v7 = vsel %vm1675_vm13, 1.0, %v5085_v24 }
 0x24f   : > { %v2214_v25 = vmul.f32 %v2210_v30, %v2058_v36  ;;  %3127 = vrot.lane.b32.xlu1 %v3126_v15, %s3281_s30  ;;  %v1847_v39 = vmul.f32 %v2798_v16, %v4817_v11  ;;  %v2802_v29 = vadd.f32 -9.0, %v4552_v10  ;;  %v1871_v41 = vsub.f32 11.0, %v4552_v10  ;;  %vm4918_vm10 = vmand %vm1460_vm12, %vm1508_vm3  ;;  %s231_s30 = sand.u32 1, %s3264_s19  }
 0x250   : > { %v1779_v63 = vadd.f32 %v1775_v58, %v1767_v20  ;;  %v1855_v55 = vmul.f32 %v2762_v19, %v1851_v31  ;;  %v1943_v45 = vmul.f32 0.5, %v4742_v46  ;;  %vm1461_vm1 = vcmp.ge.f32.partialorder %v4145_v34, 0.0  ;;  %s5024_s17 = scalar_lea.sflag [#allocation4], %s231_s30 }
 0x251   : > { %v2218_v5 = vadd.f32 %v2214_v25, %v2206_v38  ;;  %v1867_v57 = vmul.f32 %v2802_v29, %v2762_v19  ;;  %v1875_v49 = vmul.f32 %v2766_v7, %v1871_v41  ;;  %v1951_v2 = vmul.f32 0.5, %v1771_v8 }
 0x252   : > { %v1963_v35 = vmul.f32 0.5, %v2782_v12  ;;  %v1859_v54 = vadd.f32 %v1855_v55, %v1847_v39  ;;  %v1947_v42 = vmul.f32 %v1943_v45, %v4792_v51  ;;  %v1971_v11 = vmul.f32 0.5, %v4756_v18 }
 0x253   : > { %v3131_v6 = vpack.i.bf16 %v2138_v56, %v2218_v5  ;;  %v1879_v23 = vadd.f32 %v1875_v49, %v1867_v57  ;;  %v1955_v1 = vmul.f32 %v1951_v2, %v1779_v63  ;;  %v2023_v44 = vmul.f32 0.5, %v4767_v0 }
 0x254   : > { %v1967_v60 = vmul.f32 %v1963_v35, %v1779_v63  ;;  %v1975_v26 = vmul.f32 %v1971_v11, %v4811_v37  ;;  %v2031_v30 = vmul.f32 0.5, %v1851_v31  ;;  %v2043_v61 = vmul.f32 0.5, %v2798_v16 }
 0x255   : > { %3132 = vrot.lane.b32.xlu0 %v3131_v6, %s3284_s13  ;;  %v2051_v47 = vmul.f32 0.5, %v1871_v41  ;;  %v1959_v38 = vadd.f32 %v1955_v1, %v1947_v42  ;;  %v2027_v36 = vmul.f32 %v2023_v44, %v4841_v9  ;;  %v2123_v15 = vmul.f32 0.33333334, %v4742_v46 }
 0x256   : > { %v2131_v51 = vmul.f32 0.33333334, %v4756_v18  ;;  %v1979_v56 = vadd.f32 %v1975_v26, %v1967_v60  ;;  %v2035_v19 = vmul.f32 %v2031_v30, %v1859_v54  ;;  %v2047_v25 = vmul.f32 %v2043_v61, %v1859_v54  ;;  %v5103_v18 = vld [vmem:[#allocation10_spill] sm:$0xff] }
 0x257   : > { %v2055_v20 = vmul.f32 %v2051_v47, %v1879_v23  ;;  %v2127_v58 = vmul.f32 %v2123_v15, %v1959_v38  ;;  %v2143_v37 = vmul.f32 0.33333334, %v2782_v12  ;;  %v2203_v16 = vmul.f32 0.33333334, %v4767_v0  ;;  %v5106_v0 = vld [vmem:[#allocation12_spill] sm:$0xff] }
 0x258   : > { %v2211_v7 = vmul.f32 0.33333334, %v1871_v41  ;;  %v2039_v39 = vadd.f32 %v2035_v19, %v2027_v36  ;;  %v2135_v9 = vmul.f32 %v2131_v51, %v1979_v56  ;;  %v2103_v46 = vmul.f32 0.33333334, %v4738_v52 }
 0x259   : > { %v2059_v29 = vadd.f32 %v2055_v20, %v2047_v25  ;;  %vm5093_vm14 = vcmp.ge.f32.partialorder %v4145_v34, 1.0  ;;  %v2147_v5 = vmul.f32 %v2143_v37, %v1979_v56  ;;  %v2111_v63 = vmul.f32 0.33333334, %v1771_v8 }
 0x25a   : > { %vm4911_vm5 = vmxor %vm5093_vm14, %vm3277_vm6  ;;  %v2183_v55 = vmul.f32 0.33333334, %v4759_v50  ;;  %v2191_v12 = vmul.f32 0.33333334, %v1851_v31  ;;  %v2139_v41 = vadd.f32 %v2135_v9, %v2127_v58  ;;  %v2207_v52 = vmul.f32 %v2203_v16, %v2039_v39  ;;  %v5101_v58 = vld [vmem:[#allocation8_spill] sm:$0xff] }
 0x25b   : > { %v2215_v45 = vmul.f32 %v2211_v7, %v2059_v29  ;;  %v2107_v57 = vmul.f32 %v2103_v46, %v4814_v4  ;;  %vm1462_vm15 = vcmp.ge.f32.partialorder %v4538_v17, 0.0  ;;  %vm5098_vm11 = vcmp.ge.f32.partialorder %v4538_v17, 1.0  ;;  %vm1513_vm4 = vmand %vm1461_vm1, %vm4911_vm5 }
 0x25c   : > { %vm1510_vm7 = vmxor %vm5098_vm11, %vm3277_vm6  ;;  %v2115_v8 = vmul.f32 %v2111_v63, %v1959_v38  ;;  %v2187_v50 = vmul.f32 %v2183_v55, %v4856_v32  ;;  %v2195_v31 = vmul.f32 %v2191_v12, %v2039_v39  ;;  %v5099_v49 = vsub.f32 2.0, %v4145_v34  ;;  %v5102_v39 = vld [vmem:[#allocation11_spill] sm:$0xff] }
 0x25d   : > { %v2219_v4 = vadd.f32 %v2215_v45, %v2207_v52  ;;  %v5100_v35 = vsub.f32 2.0, %v4153_v48  ;;  %v1690_v54 = vsub.f32 2.0, %v4538_v17  ;;  %vm1514_vm6 = vmand %vm1462_vm15, %vm1510_vm7  ;;  %v2723_v23 = vsel %vm4918_vm10, 1.0, %v5085_v24  ;;  %v5107_v52 = vld [vmem:[#allocation14_spill] sm:$0xff] }
 0x25e   : > { %v1693_v2 = vmul.f32 %v4276_v22, %v5099_v49  ;;  %v2119_v42 = vadd.f32 %v2115_v8, %v2107_v57  ;;  %v2199_v11 = vadd.f32 %v2195_v31, %v2187_v50  ;;  %v2156_v1 = vadd.f32 %v4485_v21, %v4542_v62  ;;  %v3093_v57 = vpop.permute.xlu0 %3092  ;;  %v3088_v8 = vpop.permute.xlu1 %3087 }
 0x25f   : > { %v1692_v6 = vmul.f32 %v4455_v3, %v5100_v35  ;;  %v3141_v32 = vpack.i.bf16 %v2139_v41, %v2219_v4  ;;  %v2157_v22 = vadd.f32 %v4307_v14, %v4512_v33  ;;  %v1684_v44 = vmul.f32 %v2723_v23, %v4153_v48 }
 0x260   : > { %v3136_v60 = vpack.i.bf16 %v2119_v42, %v2199_v11  ;;  %v2724_v3 = vsel %vm1513_vm4, 1.0, %v5085_v24  ;;  %v1694_v26 = vmul.f32 %v4675_v40, %v1690_v54  ;;  %v4953_v61 = vadd.f32 %v4703_v13, %v4868_v59 }
 0x261   : > { %3142 = vrot.lane.b32.xlu1 %v3141_v32, %s3284_s13  ;;  %v1685_v30 = vmul.f32 %v2724_v3, %v4145_v34  ;;  %v1880_v21 = vmul.f32 0.5, %v4153_v48  ;;  %v1696_v14 = vadd.f32 %v1692_v6, %v1684_v44  ;;  %v2725_v33 = vsel %vm1514_vm6, 1.0, %v5085_v24 }
 0x262   : > { %3137 = vrot.lane.b32.xlu0 %v3136_v60, %s3282_s23  ;;  %v1881_v47 = vmul.f32 0.5, %v4145_v34  ;;  %v1686_v40 = vmul.f32 %v2725_v33, %v4538_v17  ;;  %v4961_v38 = vadd.f32 %v4858_v43, %v2147_v5  ;;  %v2726_v13 = vsel %vm4827_vm9, 1.0, %v5085_v24  ;;  %v5104_v5 = vld [vmem:[#allocation9_spill] sm:$0xff]  ;;  %s2620_s23 = sshll.u32 %s231_s30, 5 }
 0x263   : > { %v1697_v62 = vadd.f32 %v1693_v2, %v1685_v30  ;;  %v1884_v36 = vmul.f32 %v1880_v21, %v1696_v14  ;;  %v1882_v51 = vmul.f32 0.5, %v4538_v17  ;;  %v1687_v56 = vmul.f32 %v2726_v13, %v4552_v10  ;;  %s233_s13 = scalar_lea.vmem [#allocation5], %s2620_s23 }
 0x264   : > { %v1698_v15 = vadd.f32 %v1694_v26, %v1686_v40  ;;  %v2060_v19 = vmul.f32 0.33333334, %v4153_v48  ;;  %v2061_v20 = vmul.f32 0.33333334, %v4145_v34  ;;  %v1883_v28 = vmul.f32 0.5, %v4552_v10  ;;  %v5105_v34 = vld [vmem:[#allocation13_spill] sm:$0xff] }
 0x265   : > { %v1885_v59 = vmul.f32 %v1881_v47, %v1697_v62  ;;  %v1896_v25 = vadd.f32 %v4483_v53, %v1884_v36  ;;  %v1699_v16 = vadd.f32 %v4834_v27, %v1687_v56  ;;  %v2062_v9 = vmul.f32 0.33333334, %v4538_v17  ;;  %s2540_s14 = sshll.u32 %s233_s13, 4  ;;  %s5015_s14 = int_to_ptr.vmem [resolvable:$true] %s2540_s14 }
 0x266   : > { %v1886_v37 = vmul.f32 %v1882_v51, %v1698_v15  ;;  %v2063_v12 = vmul.f32 0.33333334, %v4552_v10  ;;  %v3089_v2 = vunpack.i.l.bf16 %v3088_v8  ;;  %vm5108_vm9 = vcmask 261120   ;;  %s3208_s6 = scalar_lea.vmem %s5015_s14, 512  ;;  %p3215_p11 = scmp.lt.s32.totalorder %s5015_s14, %s3213_s26 }
 0x267   : > { %v1897_v43 = vadd.f32 %v5101_v58, %v1885_v59  ;;  %v2064_v24 = vmul.f32 %v2060_v19, %v1896_v25  ;;  %v1887_v46 = vmul.f32 %v1883_v28, %v1699_v16  ;;  %vm5109_vm8 = vmmov %vm5108_vm9  ;;  %v3094_v42 = vunpack.i.l.bf16 %v3093_v57  ;;  %p3209_p6 = scmp.ne.s32.totalorder %s5015_s14, %s3208_s6  ;;  %p3216_p12 = scmp.lt.s32.totalorder %s3214_s8, %s3208_s6 }
 0x268   : > { %v1898_v29 = vadd.f32 %v5102_v39, %v1886_v37  ;;  %v3090_v11 = vunpack.i.h.bf16 %v3088_v8  ;;  %vm5110_vm2 = vmmov %vm5109_vm8  ;;  %vm5111_vm0 = vcmask 523264   ;;  %v3095_v21 = vunpack.i.h.bf16 %v3093_v57 }
 0x269   : > { %v2065_v7 = vmul.f32 %v2061_v20, %v1897_v43  ;;  %v2076_v48 = vadd.f32 %v5103_v18, %v2064_v24  ;;  %v1899_v55 = vadd.f32 %v5105_v34, %v1887_v46  ;;  %v2329_v3 = vsel %vm5110_vm2, %v2157_v22, %v3089_v2  ;;  %vm5112_vm13 = vmmov %vm5111_vm0  ;;  %p3210_p9 = pnand %p3209_p6, %p3357_p5  ;;  %p3217_p13 = por %p3216_p12, %p3215_p11 }
 0x26a   : > { %v2066_v63 = vmul.f32 %v2062_v9, %v1898_v29  ;;  %vm5113_vm12 = vcmask 785408   ;;  %vm5115_vm3 = vmmov %vm5111_vm0 }
 0x26b   : > { %v2077_v53 = vadd.f32 %v5104_v5, %v2065_v7  ;;  %v2067_v41 = vmul.f32 %v2063_v12, %v1899_v55  ;;  %vm5114_vm1 = vmmov %vm5113_vm12  ;;  %p3211_p10 = pneg %p3210_p9 }
 0x26c   : > { %v2078_v27 = vadd.f32 %v5106_v0, %v2066_v63  ;;  %vm5116_vm14 = vmmov %vm5110_vm2 }
 0x26d   : > { %v4982_v45 = vadd.f32 %v5107_v52, %v2067_v41  ;;  %v2317_v47 = vsel %vm5116_vm14, %v2077_v53, %v3090_v11  ;;  %vm5117_vm5 = vmmov %vm5114_vm1  ;;  %p3218_p0 = pnand %p3217_p13, %p3211_p10 }
 0x26e   : > { %vm5118_vm10 = vmmov %vm5111_vm0 }
 0x26f   : > { %v2321_v22 = vsel %vm5118_vm10, %v2317_v47, %v3095_v21  ;;  %vm5119_vm15 = vmmov %vm5114_vm1 }
 0x270   : > { %vm5120_vm11 = vmmov %vm5110_vm2 }
 0x271   : > { %vm5121_vm7 = vmmov %vm5110_vm2 }
 0x272   : > { %vm5122_vm4 = vmmov %vm5111_vm0 }
 0x273   : > { %v3103_v50 = vpop.permute.xlu1 %3102  ;;  %vm5123_vm6 = vmmov %vm5111_vm0 }
 0x274   : > { %v3105_v4 = vunpack.i.h.bf16 %v3103_v50  ;;  %v3104_v35 = vunpack.i.l.bf16 %v3103_v50 }
 0x276   : > { %v3098_v17 = vpop.permute.xlu0 %3097 }
 0x277   : > { %v3100_v31 = vunpack.i.h.bf16 %v3098_v17  ;;  %v3099_v49 = vunpack.i.l.bf16 %v3098_v17 }
 0x279   : > { %v2316_v54 = vsel %vm5108_vm9, %v2076_v48, %v3100_v31  ;;  %v2328_v10 = vsel %vm5109_vm8, %v2156_v1, %v3099_v49  ;;  %v2333_v1 = vsel %vm5115_vm3, %v2329_v3, %v3094_v42  ;;  %vm5124_vm9 = vmmov %vm5114_vm1 }
 0x27a   : > { %v2332_v26 = vsel %vm5111_vm0, %v2328_v10, %v3104_v35  ;;  %v2320_v30 = vsel %vm5112_vm13, %v2316_v54, %v3105_v4  ;;  %vm5125_vm8 = vmmov %vm5114_vm1 }
 0x27b   : > { %vm5126_vm0 = vmmov %vm5110_vm2 }
 0x27c   : > { %vm5127_vm13 = vmmov %vm5115_vm3 }
 0x283   : > { %v3108_v6 = vpop.permute.xlu1 %3107 }
 0x284   : > { %v3109_v23 = vunpack.i.l.bf16 %v3108_v6  ;;  %v3110_v62 = vunpack.i.h.bf16 %v3108_v6 }
 0x286   : > { %v2337_v40 = vsel %vm5117_vm5, %v2333_v1, %v3109_v23  ;;  %v2325_v36 = vsel %vm5119_vm15, %v2321_v22, %v3110_v62 }
 0x288   : > { %v3113_v32 = vpop.permute.xlu0 %3112 }
 0x289   : > { %v3115_v60 = vunpack.i.h.bf16 %v3113_v32  ;;  %v3114_v44 = vunpack.i.l.bf16 %v3113_v32 }
 0x28b   : > { %v2336_v14 = vsel %vm5113_vm12, %v2332_v26, %v3114_v44  ;;  %v2324_v33 = vsel %vm5114_vm1, %v2320_v30, %v3115_v60  ;;  %vm5128_vm12 = vmmov %vm5115_vm3 }
 0x28c   : > { %2404 = vmatprep.mubr.f32.mxu1 %v2336_v14  ;;  %vm5129_vm3 = vmmov %vm5114_vm1 }
 0x28d   : > { %2405 = vmatmul.mubr.f32.vlgmr.msra.gmra.mxu1 %v2324_v33 }
 0x28e   : > { %2409 = vmatprep.mubr.f32.mxu1 %v2337_v40 }
 0x291   : > { %2410 = vmatmul.mubr.f32.gmra.mxu1 %v2325_v36 }
 0x2a2   : > { %v3123_v59 = vpop.permute.xlu1 %3122 }
 0x2a3   : > { %v3125_v56 = vunpack.i.h.bf16 %v3123_v59  ;;  %v3124_v19 = vunpack.i.l.bf16 %v3123_v59  ;;  %v2949_v41 = vpop.f32.mrf.mxu0 }
 0x2a5   : > { %v2503_v8 = vpop.f32.mrf.mxu0 }
 0x2a6   : > { %v3118_v13 = vpop.permute.xlu0 %3117 }
 0x2a7   : > { %v3120_v15 = vunpack.i.h.bf16 %v3118_v13  ;;  %v3119_v51 = vunpack.i.l.bf16 %v3118_v13 }
 0x2a9   : > { %v2330_v25 = vsel %vm5120_vm11, %v4953_v61, %v3119_v51  ;;  %v2318_v20 = vsel %vm5121_vm7, %v2078_v27, %v3120_v15 }
 0x2aa   : > { %v2334_v16 = vsel %vm5122_vm4, %v2330_v25, %v3124_v19  ;;  %v2322_v28 = vsel %vm5123_vm6, %v2318_v20, %v3125_v56 }
 0x2c1   : > { %v3128_v39 = vpop.permute.xlu1 %3127 }
 0x2c2   : > { %v3130_v29 = vunpack.i.h.bf16 %v3128_v39  ;;  %v3129_v9 = vunpack.i.l.bf16 %v3128_v39 }
 0x2c4   : > { %v2331_v63 = vsel %vm5110_vm2, %v4961_v38, %v3129_v9  ;;  %v2319_v34 = vsel %vm5126_vm0, %v4982_v45, %v3130_v29 }
 0x2c7   : > { %v3133_v58 = vpop.permute.xlu0 %3132 }
 0x2c8   : > { %v3135_v43 = vunpack.i.h.bf16 %v3133_v58  ;;  %v3134_v37 = vunpack.i.l.bf16 %v3133_v58 }
 0x2ca   : > { %v2338_v24 = vsel %vm5124_vm9, %v2334_v16, %v3134_v37  ;;  %v2326_v7 = vsel %vm5125_vm8, %v2322_v28, %v3135_v43 }
 0x2cb   : > { %2414 = vmatprep.mubr.f32.mxu1 %v2338_v24 }
 0x2cc   : > { %2415 = vmatmul.mubr.f32.gmra.mxu1 %v2326_v7 }
 0x2d3   : > { %v3143_v61 = vpop.permute.xlu1 %3142 }
 0x2d4   : > { %v3145_v46 = vunpack.i.h.bf16 %v3143_v61  ;;  %v3144_v18 = vunpack.i.l.bf16 %v3143_v61  ;;  %v3138_v48 = vpop.permute.xlu0 %3137 }
 0x2d5   : > { %v3140_v5 = vunpack.i.h.bf16 %v3138_v48  ;;  %v3139_v53 = vunpack.i.l.bf16 %v3138_v48 }
 0x2d7   : > { %v2335_v55 = vsel %vm5127_vm13, %v2331_v63, %v3139_v53  ;;  %v2323_v12 = vsel %vm5128_vm12, %v2319_v34, %v3140_v5 }
 0x2d8   : > { %v2339_v0 = vsel %vm5114_vm1, %v2335_v55, %v3144_v18  ;;  %v2327_v27 = vsel %vm5129_vm3, %v2323_v12, %v3145_v46 }
 0x2d9   : > { %2419 = vmatprep.mubr.f32.mxu1 %v2339_v0 }
 0x2da   : > { %2420 = vmatmul.mubr.f32.gmra.mxu1 %v2327_v27 }
 0x2ee   : > { %v2952_v2 = vpop.f32.mrf.mxu0 }
 0x2f0   : > { %v2513_v54 = vpop.f32.mrf.mxu0 }
 0x34d   : > { %v2871_v52 = vpop.f32.mrf.mxu1 }
 0x34f   : > { %v2872_v57 = vpop.f32.mrf.mxu1 }
 0x350   : > { %v2873_v38 = vadd.f32 %v2872_v57, %v2871_v52 }
 0x351   : > { %v2874_v50 = vpop.f32.mrf.mxu1 }
 0x352   : > { %v2504_v45 = vadd.f32 %v2873_v38, %v2503_v8 }
 0x353   : > { %v2875_v17 = vpop.f32.mrf.mxu1 }
 0x354   : > { %2522 = vst [vmem:[%s233_s13] sm:$0xff] %v2504_v45  ;;  %v2876_v31 = vadd.f32 %v2875_v17, %v2874_v50 }
 0x356   : > { %v2509_v49 = vadd.f32 %v2949_v41, %v2876_v31 }
 0x358   : > { %2523 = vst [vmem:[%s233_s13 + $0x8] sm:$0xff] %v2509_v49 }
 0x38c   : > { %v2877_v4 = vpop.f32.mrf.mxu1 }
 0x38e   : > { %v2878_v35 = vpop.f32.mrf.mxu1 }
 0x38f   : > { %v2879_v6 = vadd.f32 %v2878_v35, %v2877_v4 }
 0x391   : > { %v2514_v10 = vadd.f32 %v2879_v6, %v2513_v54 }
 0x393   : > { %2524 = vst [vmem:[%s233_s13 + $0x10] sm:$0xff] %v2514_v10 }
 0x39a   : > { %v2880_v42 = vpop.f32.mrf.mxu1 }
 0x39c   : > { %v2881_v11 = vpop.f32.mrf.mxu1 }
 0x39d   : > { %v2882_v32 = vadd.f32 %v2881_v11, %v2880_v42 }
 0x39f   : > { %v2519_v23 = vadd.f32 %v2952_v2, %v2882_v32 }
 0x3a1   : > { %2525 = vst [vmem:[%s233_s13 + $0x18] sm:$0xff] %v2519_v23 }
 0x3a2   : > { %3221 = shalt.err (!%p3218_p0)
}
 0x3a3   : > { %s3222_s9 = scalar_lea.hbm %s5020_s7, 512  ;;  %s3226_s12 = scalar_lea.hbm %s5069_s5, 1024 }
 0x3a4   : > { %p3223_p1 = scmp.ne.s32.totalorder %s5020_s7, %s3222_s9  ;;  %p3227_p4 = scmp.lt.s32.totalorder %s5020_s7, %s5069_s5 }
 0x3a5   : > { %p3228_p7 = scmp.lt.s32.totalorder %s3226_s12, %s3222_s9 }
 0x3a6   : > { %p3224_p2 = pnand %p3223_p1, %p3357_p5 }
 0x3a7   : > { %p3229_p8 = por %p3228_p7, %p3227_p4 }
 0x3a8   : > { %p3225_p3 = pneg %p3224_p2 }
 0x3aa   : > { %p3230_p6 = pnand %p3229_p8, %p3225_p3 }
 0x3ac   : > { %3233 = shalt.err (!%p3230_p6)
}
 0x3ad   : > { %s3287_s13 = smov 128   ;;  %s3288_s15 = smov 8  }
 0x3ae   : > { %2957 = dma.vmem_to_hbm [thread:$0]  (%p3357_p5), %s5015_s14, 512, %s5020_s7, %s5024_s17, %s3287_s13, %s3287_s13, %s3288_s15  }
 0x3af PF: > { %p2969_p9 = scmp.ge.s32.totalorder %s3272_s21, 2  ;;  %s2555_s16 = sand.u32 1, %s3260_s18  }
 0x3b0   : > { %p5130_p10 = scmp.ne.s32.totalorder %s5078_s29, 0  ;;  %s2556_s25 = scalar_lea.sflag [#allocation4], %s2555_s16 }
 0x3b2   : > { %p2964_p11 = pnand %p2969_p9, %p5130_p10 }
 0x3b4   : > { %p2965_p12 = pneg %p2964_p11 }
 0x3b6   : > { %3255 = dma.done.wait (%p2965_p12), %s2556_s25, 512  }
 0x3b7   : > { %3257 = vsyncadd (%p2965_p12), %s2556_s25, 4294966784  ;;  %p16_p13 = scmp.ge.s32.totalorder %s3344_s24, 4   ;;  %s5131_s18 = smov %s3264_s19 }
 0x3b8   : > { %s5132_s19 = smov %s3268_s20  ;;  %s5133_s20 = smov %s3355_s27 }
 0x3b9   : > { %s5134_s21 = smov %s3344_s24  ;;  %18 = sbr.rel (!%p16_p13) target bundleno = 4 (0x4), region = 80 }
 0x3be   :  { %2561 = vsyncpa [#allocation3], 1 }
 0x3bf   :  { %2563 = vsyncpa [#allocation3 + $0x1], 1 }
 0x3c0   :  { %2564 = vsyncpa [#allocation4], 1 }
 0x3c1   :  { %2566 = vsyncpa [#allocation4 + $0x1], 1 }

</bundles_post_ra>
